<compile_context>
chip_gen: v5e
topology: v5e:2x2
jax: 0.10.0
libtpu: 0.0.40
codegen_flags: <defaults>
</compile_context>

<pallas_src>
import functools

import jax
import jax.numpy as jnp
from jax.experimental import pallas as pl
from jax.experimental.pallas import tpu as pltpu


CHUNK = 128  # lanes processed per inner step; keeps live vregs < 64


# ----------------------------------------------------------------------------
# Pallas kernel: Rodrigues exp-map (SO3xR3 or SE3) of the gathered tangent
# vectors, optionally composed with the gathered noise pose
# (pose_utils.multiply == [Ra@Rb | ta + Ra@tb]).
#
# Layout inside the kernel (lane-dense):
#   tan_ref   : (6,  TILE_N)   rows = [tx, ty, tz, wx, wy, wz]
#   noise_ref : (12, TILE_N)   rows = row-major flattened 3x4 noise pose
#   out_ref   : (12, TILE_N)   rows = row-major flattened 3x4 output pose
# ----------------------------------------------------------------------------
def _camera_opt_kernel(*refs, mode, has_noise):
    tan_ref = refs[0]
    noise_ref = refs[1] if has_noise else None
    out_ref = refs[-1]

    block_n = out_ref.shape[-1]
    num_chunks = block_n // CHUNK  # static Python int

    # Fully-unrolled inner loop over 128-lane chunks; all slices are static.
    for c in range(num_chunks):
        s = c * CHUNK

        def trow(k):
            return tan_ref[k:k + 1, s:s + CHUNK]  # (1, CHUNK)

        tx, ty, tz = trow(0), trow(1), trow(2)
        wx, wy, wz = trow(3), trow(4), trow(5)

        theta2 = wx * wx + wy * wy + wz * wz
        theta = jnp.sqrt(theta2)
        near_zero = theta < 1e-2
        one = jnp.ones_like(theta)
        theta_nz = jnp.where(near_zero, one, theta)
        theta2_nz = jnp.where(near_zero, one, theta2)

        sine = jnp.sin(theta)
        cosine = jnp.where(near_zero, 8.0 / (4.0 + theta2) - 1.0, jnp.cos(theta))
        sbt = jnp.where(near_zero, 0.5 * cosine + 0.5, sine / theta_nz)
        A = jnp.where(near_zero, 0.5 * sbt, (1.0 - cosine) / theta2_nz)

        # hoisted common products (guaranteed CSE)
        awx, awy, awz = A * wx, A * wy, A * wz
        swx, swy, swz = sbt * wx, sbt * wy, sbt * wz

        # R = A * w w^T + cos(theta) * I + sin(theta)/theta * skew(w)
        r00 = awx * wx + cosine
        r01 = awx * wy - swz
        r02 = awx * wz + swy
        r10 = awy * wx + swz
        r11 = awy * wy + cosine
        r12 = awy * wz - swx
        r20 = awz * wx - swy
        r21 = awz * wy + swx
        r22 = awz * wz + cosine

        if mode == "SO3xR3":
            t0, t1, t2 = tx, ty, tz
        else:  # "SE3": translation gets the left Jacobian V(theta) @ lin
            theta3 = theta2 * theta
            theta3_nz = jnp.where(near_zero, one, theta3)
            sbt_t = jnp.where(near_zero, 1.0 - theta2 / 6.0, sine / theta_nz)
            omc_t = jnp.where(near_zero, 0.5 - theta2 / 24.0,
                              (1.0 - cosine) / theta2_nz)
            tms3 = jnp.where(near_zero, 1.0 / 6.0 - theta2 / 120.0,
                             (theta - sine) / theta3_nz)
            wdt = wx * tx + wy * ty + wz * tz
            cx = wy * tz - wz * ty
            cy = wz * tx - wx * tz
            cz = wx * ty - wy * tx
            t0 = sbt_t * tx + omc_t * cx + tms3 * wx * wdt
            t1 = sbt_t * ty + omc_t * cy + tms3 * wy * wdt
            t2 = sbt_t * tz + omc_t * cz + tms3 * wz * wdt

        if has_noise:
            def nrow(k):
                return noise_ref[k:k + 1, s:s + CHUNK]  # (1, CHUNK)

            n00, n01, n02, nt0 = nrow(0), nrow(1), nrow(2), nrow(3)
            n10, n11, n12, nt1 = nrow(4), nrow(5), nrow(6), nrow(7)
            n20, n21, n22, nt2 = nrow(8), nrow(9), nrow(10), nrow(11)

            # pose_utils.multiply:  R_out = R @ Rn ;  t_out = t + R @ tn
            o00 = r00 * n00 + r01 * n10 + r02 * n20
            o01 = r00 * n01 + r01 * n11 + r02 * n21
            o02 = r00 * n02 + r01 * n12 + r02 * n22
            ot0 = t0 + r00 * nt0 + r01 * nt1 + r02 * nt2
            o10 = r10 * n00 + r11 * n10 + r12 * n20
            o11 = r10 * n01 + r11 * n11 + r12 * n21
            o12 = r10 * n02 + r11 * n12 + r12 * n22
            ot1 = t1 + r10 * nt0 + r11 * nt1 + r12 * nt2
            o20 = r20 * n00 + r21 * n10 + r22 * n20
            o21 = r20 * n01 + r21 * n11 + r22 * n21
            o22 = r20 * n02 + r21 * n12 + r22 * n22
            ot2 = t2 + r20 * nt0 + r21 * nt1 + r22 * nt2
            rows = (o00, o01, o02, ot0, o10, o11, o12, ot1,
                    o20, o21, o22, ot2)
        else:
            rows = (r00, r01, r02, t0, r10, r11, r12, t1, r20, r21, r22, t2)

        # single full-lane (unmasked) store per chunk; sublane-stacking uses
        # the otherwise-idle XLU slot instead of the vector-store slot.
        out_ref[:, s:s + CHUNK] = jnp.concatenate(rows, axis=0)


# ----------------------------------------------------------------------------
# Wrapper: CameraOptimizer.forward
# ----------------------------------------------------------------------------
def camera_optimizer_forward(indices, pose_adjustment, pose_noise=None,
                             mode="SO3xR3", tile_n=512):
    """Pallas-backed CameraOptimizer.forward.

    indices:         (N,)  int32
    pose_adjustment: (num_cameras, 6) float32
    pose_noise:      (num_cameras, 3, 4) float32 or None
    returns:         (N, 3, 4) float32
    """
    n = int(indices.shape[0])
    if mode == "off":
        eye = jnp.eye(4, dtype=jnp.float32)[None, :3, :4]
        return jnp.tile(eye, (n, 1, 1))
    assert mode in ("SO3xR3", "SE3")

    # Tile sizing: multiple of CHUNK lanes, capped so tiny batches don't pay
    # for a mostly-padded block.  (For very small N a fused pure-JAX path
    # would beat the kernel launch; kept on the Pallas path here.)
    n_round = max(CHUNK, ((n + CHUNK - 1) // CHUNK) * CHUNK)
    tile_n = max(CHUNK, (min(tile_n, n_round) // CHUNK) * CHUNK)
    n_pad = ((n + tile_n - 1) // tile_n) * tile_n

    idx = indices.astype(jnp.int32)
    if n_pad != n:
        idx = jnp.concatenate(
            [idx, jnp.zeros((n_pad - n,), jnp.int32)], axis=0)

    # Gather + transpose to the lane-dense (components, N) layout (XLA glue).
    # TODO(synk): do this gather inside the kernel (scalar-prefetch indices)
    # to avoid the HBM round-trip of the gathered operands.
    tan_t = pose_adjustment[idx, :].T.astype(jnp.float32)        # (6, n_pad)

    has_noise = pose_noise is not None
    args = [tan_t]
    in_specs = [pl.BlockSpec((6, tile_n), lambda i: (0, i))]
    if has_noise:
        noise_t = pose_noise[idx].reshape(n_pad, 12).T.astype(jnp.float32)
        args.append(noise_t)                                      # (12, n_pad)
        in_specs.append(pl.BlockSpec((12, tile_n), lambda i: (0, i)))

    kernel = functools.partial(_camera_opt_kernel, mode=mode,
                               has_noise=has_noise)

    bytes_per_pose = (6 + (12 if has_noise else 0) + 12) * 4
    out_t = pl.pallas_call(
        kernel,
        out_shape=jax.ShapeDtypeStruct((12, n_pad), jnp.float32),
        grid_spec=pltpu.PrefetchScalarGridSpec(
            num_scalar_prefetch=0,
            grid=(n_pad // tile_n,),
            in_specs=in_specs,
            out_specs=pl.BlockSpec((12, tile_n), lambda i: (0, i)),
        ),
        compiler_params=pltpu.CompilerParams(
            dimension_semantics=("parallel",)),
        cost_estimate=pl.CostEstimate(
            flops=100 * n_pad,
            transcendentals=3 * n_pad,
            bytes_accessed=bytes_per_pose * n_pad),
    )(*args)

    return out_t.T[:n].reshape(n, 3, 4)


# ----------------------------------------------------------------------------
# Plain-JAX helpers (noise setup + references for verification)
# ----------------------------------------------------------------------------
def exp_map_SO3xR3_ref(tv):
    lin, ang = tv[:, :3], tv[:, 3:]
    theta = jnp.linalg.norm(ang, axis=1, keepdims=True)
    theta2 = theta ** 2
    near_zero = theta < 1e-2
    theta_nz = jnp.where(near_zero, 1.0, theta)
    theta2_nz = jnp.where(near_zero, 1.0, theta2)
    sine = jnp.sin(theta)
    cosine = jnp.where(near_zero, 8.0 / (4.0 + theta2) - 1.0, jnp.cos(theta))
    sbt = jnp.where(near_zero, 0.5 * cosine + 0.5, sine / theta_nz)
    omc = jnp.where(near_zero, 0.5 * sbt, (1.0 - cosine) / theta2_nz)
    wwT = ang[:, :, None] * ang[:, None, :]
    R = omc[:, :, None] * wwT + cosine[:, :, None] * jnp.eye(3, dtype=tv.dtype)
    sk = sbt * ang
    zeros = jnp.zeros_like(sk[:, 0])
    skew = jnp.stack(
        [
            jnp.stack([zeros, -sk[:, 2], sk[:, 1]], axis=-1),
            jnp.stack([sk[:, 2], zeros, -sk[:, 0]], axis=-1),
            jnp.stack([-sk[:, 1], sk[:, 0], zeros], axis=-1),
        ],
        axis=1,
    )
    R = R + skew
    return jnp.concatenate([R, lin[:, :, None]], axis=-1)


def exp_map_SE3_ref(tv):
    lin, ang = tv[:, :3], tv[:, 3:]
    theta = jnp.linalg.norm(ang, axis=1, keepdims=True)
    theta2 = theta ** 2
    theta3 = theta ** 3
    near_zero = theta < 1e-2
    theta_nz = jnp.where(near_zero, 1.0, theta)
    theta2_nz = jnp.where(near_zero, 1.0, theta2)
    theta3_nz = jnp.where(near_zero, 1.0, theta3)
    sine = jnp.sin(theta)
    cosine = jnp.where(near_zero, 8.0 / (4.0 + theta2) - 1.0, jnp.cos(theta))
    sbt = jnp.where(near_zero, 0.5 * cosine + 0.5, sine / theta_nz)
    omc = jnp.where(near_zero, 0.5 * sbt, (1.0 - cosine) / theta2_nz)
    wwT = ang[:, :, None] * ang[:, None, :]
    R = omc[:, :, None] * wwT + cosine[:, :, None] * jnp.eye(3, dtype=tv.dtype)
    sk = sbt * ang
    zeros = jnp.zeros_like(sk[:, 0])
    skew = jnp.stack(
        [
            jnp.stack([zeros, -sk[:, 2], sk[:, 1]], axis=-1),
            jnp.stack([sk[:, 2], zeros, -sk[:, 0]], axis=-1),
            jnp.stack([-sk[:, 1], sk[:, 0], zeros], axis=-1),
        ],
        axis=1,
    )
    R = R + skew
    sbt_t = jnp.where(near_zero, 1.0 - theta2 / 6.0, sine / theta_nz)
    omc_t = jnp.where(near_zero, 0.5 - theta2 / 24.0, (1.0 - cosine) / theta2_nz)
    tms3 = jnp.where(near_zero, 1.0 / 6.0 - theta2 / 120.0,
                     (theta - sine) / theta3_nz)
    t = (
        sbt_t * lin
        + omc_t * jnp.cross(ang, lin)
        + tms3 * ang * jnp.sum(ang * lin, axis=1, keepdims=True)
    )
    return jnp.concatenate([R, t[:, :, None]], axis=-1)


def pose_multiply_ref(a, b):
    Ra, ta = a[..., :3, :3], a[..., :3, 3:]
    Rb, tb = b[..., :3, :3], b[..., :3, 3:]
    return jnp.concatenate([Ra @ Rb, ta + Ra @ tb], axis=-1)


# ----------------------------------------------------------------------------
if __name__ == "__main__":
    key = jax.random.PRNGKey(0)
    k_adj, k_noise, k_idx = jax.random.split(key, 3)

    num_cameras = 32
    n_indices = 1000  # not a multiple of the tile -> exercises padding path

    # __init__: pose_adjustment = zeros((num_cameras, 6)).  Zeros make the
    # exp-map trivially identity, so use small random values to exercise math.
    pose_adjustment = 0.1 * jax.random.normal(k_adj, (num_cameras, 6),
                                              jnp.float32)

    # __init__: pose_noise = exp_map_SE3(N(0, std_vector))  (one-time glue)
    std_vector = jnp.array([0.02] * 3 + [0.01] * 3, jnp.float32)
    noise_tangent = (jax.random.normal(k_noise, (num_cameras, 6), jnp.float32)
                     * std_vector)
    pose_noise = exp_map_SE3_ref(noise_tangent)                 # (C, 3, 4)

    indices = jax.random.randint(k_idx, (n_indices,), 0, num_cameras,
                                 jnp.int32)

    # --- mode = SO3xR3, with noise -----------------------------------------
    out = jax.block_until_ready(
        camera_optimizer_forward(indices, pose_adjustment, pose_noise,
                                 mode="SO3xR3"))
    ref = pose_multiply_ref(exp_map_SO3xR3_ref(pose_adjustment[indices, :]),
                            pose_noise[indices])
    assert out.shape == (n_indices, 3, 4)
    assert jnp.allclose(out, ref, atol=1e-5, rtol=1e-5), \
        float(jnp.max(jnp.abs(out - ref)))

    # --- mode = SE3, with noise --------------------------------------------
    out_se3 = jax.block_until_ready(
        camera_optimizer_forward(indices, pose_adjustment, pose_noise,
                                 mode="SE3"))
    ref_se3 = pose_multiply_ref(exp_map_SE3_ref(pose_adjustment[indices, :]),
                                pose_noise[indices])
    assert jnp.allclose(out_se3, ref_se3, atol=1e-5, rtol=1e-5), \
        float(jnp.max(jnp.abs(out_se3 - ref_se3)))

    # --- mode = SO3xR3, no noise -------------------------------------------
    out_nn = jax.block_until_ready(
        camera_optimizer_forward(indices, pose_adjustment, None,
                                 mode="SO3xR3"))
    ref_nn = exp_map_SO3xR3_ref(pose_adjustment[indices, :])
    assert jnp.allclose(out_nn, ref_nn, atol=1e-5, rtol=1e-5), \
        float(jnp.max(jnp.abs(out_nn - ref_nn)))

    # --- mode = off ----------------------------------------------------------
    out_off = camera_optimizer_forward(indices, pose_adjustment, pose_noise,
                                       mode="off")
    assert out_off.shape == (n_indices, 3, 4)

    print("KERNEL_OK")
</pallas_src>

<mosaic_0001>
module attributes {stable_mosaic.version = 11 : i64} {
  func.func @_camera_opt_kernel(%arg0: i32, %arg1: memref<6x512xf32, #tpu.memory_space<vmem>>, %arg2: memref<12x512xf32, #tpu.memory_space<vmem>>, %arg3: memref<12x512xf32, #tpu.memory_space<vmem>>) attributes {dimension_semantics = [#tpu.dimension_semantics<parallel>], iteration_bounds = array<i64: 2>, scalar_prefetch = 0 : i64, scratch_operands = 0 : i64, tpu.core_type = #tpu.core_type<tc>, window_params = [{transform_indices = @transform_0, window_bounds = array<i64: 6, 512>}, {transform_indices = @transform_1, window_bounds = array<i64: 12, 512>}, {transform_indices = @transform_2, window_bounds = array<i64: 12, 512>}]} {
    %c0 = arith.constant 0 : index
    %c0_0 = arith.constant 0 : index
    %0 = vector.load %arg1[%c0, %c0_0] : memref<6x512xf32, #tpu.memory_space<vmem>>, vector<1x128xf32>
    %c1 = arith.constant 1 : index
    %c0_1 = arith.constant 0 : index
    %1 = vector.load %arg1[%c1, %c0_1] : memref<6x512xf32, #tpu.memory_space<vmem>>, vector<1x128xf32>
    %c2 = arith.constant 2 : index
    %c0_2 = arith.constant 0 : index
    %2 = vector.load %arg1[%c2, %c0_2] : memref<6x512xf32, #tpu.memory_space<vmem>>, vector<1x128xf32>
    %c3 = arith.constant 3 : index
    %c0_3 = arith.constant 0 : index
    %3 = vector.load %arg1[%c3, %c0_3] : memref<6x512xf32, #tpu.memory_space<vmem>>, vector<1x128xf32>
    %c4 = arith.constant 4 : index
    %c0_4 = arith.constant 0 : index
    %4 = vector.load %arg1[%c4, %c0_4] : memref<6x512xf32, #tpu.memory_space<vmem>>, vector<1x128xf32>
    %c5 = arith.constant 5 : index
    %c0_5 = arith.constant 0 : index
    %5 = vector.load %arg1[%c5, %c0_5] : memref<6x512xf32, #tpu.memory_space<vmem>>, vector<1x128xf32>
    %6 = arith.mulf %3, %3 : vector<1x128xf32>
    %7 = arith.mulf %4, %4 : vector<1x128xf32>
    %8 = arith.addf %6, %7 : vector<1x128xf32>
    %9 = arith.mulf %5, %5 : vector<1x128xf32>
    %10 = arith.addf %8, %9 : vector<1x128xf32>
    %11 = math.sqrt %10 : vector<1x128xf32>
    %cst = arith.constant 0.00999999977 : f32
    %12 = vector.broadcast %cst : f32 to vector<1x128xf32>
    %13 = arith.cmpf olt, %11, %12 : vector<1x128xf32>
    %cst_6 = arith.constant 1.000000e+00 : f32
    %14 = vector.broadcast %cst_6 : f32 to vector<1x128xf32>
    %15 = arith.select %13, %14, %11 : vector<1x128xi1>, vector<1x128xf32>
    %16 = arith.select %13, %14, %10 : vector<1x128xi1>, vector<1x128xf32>
    %17 = math.sin %11 : vector<1x128xf32>
    %cst_7 = arith.constant 4.000000e+00 : f32
    %18 = vector.broadcast %cst_7 : f32 to vector<1x128xf32>
    %19 = arith.addf %18, %10 : vector<1x128xf32>
    %cst_8 = arith.constant 8.000000e+00 : f32
    %20 = vector.broadcast %cst_8 : f32 to vector<1x128xf32>
    %21 = arith.divf %20, %19 : vector<1x128xf32>
    %cst_9 = arith.constant 1.000000e+00 : f32
    %22 = vector.broadcast %cst_9 : f32 to vector<1x128xf32>
    %23 = arith.subf %21, %22 : vector<1x128xf32>
    %24 = math.cos %11 : vector<1x128xf32>
    %25 = arith.select %13, %23, %24 : vector<1x128xi1>, vector<1x128xf32>
    %cst_10 = arith.constant 5.000000e-01 : f32
    %26 = vector.broadcast %cst_10 : f32 to vector<1x128xf32>
    %27 = arith.mulf %26, %25 : vector<1x128xf32>
    %cst_11 = arith.constant 5.000000e-01 : f32
    %28 = vector.broadcast %cst_11 : f32 to vector<1x128xf32>
    %29 = arith.addf %27, %28 : vector<1x128xf32>
    %30 = arith.divf %17, %15 : vector<1x128xf32>
    %31 = arith.select %13, %29, %30 : vector<1x128xi1>, vector<1x128xf32>
    %cst_12 = arith.constant 5.000000e-01 : f32
    %32 = vector.broadcast %cst_12 : f32 to vector<1x128xf32>
    %33 = arith.mulf %32, %31 : vector<1x128xf32>
    %cst_13 = arith.constant 1.000000e+00 : f32
    %34 = vector.broadcast %cst_13 : f32 to vector<1x128xf32>
    %35 = arith.subf %34, %25 : vector<1x128xf32>
    %36 = arith.divf %35, %16 : vector<1x128xf32>
    %37 = arith.select %13, %33, %36 : vector<1x128xi1>, vector<1x128xf32>
    %38 = arith.mulf %37, %3 : vector<1x128xf32>
    %39 = arith.mulf %37, %4 : vector<1x128xf32>
    %40 = arith.mulf %37, %5 : vector<1x128xf32>
    %41 = arith.mulf %31, %3 : vector<1x128xf32>
    %42 = arith.mulf %31, %4 : vector<1x128xf32>
    %43 = arith.mulf %31, %5 : vector<1x128xf32>
    %44 = arith.mulf %38, %3 : vector<1x128xf32>
    %45 = arith.addf %44, %25 : vector<1x128xf32>
    %46 = arith.mulf %38, %4 : vector<1x128xf32>
    %47 = arith.subf %46, %43 : vector<1x128xf32>
    %48 = arith.mulf %38, %5 : vector<1x128xf32>
    %49 = arith.addf %48, %42 : vector<1x128xf32>
    %50 = arith.mulf %39, %3 : vector<1x128xf32>
    %51 = arith.addf %50, %43 : vector<1x128xf32>
    %52 = arith.mulf %39, %4 : vector<1x128xf32>
    %53 = arith.addf %52, %25 : vector<1x128xf32>
    %54 = arith.mulf %39, %5 : vector<1x128xf32>
    %55 = arith.subf %54, %41 : vector<1x128xf32>
    %56 = arith.mulf %40, %3 : vector<1x128xf32>
    %57 = arith.subf %56, %42 : vector<1x128xf32>
    %58 = arith.mulf %40, %4 : vector<1x128xf32>
    %59 = arith.addf %58, %41 : vector<1x128xf32>
    %60 = arith.mulf %40, %5 : vector<1x128xf32>
    %61 = arith.addf %60, %25 : vector<1x128xf32>
    %c0_14 = arith.constant 0 : index
    %c0_15 = arith.constant 0 : index
    %62 = vector.load %arg2[%c0_14, %c0_15] : memref<12x512xf32, #tpu.memory_space<vmem>>, vector<1x128xf32>
    %c1_16 = arith.constant 1 : index
    %c0_17 = arith.constant 0 : index
    %63 = vector.load %arg2[%c1_16, %c0_17] : memref<12x512xf32, #tpu.memory_space<vmem>>, vector<1x128xf32>
    %c2_18 = arith.constant 2 : index
    %c0_19 = arith.constant 0 : index
    %64 = vector.load %arg2[%c2_18, %c0_19] : memref<12x512xf32, #tpu.memory_space<vmem>>, vector<1x128xf32>
    %c3_20 = arith.constant 3 : index
    %c0_21 = arith.constant 0 : index
    %65 = vector.load %arg2[%c3_20, %c0_21] : memref<12x512xf32, #tpu.memory_space<vmem>>, vector<1x128xf32>
    %c4_22 = arith.constant 4 : index
    %c0_23 = arith.constant 0 : index
    %66 = vector.load %arg2[%c4_22, %c0_23] : memref<12x512xf32, #tpu.memory_space<vmem>>, vector<1x128xf32>
    %c5_24 = arith.constant 5 : index
    %c0_25 = arith.constant 0 : index
    %67 = vector.load %arg2[%c5_24, %c0_25] : memref<12x512xf32, #tpu.memory_space<vmem>>, vector<1x128xf32>
    %c6 = arith.constant 6 : index
    %c0_26 = arith.constant 0 : index
    %68 = vector.load %arg2[%c6, %c0_26] : memref<12x512xf32, #tpu.memory_space<vmem>>, vector<1x128xf32>
    %c7 = arith.constant 7 : index
    %c0_27 = arith.constant 0 : index
    %69 = vector.load %arg2[%c7, %c0_27] : memref<12x512xf32, #tpu.memory_space<vmem>>, vector<1x128xf32>
    %c8 = arith.constant 8 : index
    %c0_28 = arith.constant 0 : index
    %70 = vector.load %arg2[%c8, %c0_28] : memref<12x512xf32, #tpu.memory_space<vmem>>, vector<1x128xf32>
    %c9 = arith.constant 9 : index
    %c0_29 = arith.constant 0 : index
    %71 = vector.load %arg2[%c9, %c0_29] : memref<12x512xf32, #tpu.memory_space<vmem>>, vector<1x128xf32>
    %c10 = arith.constant 10 : index
    %c0_30 = arith.constant 0 : index
    %72 = vector.load %arg2[%c10, %c0_30] : memref<12x512xf32, #tpu.memory_space<vmem>>, vector<1x128xf32>
    %c11 = arith.constant 11 : index
    %c0_31 = arith.constant 0 : index
    %73 = vector.load %arg2[%c11, %c0_31] : memref<12x512xf32, #tpu.memory_space<vmem>>, vector<1x128xf32>
    %74 = arith.mulf %45, %62 : vector<1x128xf32>
    %75 = arith.mulf %47, %66 : vector<1x128xf32>
    %76 = arith.addf %74, %75 : vector<1x128xf32>
    %77 = arith.mulf %49, %70 : vector<1x128xf32>
    %78 = arith.addf %76, %77 : vector<1x128xf32>
    %79 = arith.mulf %45, %63 : vector<1x128xf32>
    %80 = arith.mulf %47, %67 : vector<1x128xf32>
    %81 = arith.addf %79, %80 : vector<1x128xf32>
    %82 = arith.mulf %49, %71 : vector<1x128xf32>
    %83 = arith.addf %81, %82 : vector<1x128xf32>
    %84 = arith.mulf %45, %64 : vector<1x128xf32>
    %85 = arith.mulf %47, %68 : vector<1x128xf32>
    %86 = arith.addf %84, %85 : vector<1x128xf32>
    %87 = arith.mulf %49, %72 : vector<1x128xf32>
    %88 = arith.addf %86, %87 : vector<1x128xf32>
    %89 = arith.mulf %45, %65 : vector<1x128xf32>
    %90 = arith.addf %0, %89 : vector<1x128xf32>
    %91 = arith.mulf %47, %69 : vector<1x128xf32>
    %92 = arith.addf %90, %91 : vector<1x128xf32>
    %93 = arith.mulf %49, %73 : vector<1x128xf32>
    %94 = arith.addf %92, %93 : vector<1x128xf32>
    %95 = arith.mulf %51, %62 : vector<1x128xf32>
    %96 = arith.mulf %53, %66 : vector<1x128xf32>
    %97 = arith.addf %95, %96 : vector<1x128xf32>
    %98 = arith.mulf %55, %70 : vector<1x128xf32>
    %99 = arith.addf %97, %98 : vector<1x128xf32>
    %100 = arith.mulf %51, %63 : vector<1x128xf32>
    %101 = arith.mulf %53, %67 : vector<1x128xf32>
    %102 = arith.addf %100, %101 : vector<1x128xf32>
    %103 = arith.mulf %55, %71 : vector<1x128xf32>
    %104 = arith.addf %102, %103 : vector<1x128xf32>
    %105 = arith.mulf %51, %64 : vector<1x128xf32>
    %106 = arith.mulf %53, %68 : vector<1x128xf32>
    %107 = arith.addf %105, %106 : vector<1x128xf32>
    %108 = arith.mulf %55, %72 : vector<1x128xf32>
    %109 = arith.addf %107, %108 : vector<1x128xf32>
    %110 = arith.mulf %51, %65 : vector<1x128xf32>
    %111 = arith.addf %1, %110 : vector<1x128xf32>
    %112 = arith.mulf %53, %69 : vector<1x128xf32>
    %113 = arith.addf %111, %112 : vector<1x128xf32>
    %114 = arith.mulf %55, %73 : vector<1x128xf32>
    %115 = arith.addf %113, %114 : vector<1x128xf32>
    %116 = arith.mulf %57, %62 : vector<1x128xf32>
    %117 = arith.mulf %59, %66 : vector<1x128xf32>
    %118 = arith.addf %116, %117 : vector<1x128xf32>
    %119 = arith.mulf %61, %70 : vector<1x128xf32>
    %120 = arith.addf %118, %119 : vector<1x128xf32>
    %121 = arith.mulf %57, %63 : vector<1x128xf32>
    %122 = arith.mulf %59, %67 : vector<1x128xf32>
    %123 = arith.addf %121, %122 : vector<1x128xf32>
    %124 = arith.mulf %61, %71 : vector<1x128xf32>
    %125 = arith.addf %123, %124 : vector<1x128xf32>
    %126 = arith.mulf %57, %64 : vector<1x128xf32>
    %127 = arith.mulf %59, %68 : vector<1x128xf32>
    %128 = arith.addf %126, %127 : vector<1x128xf32>
    %129 = arith.mulf %61, %72 : vector<1x128xf32>
    %130 = arith.addf %128, %129 : vector<1x128xf32>
    %131 = arith.mulf %57, %65 : vector<1x128xf32>
    %132 = arith.addf %2, %131 : vector<1x128xf32>
    %133 = arith.mulf %59, %69 : vector<1x128xf32>
    %134 = arith.addf %132, %133 : vector<1x128xf32>
    %135 = arith.mulf %61, %73 : vector<1x128xf32>
    %136 = arith.addf %134, %135 : vector<1x128xf32>
    %137 = tpu.concatenate %78, %83, %88, %94, %99, %104, %109, %115, %120, %125, %130, %136 in 0 : vector<1x128xf32>, vector<1x128xf32>, vector<1x128xf32>, vector<1x128xf32>, vector<1x128xf32>, vector<1x128xf32>, vector<1x128xf32>, vector<1x128xf32>, vector<1x128xf32>, vector<1x128xf32>, vector<1x128xf32>, vector<1x128xf32> -> vector<12x128xf32>
    %c0_32 = arith.constant 0 : index
    %c0_33 = arith.constant 0 : index
    %138 = vector.load %arg3[%c0_32, %c0_33] : memref<12x512xf32, #tpu.memory_space<vmem>>, vector<12x128xf32>
    tpu.vector_store %arg3[%c0_32, %c0_33], %137 {strides = array<i32>} : memref<12x512xf32, #tpu.memory_space<vmem>>, vector<12x128xf32>,
    %c0_34 = arith.constant 0 : index
    %c128 = arith.constant 128 : index
    %139 = vector.load %arg1[%c0_34, %c128] : memref<6x512xf32, #tpu.memory_space<vmem>>, vector<1x128xf32>
    %c1_35 = arith.constant 1 : index
    %c128_36 = arith.constant 128 : index
    %140 = vector.load %arg1[%c1_35, %c128_36] : memref<6x512xf32, #tpu.memory_space<vmem>>, vector<1x128xf32>
    %c2_37 = arith.constant 2 : index
    %c128_38 = arith.constant 128 : index
    %141 = vector.load %arg1[%c2_37, %c128_38] : memref<6x512xf32, #tpu.memory_space<vmem>>, vector<1x128xf32>
    %c3_39 = arith.constant 3 : index
    %c128_40 = arith.constant 128 : index
    %142 = vector.load %arg1[%c3_39, %c128_40] : memref<6x512xf32, #tpu.memory_space<vmem>>, vector<1x128xf32>
    %c4_41 = arith.constant 4 : index
    %c128_42 = arith.constant 128 : index
    %143 = vector.load %arg1[%c4_41, %c128_42] : memref<6x512xf32, #tpu.memory_space<vmem>>, vector<1x128xf32>
    %c5_43 = arith.constant 5 : index
    %c128_44 = arith.constant 128 : index
    %144 = vector.load %arg1[%c5_43, %c128_44] : memref<6x512xf32, #tpu.memory_space<vmem>>, vector<1x128xf32>
    %145 = arith.mulf %142, %142 : vector<1x128xf32>
    %146 = arith.mulf %143, %143 : vector<1x128xf32>
    %147 = arith.addf %145, %146 : vector<1x128xf32>
    %148 = arith.mulf %144, %144 : vector<1x128xf32>
    %149 = arith.addf %147, %148 : vector<1x128xf32>
    %150 = math.sqrt %149 : vector<1x128xf32>
    %cst_45 = arith.constant 0.00999999977 : f32
    %151 = vector.broadcast %cst_45 : f32 to vector<1x128xf32>
    %152 = arith.cmpf olt, %150, %151 : vector<1x128xf32>
    %cst_46 = arith.constant 1.000000e+00 : f32
    %153 = vector.broadcast %cst_46 : f32 to vector<1x128xf32>
    %154 = arith.select %152, %153, %150 : vector<1x128xi1>, vector<1x128xf32>
    %155 = arith.select %152, %153, %149 : vector<1x128xi1>, vector<1x128xf32>
    %156 = math.sin %150 : vector<1x128xf32>
    %cst_47 = arith.constant 4.000000e+00 : f32
    %157 = vector.broadcast %cst_47 : f32 to vector<1x128xf32>
    %158 = arith.addf %157, %149 : vector<1x128xf32>
    %cst_48 = arith.constant 8.000000e+00 : f32
    %159 = vector.broadcast %cst_48 : f32 to vector<1x128xf32>
    %160 = arith.divf %159, %158 : vector<1x128xf32>
    %cst_49 = arith.constant 1.000000e+00 : f32
    %161 = vector.broadcast %cst_49 : f32 to vector<1x128xf32>
    %162 = arith.subf %160, %161 : vector<1x128xf32>
    %163 = math.cos %150 : vector<1x128xf32>
    %164 = arith.select %152, %162, %163 : vector<1x128xi1>, vector<1x128xf32>
    %cst_50 = arith.constant 5.000000e-01 : f32
    %165 = vector.broadcast %cst_50 : f32 to vector<1x128xf32>
    %166 = arith.mulf %165, %164 : vector<1x128xf32>
    %cst_51 = arith.constant 5.000000e-01 : f32
    %167 = vector.broadcast %cst_51 : f32 to vector<1x128xf32>
    %168 = arith.addf %166, %167 : vector<1x128xf32>
    %169 = arith.divf %156, %154 : vector<1x128xf32>
    %170 = arith.select %152, %168, %169 : vector<1x128xi1>, vector<1x128xf32>
    %cst_52 = arith.constant 5.000000e-01 : f32
    %171 = vector.broadcast %cst_52 : f32 to vector<1x128xf32>
    %172 = arith.mulf %171, %170 : vector<1x128xf32>
    %cst_53 = arith.constant 1.000000e+00 : f32
    %173 = vector.broadcast %cst_53 : f32 to vector<1x128xf32>
    %174 = arith.subf %173, %164 : vector<1x128xf32>
    %175 = arith.divf %174, %155 : vector<1x128xf32>
    %176 = arith.select %152, %172, %175 : vector<1x128xi1>, vector<1x128xf32>
    %177 = arith.mulf %176, %142 : vector<1x128xf32>
    %178 = arith.mulf %176, %143 : vector<1x128xf32>
    %179 = arith.mulf %176, %144 : vector<1x128xf32>
    %180 = arith.mulf %170, %142 : vector<1x128xf32>
    %181 = arith.mulf %170, %143 : vector<1x128xf32>
    %182 = arith.mulf %170, %144 : vector<1x128xf32>
    %183 = arith.mulf %177, %142 : vector<1x128xf32>
    %184 = arith.addf %183, %164 : vector<1x128xf32>
    %185 = arith.mulf %177, %143 : vector<1x128xf32>
    %186 = arith.subf %185, %182 : vector<1x128xf32>
    %187 = arith.mulf %177, %144 : vector<1x128xf32>
    %188 = arith.addf %187, %181 : vector<1x128xf32>
    %189 = arith.mulf %178, %142 : vector<1x128xf32>
    %190 = arith.addf %189, %182 : vector<1x128xf32>
    %191 = arith.mulf %178, %143 : vector<1x128xf32>
    %192 = arith.addf %191, %164 : vector<1x128xf32>
    %193 = arith.mulf %178, %144 : vector<1x128xf32>
    %194 = arith.subf %193, %180 : vector<1x128xf32>
    %195 = arith.mulf %179, %142 : vector<1x128xf32>
    %196 = arith.subf %195, %181 : vector<1x128xf32>
    %197 = arith.mulf %179, %143 : vector<1x128xf32>
    %198 = arith.addf %197, %180 : vector<1x128xf32>
    %199 = arith.mulf %179, %144 : vector<1x128xf32>
    %200 = arith.addf %199, %164 : vector<1x128xf32>
    %c0_54 = arith.constant 0 : index
    %c128_55 = arith.constant 128 : index
    %201 = vector.load %arg2[%c0_54, %c128_55] : memref<12x512xf32, #tpu.memory_space<vmem>>, vector<1x128xf32>
    %c1_56 = arith.constant 1 : index
    %c128_57 = arith.constant 128 : index
    %202 = vector.load %arg2[%c1_56, %c128_57] : memref<12x512xf32, #tpu.memory_space<vmem>>, vector<1x128xf32>
    %c2_58 = arith.constant 2 : index
    %c128_59 = arith.constant 128 : index
    %203 = vector.load %arg2[%c2_58, %c128_59] : memref<12x512xf32, #tpu.memory_space<vmem>>, vector<1x128xf32>
    %c3_60 = arith.constant 3 : index
    %c128_61 = arith.constant 128 : index
    %204 = vector.load %arg2[%c3_60, %c128_61] : memref<12x512xf32, #tpu.memory_space<vmem>>, vector<1x128xf32>
    %c4_62 = arith.constant 4 : index
    %c128_63 = arith.constant 128 : index
    %205 = vector.load %arg2[%c4_62, %c128_63] : memref<12x512xf32, #tpu.memory_space<vmem>>, vector<1x128xf32>
    %c5_64 = arith.constant 5 : index
    %c128_65 = arith.constant 128 : index
    %206 = vector.load %arg2[%c5_64, %c128_65] : memref<12x512xf32, #tpu.memory_space<vmem>>, vector<1x128xf32>
    %c6_66 = arith.constant 6 : index
    %c128_67 = arith.constant 128 : index
    %207 = vector.load %arg2[%c6_66, %c128_67] : memref<12x512xf32, #tpu.memory_space<vmem>>, vector<1x128xf32>
    %c7_68 = arith.constant 7 : index
    %c128_69 = arith.constant 128 : index
    %208 = vector.load %arg2[%c7_68, %c128_69] : memref<12x512xf32, #tpu.memory_space<vmem>>, vector<1x128xf32>
    %c8_70 = arith.constant 8 : index
    %c128_71 = arith.constant 128 : index
    %209 = vector.load %arg2[%c8_70, %c128_71] : memref<12x512xf32, #tpu.memory_space<vmem>>, vector<1x128xf32>
    %c9_72 = arith.constant 9 : index
    %c128_73 = arith.constant 128 : index
    %210 = vector.load %arg2[%c9_72, %c128_73] : memref<12x512xf32, #tpu.memory_space<vmem>>, vector<1x128xf32>
    %c10_74 = arith.constant 10 : index
    %c128_75 = arith.constant 128 : index
    %211 = vector.load %arg2[%c10_74, %c128_75] : memref<12x512xf32, #tpu.memory_space<vmem>>, vector<1x128xf32>
    %c11_76 = arith.constant 11 : index
    %c128_77 = arith.constant 128 : index
    %212 = vector.load %arg2[%c11_76, %c128_77] : memref<12x512xf32, #tpu.memory_space<vmem>>, vector<1x128xf32>
    %213 = arith.mulf %184, %201 : vector<1x128xf32>
    %214 = arith.mulf %186, %205 : vector<1x128xf32>
    %215 = arith.addf %213, %214 : vector<1x128xf32>
    %216 = arith.mulf %188, %209 : vector<1x128xf32>
    %217 = arith.addf %215, %216 : vector<1x128xf32>
    %218 = arith.mulf %184, %202 : vector<1x128xf32>
    %219 = arith.mulf %186, %206 : vector<1x128xf32>
    %220 = arith.addf %218, %219 : vector<1x128xf32>
    %221 = arith.mulf %188, %210 : vector<1x128xf32>
    %222 = arith.addf %220, %221 : vector<1x128xf32>
    %223 = arith.mulf %184, %203 : vector<1x128xf32>
    %224 = arith.mulf %186, %207 : vector<1x128xf32>
    %225 = arith.addf %223, %224 : vector<1x128xf32>
    %226 = arith.mulf %188, %211 : vector<1x128xf32>
    %227 = arith.addf %225, %226 : vector<1x128xf32>
    %228 = arith.mulf %184, %204 : vector<1x128xf32>
    %229 = arith.addf %139, %228 : vector<1x128xf32>
    %230 = arith.mulf %186, %208 : vector<1x128xf32>
    %231 = arith.addf %229, %230 : vector<1x128xf32>
    %232 = arith.mulf %188, %212 : vector<1x128xf32>
    %233 = arith.addf %231, %232 : vector<1x128xf32>
    %234 = arith.mulf %190, %201 : vector<1x128xf32>
    %235 = arith.mulf %192, %205 : vector<1x128xf32>
    %236 = arith.addf %234, %235 : vector<1x128xf32>
    %237 = arith.mulf %194, %209 : vector<1x128xf32>
    %238 = arith.addf %236, %237 : vector<1x128xf32>
    %239 = arith.mulf %190, %202 : vector<1x128xf32>
    %240 = arith.mulf %192, %206 : vector<1x128xf32>
    %241 = arith.addf %239, %240 : vector<1x128xf32>
    %242 = arith.mulf %194, %210 : vector<1x128xf32>
    %243 = arith.addf %241, %242 : vector<1x128xf32>
    %244 = arith.mulf %190, %203 : vector<1x128xf32>
    %245 = arith.mulf %192, %207 : vector<1x128xf32>
    %246 = arith.addf %244, %245 : vector<1x128xf32>
    %247 = arith.mulf %194, %211 : vector<1x128xf32>
    %248 = arith.addf %246, %247 : vector<1x128xf32>
    %249 = arith.mulf %190, %204 : vector<1x128xf32>
    %250 = arith.addf %140, %249 : vector<1x128xf32>
    %251 = arith.mulf %192, %208 : vector<1x128xf32>
    %252 = arith.addf %250, %251 : vector<1x128xf32>
    %253 = arith.mulf %194, %212 : vector<1x128xf32>
    %254 = arith.addf %252, %253 : vector<1x128xf32>
    %255 = arith.mulf %196, %201 : vector<1x128xf32>
    %256 = arith.mulf %198, %205 : vector<1x128xf32>
    %257 = arith.addf %255, %256 : vector<1x128xf32>
    %258 = arith.mulf %200, %209 : vector<1x128xf32>
    %259 = arith.addf %257, %258 : vector<1x128xf32>
    %260 = arith.mulf %196, %202 : vector<1x128xf32>
    %261 = arith.mulf %198, %206 : vector<1x128xf32>
    %262 = arith.addf %260, %261 : vector<1x128xf32>
    %263 = arith.mulf %200, %210 : vector<1x128xf32>
    %264 = arith.addf %262, %263 : vector<1x128xf32>
    %265 = arith.mulf %196, %203 : vector<1x128xf32>
    %266 = arith.mulf %198, %207 : vector<1x128xf32>
    %267 = arith.addf %265, %266 : vector<1x128xf32>
    %268 = arith.mulf %200, %211 : vector<1x128xf32>
    %269 = arith.addf %267, %268 : vector<1x128xf32>
    %270 = arith.mulf %196, %204 : vector<1x128xf32>
    %271 = arith.addf %141, %270 : vector<1x128xf32>
    %272 = arith.mulf %198, %208 : vector<1x128xf32>
    %273 = arith.addf %271, %272 : vector<1x128xf32>
    %274 = arith.mulf %200, %212 : vector<1x128xf32>
    %275 = arith.addf %273, %274 : vector<1x128xf32>
    %276 = tpu.concatenate %217, %222, %227, %233, %238, %243, %248, %254, %259, %264, %269, %275 in 0 : vector<1x128xf32>, vector<1x128xf32>, vector<1x128xf32>, vector<1x128xf32>, vector<1x128xf32>, vector<1x128xf32>, vector<1x128xf32>, vector<1x128xf32>, vector<1x128xf32>, vector<1x128xf32>, vector<1x128xf32>, vector<1x128xf32> -> vector<12x128xf32>
    %c0_78 = arith.constant 0 : index
    %c128_79 = arith.constant 128 : index
    %277 = vector.load %arg3[%c0_78, %c128_79] : memref<12x512xf32, #tpu.memory_space<vmem>>, vector<12x128xf32>
    tpu.vector_store %arg3[%c0_78, %c128_79], %276 {strides = array<i32>} : memref<12x512xf32, #tpu.memory_space<vmem>>, vector<12x128xf32>,
    %c0_80 = arith.constant 0 : index
    %c256 = arith.constant 256 : index
    %278 = vector.load %arg1[%c0_80, %c256] : memref<6x512xf32, #tpu.memory_space<vmem>>, vector<1x128xf32>
    %c1_81 = arith.constant 1 : index
    %c256_82 = arith.constant 256 : index
    %279 = vector.load %arg1[%c1_81, %c256_82] : memref<6x512xf32, #tpu.memory_space<vmem>>, vector<1x128xf32>
    %c2_83 = arith.constant 2 : index
    %c256_84 = arith.constant 256 : index
    %280 = vector.load %arg1[%c2_83, %c256_84] : memref<6x512xf32, #tpu.memory_space<vmem>>, vector<1x128xf32>
    %c3_85 = arith.constant 3 : index
    %c256_86 = arith.constant 256 : index
    %281 = vector.load %arg1[%c3_85, %c256_86] : memref<6x512xf32, #tpu.memory_space<vmem>>, vector<1x128xf32>
    %c4_87 = arith.constant 4 : index
    %c256_88 = arith.constant 256 : index
    %282 = vector.load %arg1[%c4_87, %c256_88] : memref<6x512xf32, #tpu.memory_space<vmem>>, vector<1x128xf32>
    %c5_89 = arith.constant 5 : index
    %c256_90 = arith.constant 256 : index
    %283 = vector.load %arg1[%c5_89, %c256_90] : memref<6x512xf32, #tpu.memory_space<vmem>>, vector<1x128xf32>
    %284 = arith.mulf %281, %281 : vector<1x128xf32>
    %285 = arith.mulf %282, %282 : vector<1x128xf32>
    %286 = arith.addf %284, %285 : vector<1x128xf32>
    %287 = arith.mulf %283, %283 : vector<1x128xf32>
    %288 = arith.addf %286, %287 : vector<1x128xf32>
    %289 = math.sqrt %288 : vector<1x128xf32>
    %cst_91 = arith.constant 0.00999999977 : f32
    %290 = vector.broadcast %cst_91 : f32 to vector<1x128xf32>
    %291 = arith.cmpf olt, %289, %290 : vector<1x128xf32>
    %cst_92 = arith.constant 1.000000e+00 : f32
    %292 = vector.broadcast %cst_92 : f32 to vector<1x128xf32>
    %293 = arith.select %291, %292, %289 : vector<1x128xi1>, vector<1x128xf32>
    %294 = arith.select %291, %292, %288 : vector<1x128xi1>, vector<1x128xf32>
    %295 = math.sin %289 : vector<1x128xf32>
    %cst_93 = arith.constant 4.000000e+00 : f32
    %296 = vector.broadcast %cst_93 : f32 to vector<1x128xf32>
    %297 = arith.addf %296, %288 : vector<1x128xf32>
    %cst_94 = arith.constant 8.000000e+00 : f32
    %298 = vector.broadcast %cst_94 : f32 to vector<1x128xf32>
    %299 = arith.divf %298, %297 : vector<1x128xf32>
    %cst_95 = arith.constant 1.000000e+00 : f32
    %300 = vector.broadcast %cst_95 : f32 to vector<1x128xf32>
    %301 = arith.subf %299, %300 : vector<1x128xf32>
    %302 = math.cos %289 : vector<1x128xf32>
    %303 = arith.select %291, %301, %302 : vector<1x128xi1>, vector<1x128xf32>
    %cst_96 = arith.constant 5.000000e-01 : f32
    %304 = vector.broadcast %cst_96 : f32 to vector<1x128xf32>
    %305 = arith.mulf %304, %303 : vector<1x128xf32>
    %cst_97 = arith.constant 5.000000e-01 : f32
    %306 = vector.broadcast %cst_97 : f32 to vector<1x128xf32>
    %307 = arith.addf %305, %306 : vector<1x128xf32>
    %308 = arith.divf %295, %293 : vector<1x128xf32>
    %309 = arith.select %291, %307, %308 : vector<1x128xi1>, vector<1x128xf32>
    %cst_98 = arith.constant 5.000000e-01 : f32
    %310 = vector.broadcast %cst_98 : f32 to vector<1x128xf32>
    %311 = arith.mulf %310, %309 : vector<1x128xf32>
    %cst_99 = arith.constant 1.000000e+00 : f32
    %312 = vector.broadcast %cst_99 : f32 to vector<1x128xf32>
    %313 = arith.subf %312, %303 : vector<1x128xf32>
    %314 = arith.divf %313, %294 : vector<1x128xf32>
    %315 = arith.select %291, %311, %314 : vector<1x128xi1>, vector<1x128xf32>
    %316 = arith.mulf %315, %281 : vector<1x128xf32>
    %317 = arith.mulf %315, %282 : vector<1x128xf32>
    %318 = arith.mulf %315, %283 : vector<1x128xf32>
    %319 = arith.mulf %309, %281 : vector<1x128xf32>
    %320 = arith.mulf %309, %282 : vector<1x128xf32>
    %321 = arith.mulf %309, %283 : vector<1x128xf32>
    %322 = arith.mulf %316, %281 : vector<1x128xf32>
    %323 = arith.addf %322, %303 : vector<1x128xf32>
    %324 = arith.mulf %316, %282 : vector<1x128xf32>
    %325 = arith.subf %324, %321 : vector<1x128xf32>
    %326 = arith.mulf %316, %283 : vector<1x128xf32>
    %327 = arith.addf %326, %320 : vector<1x128xf32>
    %328 = arith.mulf %317, %281 : vector<1x128xf32>
    %329 = arith.addf %328, %321 : vector<1x128xf32>
    %330 = arith.mulf %317, %282 : vector<1x128xf32>
    %331 = arith.addf %330, %303 : vector<1x128xf32>
    %332 = arith.mulf %317, %283 : vector<1x128xf32>
    %333 = arith.subf %332, %319 : vector<1x128xf32>
    %334 = arith.mulf %318, %281 : vector<1x128xf32>
    %335 = arith.subf %334, %320 : vector<1x128xf32>
    %336 = arith.mulf %318, %282 : vector<1x128xf32>
    %337 = arith.addf %336, %319 : vector<1x128xf32>
    %338 = arith.mulf %318, %283 : vector<1x128xf32>
    %339 = arith.addf %338, %303 : vector<1x128xf32>
    %c0_100 = arith.constant 0 : index
    %c256_101 = arith.constant 256 : index
    %340 = vector.load %arg2[%c0_100, %c256_101] : memref<12x512xf32, #tpu.memory_space<vmem>>, vector<1x128xf32>
    %c1_102 = arith.constant 1 : index
    %c256_103 = arith.constant 256 : index
    %341 = vector.load %arg2[%c1_102, %c256_103] : memref<12x512xf32, #tpu.memory_space<vmem>>, vector<1x128xf32>
    %c2_104 = arith.constant 2 : index
    %c256_105 = arith.constant 256 : index
    %342 = vector.load %arg2[%c2_104, %c256_105] : memref<12x512xf32, #tpu.memory_space<vmem>>, vector<1x128xf32>
    %c3_106 = arith.constant 3 : index
    %c256_107 = arith.constant 256 : index
    %343 = vector.load %arg2[%c3_106, %c256_107] : memref<12x512xf32, #tpu.memory_space<vmem>>, vector<1x128xf32>
    %c4_108 = arith.constant 4 : index
    %c256_109 = arith.constant 256 : index
    %344 = vector.load %arg2[%c4_108, %c256_109] : memref<12x512xf32, #tpu.memory_space<vmem>>, vector<1x128xf32>
    %c5_110 = arith.constant 5 : index
    %c256_111 = arith.constant 256 : index
    %345 = vector.load %arg2[%c5_110, %c256_111] : memref<12x512xf32, #tpu.memory_space<vmem>>, vector<1x128xf32>
    %c6_112 = arith.constant 6 : index
    %c256_113 = arith.constant 256 : index
    %346 = vector.load %arg2[%c6_112, %c256_113] : memref<12x512xf32, #tpu.memory_space<vmem>>, vector<1x128xf32>
    %c7_114 = arith.constant 7 : index
    %c256_115 = arith.constant 256 : index
    %347 = vector.load %arg2[%c7_114, %c256_115] : memref<12x512xf32, #tpu.memory_space<vmem>>, vector<1x128xf32>
    %c8_116 = arith.constant 8 : index
    %c256_117 = arith.constant 256 : index
    %348 = vector.load %arg2[%c8_116, %c256_117] : memref<12x512xf32, #tpu.memory_space<vmem>>, vector<1x128xf32>
    %c9_118 = arith.constant 9 : index
    %c256_119 = arith.constant 256 : index
    %349 = vector.load %arg2[%c9_118, %c256_119] : memref<12x512xf32, #tpu.memory_space<vmem>>, vector<1x128xf32>
    %c10_120 = arith.constant 10 : index
    %c256_121 = arith.constant 256 : index
    %350 = vector.load %arg2[%c10_120, %c256_121] : memref<12x512xf32, #tpu.memory_space<vmem>>, vector<1x128xf32>
    %c11_122 = arith.constant 11 : index
    %c256_123 = arith.constant 256 : index
    %351 = vector.load %arg2[%c11_122, %c256_123] : memref<12x512xf32, #tpu.memory_space<vmem>>, vector<1x128xf32>
    %352 = arith.mulf %323, %340 : vector<1x128xf32>
    %353 = arith.mulf %325, %344 : vector<1x128xf32>
    %354 = arith.addf %352, %353 : vector<1x128xf32>
    %355 = arith.mulf %327, %348 : vector<1x128xf32>
    %356 = arith.addf %354, %355 : vector<1x128xf32>
    %357 = arith.mulf %323, %341 : vector<1x128xf32>
    %358 = arith.mulf %325, %345 : vector<1x128xf32>
    %359 = arith.addf %357, %358 : vector<1x128xf32>
    %360 = arith.mulf %327, %349 : vector<1x128xf32>
    %361 = arith.addf %359, %360 : vector<1x128xf32>
    %362 = arith.mulf %323, %342 : vector<1x128xf32>
    %363 = arith.mulf %325, %346 : vector<1x128xf32>
    %364 = arith.addf %362, %363 : vector<1x128xf32>
    %365 = arith.mulf %327, %350 : vector<1x128xf32>
    %366 = arith.addf %364, %365 : vector<1x128xf32>
    %367 = arith.mulf %323, %343 : vector<1x128xf32>
    %368 = arith.addf %278, %367 : vector<1x128xf32>
    %369 = arith.mulf %325, %347 : vector<1x128xf32>
    %370 = arith.addf %368, %369 : vector<1x128xf32>
    %371 = arith.mulf %327, %351 : vector<1x128xf32>
    %372 = arith.addf %370, %371 : vector<1x128xf32>
    %373 = arith.mulf %329, %340 : vector<1x128xf32>
    %374 = arith.mulf %331, %344 : vector<1x128xf32>
    %375 = arith.addf %373, %374 : vector<1x128xf32>
    %376 = arith.mulf %333, %348 : vector<1x128xf32>
    %377 = arith.addf %375, %376 : vector<1x128xf32>
    %378 = arith.mulf %329, %341 : vector<1x128xf32>
    %379 = arith.mulf %331, %345 : vector<1x128xf32>
    %380 = arith.addf %378, %379 : vector<1x128xf32>
    %381 = arith.mulf %333, %349 : vector<1x128xf32>
    %382 = arith.addf %380, %381 : vector<1x128xf32>
    %383 = arith.mulf %329, %342 : vector<1x128xf32>
    %384 = arith.mulf %331, %346 : vector<1x128xf32>
    %385 = arith.addf %383, %384 : vector<1x128xf32>
    %386 = arith.mulf %333, %350 : vector<1x128xf32>
    %387 = arith.addf %385, %386 : vector<1x128xf32>
    %388 = arith.mulf %329, %343 : vector<1x128xf32>
    %389 = arith.addf %279, %388 : vector<1x128xf32>
    %390 = arith.mulf %331, %347 : vector<1x128xf32>
    %391 = arith.addf %389, %390 : vector<1x128xf32>
    %392 = arith.mulf %333, %351 : vector<1x128xf32>
    %393 = arith.addf %391, %392 : vector<1x128xf32>
    %394 = arith.mulf %335, %340 : vector<1x128xf32>
    %395 = arith.mulf %337, %344 : vector<1x128xf32>
    %396 = arith.addf %394, %395 : vector<1x128xf32>
    %397 = arith.mulf %339, %348 : vector<1x128xf32>
    %398 = arith.addf %396, %397 : vector<1x128xf32>
    %399 = arith.mulf %335, %341 : vector<1x128xf32>
    %400 = arith.mulf %337, %345 : vector<1x128xf32>
    %401 = arith.addf %399, %400 : vector<1x128xf32>
    %402 = arith.mulf %339, %349 : vector<1x128xf32>
    %403 = arith.addf %401, %402 : vector<1x128xf32>
    %404 = arith.mulf %335, %342 : vector<1x128xf32>
    %405 = arith.mulf %337, %346 : vector<1x128xf32>
    %406 = arith.addf %404, %405 : vector<1x128xf32>
    %407 = arith.mulf %339, %350 : vector<1x128xf32>
    %408 = arith.addf %406, %407 : vector<1x128xf32>
    %409 = arith.mulf %335, %343 : vector<1x128xf32>
    %410 = arith.addf %280, %409 : vector<1x128xf32>
    %411 = arith.mulf %337, %347 : vector<1x128xf32>
    %412 = arith.addf %410, %411 : vector<1x128xf32>
    %413 = arith.mulf %339, %351 : vector<1x128xf32>
    %414 = arith.addf %412, %413 : vector<1x128xf32>
    %415 = tpu.concatenate %356, %361, %366, %372, %377, %382, %387, %393, %398, %403, %408, %414 in 0 : vector<1x128xf32>, vector<1x128xf32>, vector<1x128xf32>, vector<1x128xf32>, vector<1x128xf32>, vector<1x128xf32>, vector<1x128xf32>, vector<1x128xf32>, vector<1x128xf32>, vector<1x128xf32>, vector<1x128xf32>, vector<1x128xf32> -> vector<12x128xf32>
    %c0_124 = arith.constant 0 : index
    %c256_125 = arith.constant 256 : index
    %416 = vector.load %arg3[%c0_124, %c256_125] : memref<12x512xf32, #tpu.memory_space<vmem>>, vector<12x128xf32>
    tpu.vector_store %arg3[%c0_124, %c256_125], %415 {strides = array<i32>} : memref<12x512xf32, #tpu.memory_space<vmem>>, vector<12x128xf32>,
    %c0_126 = arith.constant 0 : index
    %c384 = arith.constant 384 : index
    %417 = vector.load %arg1[%c0_126, %c384] : memref<6x512xf32, #tpu.memory_space<vmem>>, vector<1x128xf32>
    %c1_127 = arith.constant 1 : index
    %c384_128 = arith.constant 384 : index
    %418 = vector.load %arg1[%c1_127, %c384_128] : memref<6x512xf32, #tpu.memory_space<vmem>>, vector<1x128xf32>
    %c2_129 = arith.constant 2 : index
    %c384_130 = arith.constant 384 : index
    %419 = vector.load %arg1[%c2_129, %c384_130] : memref<6x512xf32, #tpu.memory_space<vmem>>, vector<1x128xf32>
    %c3_131 = arith.constant 3 : index
    %c384_132 = arith.constant 384 : index
    %420 = vector.load %arg1[%c3_131, %c384_132] : memref<6x512xf32, #tpu.memory_space<vmem>>, vector<1x128xf32>
    %c4_133 = arith.constant 4 : index
    %c384_134 = arith.constant 384 : index
    %421 = vector.load %arg1[%c4_133, %c384_134] : memref<6x512xf32, #tpu.memory_space<vmem>>, vector<1x128xf32>
    %c5_135 = arith.constant 5 : index
    %c384_136 = arith.constant 384 : index
    %422 = vector.load %arg1[%c5_135, %c384_136] : memref<6x512xf32, #tpu.memory_space<vmem>>, vector<1x128xf32>
    %423 = arith.mulf %420, %420 : vector<1x128xf32>
    %424 = arith.mulf %421, %421 : vector<1x128xf32>
    %425 = arith.addf %423, %424 : vector<1x128xf32>
    %426 = arith.mulf %422, %422 : vector<1x128xf32>
    %427 = arith.addf %425, %426 : vector<1x128xf32>
    %428 = math.sqrt %427 : vector<1x128xf32>
    %cst_137 = arith.constant 0.00999999977 : f32
    %429 = vector.broadcast %cst_137 : f32 to vector<1x128xf32>
    %430 = arith.cmpf olt, %428, %429 : vector<1x128xf32>
    %cst_138 = arith.constant 1.000000e+00 : f32
    %431 = vector.broadcast %cst_138 : f32 to vector<1x128xf32>
    %432 = arith.select %430, %431, %428 : vector<1x128xi1>, vector<1x128xf32>
    %433 = arith.select %430, %431, %427 : vector<1x128xi1>, vector<1x128xf32>
    %434 = math.sin %428 : vector<1x128xf32>
    %cst_139 = arith.constant 4.000000e+00 : f32
    %435 = vector.broadcast %cst_139 : f32 to vector<1x128xf32>
    %436 = arith.addf %435, %427 : vector<1x128xf32>
    %cst_140 = arith.constant 8.000000e+00 : f32
    %437 = vector.broadcast %cst_140 : f32 to vector<1x128xf32>
    %438 = arith.divf %437, %436 : vector<1x128xf32>
    %cst_141 = arith.constant 1.000000e+00 : f32
    %439 = vector.broadcast %cst_141 : f32 to vector<1x128xf32>
    %440 = arith.subf %438, %439 : vector<1x128xf32>
    %441 = math.cos %428 : vector<1x128xf32>
    %442 = arith.select %430, %440, %441 : vector<1x128xi1>, vector<1x128xf32>
    %cst_142 = arith.constant 5.000000e-01 : f32
    %443 = vector.broadcast %cst_142 : f32 to vector<1x128xf32>
    %444 = arith.mulf %443, %442 : vector<1x128xf32>
    %cst_143 = arith.constant 5.000000e-01 : f32
    %445 = vector.broadcast %cst_143 : f32 to vector<1x128xf32>
    %446 = arith.addf %444, %445 : vector<1x128xf32>
    %447 = arith.divf %434, %432 : vector<1x128xf32>
    %448 = arith.select %430, %446, %447 : vector<1x128xi1>, vector<1x128xf32>
    %cst_144 = arith.constant 5.000000e-01 : f32
    %449 = vector.broadcast %cst_144 : f32 to vector<1x128xf32>
    %450 = arith.mulf %449, %448 : vector<1x128xf32>
    %cst_145 = arith.constant 1.000000e+00 : f32
    %451 = vector.broadcast %cst_145 : f32 to vector<1x128xf32>
    %452 = arith.subf %451, %442 : vector<1x128xf32>
    %453 = arith.divf %452, %433 : vector<1x128xf32>
    %454 = arith.select %430, %450, %453 : vector<1x128xi1>, vector<1x128xf32>
    %455 = arith.mulf %454, %420 : vector<1x128xf32>
    %456 = arith.mulf %454, %421 : vector<1x128xf32>
    %457 = arith.mulf %454, %422 : vector<1x128xf32>
    %458 = arith.mulf %448, %420 : vector<1x128xf32>
    %459 = arith.mulf %448, %421 : vector<1x128xf32>
    %460 = arith.mulf %448, %422 : vector<1x128xf32>
    %461 = arith.mulf %455, %420 : vector<1x128xf32>
    %462 = arith.addf %461, %442 : vector<1x128xf32>
    %463 = arith.mulf %455, %421 : vector<1x128xf32>
    %464 = arith.subf %463, %460 : vector<1x128xf32>
    %465 = arith.mulf %455, %422 : vector<1x128xf32>
    %466 = arith.addf %465, %459 : vector<1x128xf32>
    %467 = arith.mulf %456, %420 : vector<1x128xf32>
    %468 = arith.addf %467, %460 : vector<1x128xf32>
    %469 = arith.mulf %456, %421 : vector<1x128xf32>
    %470 = arith.addf %469, %442 : vector<1x128xf32>
    %471 = arith.mulf %456, %422 : vector<1x128xf32>
    %472 = arith.subf %471, %458 : vector<1x128xf32>
    %473 = arith.mulf %457, %420 : vector<1x128xf32>
    %474 = arith.subf %473, %459 : vector<1x128xf32>
    %475 = arith.mulf %457, %421 : vector<1x128xf32>
    %476 = arith.addf %475, %458 : vector<1x128xf32>
    %477 = arith.mulf %457, %422 : vector<1x128xf32>
    %478 = arith.addf %477, %442 : vector<1x128xf32>
    %c0_146 = arith.constant 0 : index
    %c384_147 = arith.constant 384 : index
    %479 = vector.load %arg2[%c0_146, %c384_147] : memref<12x512xf32, #tpu.memory_space<vmem>>, vector<1x128xf32>
    %c1_148 = arith.constant 1 : index
    %c384_149 = arith.constant 384 : index
    %480 = vector.load %arg2[%c1_148, %c384_149] : memref<12x512xf32, #tpu.memory_space<vmem>>, vector<1x128xf32>
    %c2_150 = arith.constant 2 : index
    %c384_151 = arith.constant 384 : index
    %481 = vector.load %arg2[%c2_150, %c384_151] : memref<12x512xf32, #tpu.memory_space<vmem>>, vector<1x128xf32>
    %c3_152 = arith.constant 3 : index
    %c384_153 = arith.constant 384 : index
    %482 = vector.load %arg2[%c3_152, %c384_153] : memref<12x512xf32, #tpu.memory_space<vmem>>, vector<1x128xf32>
    %c4_154 = arith.constant 4 : index
    %c384_155 = arith.constant 384 : index
    %483 = vector.load %arg2[%c4_154, %c384_155] : memref<12x512xf32, #tpu.memory_space<vmem>>, vector<1x128xf32>
    %c5_156 = arith.constant 5 : index
    %c384_157 = arith.constant 384 : index
    %484 = vector.load %arg2[%c5_156, %c384_157] : memref<12x512xf32, #tpu.memory_space<vmem>>, vector<1x128xf32>
    %c6_158 = arith.constant 6 : index
    %c384_159 = arith.constant 384 : index
    %485 = vector.load %arg2[%c6_158, %c384_159] : memref<12x512xf32, #tpu.memory_space<vmem>>, vector<1x128xf32>
    %c7_160 = arith.constant 7 : index
    %c384_161 = arith.constant 384 : index
    %486 = vector.load %arg2[%c7_160, %c384_161] : memref<12x512xf32, #tpu.memory_space<vmem>>, vector<1x128xf32>
    %c8_162 = arith.constant 8 : index
    %c384_163 = arith.constant 384 : index
    %487 = vector.load %arg2[%c8_162, %c384_163] : memref<12x512xf32, #tpu.memory_space<vmem>>, vector<1x128xf32>
    %c9_164 = arith.constant 9 : index
    %c384_165 = arith.constant 384 : index
    %488 = vector.load %arg2[%c9_164, %c384_165] : memref<12x512xf32, #tpu.memory_space<vmem>>, vector<1x128xf32>
    %c10_166 = arith.constant 10 : index
    %c384_167 = arith.constant 384 : index
    %489 = vector.load %arg2[%c10_166, %c384_167] : memref<12x512xf32, #tpu.memory_space<vmem>>, vector<1x128xf32>
    %c11_168 = arith.constant 11 : index
    %c384_169 = arith.constant 384 : index
    %490 = vector.load %arg2[%c11_168, %c384_169] : memref<12x512xf32, #tpu.memory_space<vmem>>, vector<1x128xf32>
    %491 = arith.mulf %462, %479 : vector<1x128xf32>
    %492 = arith.mulf %464, %483 : vector<1x128xf32>
    %493 = arith.addf %491, %492 : vector<1x128xf32>
    %494 = arith.mulf %466, %487 : vector<1x128xf32>
    %495 = arith.addf %493, %494 : vector<1x128xf32>
    %496 = arith.mulf %462, %480 : vector<1x128xf32>
    %497 = arith.mulf %464, %484 : vector<1x128xf32>
    %498 = arith.addf %496, %497 : vector<1x128xf32>
    %499 = arith.mulf %466, %488 : vector<1x128xf32>
    %500 = arith.addf %498, %499 : vector<1x128xf32>
    %501 = arith.mulf %462, %481 : vector<1x128xf32>
    %502 = arith.mulf %464, %485 : vector<1x128xf32>
    %503 = arith.addf %501, %502 : vector<1x128xf32>
    %504 = arith.mulf %466, %489 : vector<1x128xf32>
    %505 = arith.addf %503, %504 : vector<1x128xf32>
    %506 = arith.mulf %462, %482 : vector<1x128xf32>
    %507 = arith.addf %417, %506 : vector<1x128xf32>
    %508 = arith.mulf %464, %486 : vector<1x128xf32>
    %509 = arith.addf %507, %508 : vector<1x128xf32>
    %510 = arith.mulf %466, %490 : vector<1x128xf32>
    %511 = arith.addf %509, %510 : vector<1x128xf32>
    %512 = arith.mulf %468, %479 : vector<1x128xf32>
    %513 = arith.mulf %470, %483 : vector<1x128xf32>
    %514 = arith.addf %512, %513 : vector<1x128xf32>
    %515 = arith.mulf %472, %487 : vector<1x128xf32>
    %516 = arith.addf %514, %515 : vector<1x128xf32>
    %517 = arith.mulf %468, %480 : vector<1x128xf32>
    %518 = arith.mulf %470, %484 : vector<1x128xf32>
    %519 = arith.addf %517, %518 : vector<1x128xf32>
    %520 = arith.mulf %472, %488 : vector<1x128xf32>
    %521 = arith.addf %519, %520 : vector<1x128xf32>
    %522 = arith.mulf %468, %481 : vector<1x128xf32>
    %523 = arith.mulf %470, %485 : vector<1x128xf32>
    %524 = arith.addf %522, %523 : vector<1x128xf32>
    %525 = arith.mulf %472, %489 : vector<1x128xf32>
    %526 = arith.addf %524, %525 : vector<1x128xf32>
    %527 = arith.mulf %468, %482 : vector<1x128xf32>
    %528 = arith.addf %418, %527 : vector<1x128xf32>
    %529 = arith.mulf %470, %486 : vector<1x128xf32>
    %530 = arith.addf %528, %529 : vector<1x128xf32>
    %531 = arith.mulf %472, %490 : vector<1x128xf32>
    %532 = arith.addf %530, %531 : vector<1x128xf32>
    %533 = arith.mulf %474, %479 : vector<1x128xf32>
    %534 = arith.mulf %476, %483 : vector<1x128xf32>
    %535 = arith.addf %533, %534 : vector<1x128xf32>
    %536 = arith.mulf %478, %487 : vector<1x128xf32>
    %537 = arith.addf %535, %536 : vector<1x128xf32>
    %538 = arith.mulf %474, %480 : vector<1x128xf32>
    %539 = arith.mulf %476, %484 : vector<1x128xf32>
    %540 = arith.addf %538, %539 : vector<1x128xf32>
    %541 = arith.mulf %478, %488 : vector<1x128xf32>
    %542 = arith.addf %540, %541 : vector<1x128xf32>
    %543 = arith.mulf %474, %481 : vector<1x128xf32>
    %544 = arith.mulf %476, %485 : vector<1x128xf32>
    %545 = arith.addf %543, %544 : vector<1x128xf32>
    %546 = arith.mulf %478, %489 : vector<1x128xf32>
    %547 = arith.addf %545, %546 : vector<1x128xf32>
    %548 = arith.mulf %474, %482 : vector<1x128xf32>
    %549 = arith.addf %419, %548 : vector<1x128xf32>
    %550 = arith.mulf %476, %486 : vector<1x128xf32>
    %551 = arith.addf %549, %550 : vector<1x128xf32>
    %552 = arith.mulf %478, %490 : vector<1x128xf32>
    %553 = arith.addf %551, %552 : vector<1x128xf32>
    %554 = tpu.concatenate %495, %500, %505, %511, %516, %521, %526, %532, %537, %542, %547, %553 in 0 : vector<1x128xf32>, vector<1x128xf32>, vector<1x128xf32>, vector<1x128xf32>, vector<1x128xf32>, vector<1x128xf32>, vector<1x128xf32>, vector<1x128xf32>, vector<1x128xf32>, vector<1x128xf32>, vector<1x128xf32>, vector<1x128xf32> -> vector<12x128xf32>
    %c0_170 = arith.constant 0 : index
    %c384_171 = arith.constant 384 : index
    %555 = vector.load %arg3[%c0_170, %c384_171] : memref<12x512xf32, #tpu.memory_space<vmem>>, vector<12x128xf32>
    tpu.vector_store %arg3[%c0_170, %c384_171], %554 {strides = array<i32>} : memref<12x512xf32, #tpu.memory_space<vmem>>, vector<12x128xf32>,
    return
  }
  func.func @transform_0(%arg0: i32) -> (i32, i32) {
    %c0_i32 = arith.constant 0 : i32
    %c0_i32_0 = arith.constant 0 : i32
    return %c0_i32, %arg0 : i32, i32
  }
  func.func @transform_1(%arg0: i32) -> (i32, i32) {
    %c0_i32 = arith.constant 0 : i32
    %c0_i32_0 = arith.constant 0 : i32
    return %c0_i32, %arg0 : i32, i32
  }
  func.func @transform_2(%arg0: i32) -> (i32, i32) {
    %c0_i32 = arith.constant 0 : i32
    %c0_i32_0 = arith.constant 0 : i32
    return %c0_i32, %arg0 : i32, i32
  }
}

</mosaic_0001>

<bundles_post_ra>
// kernel: tpu_custom_call.1
= control target key start
LH: loop header
LB: loop body
LE: loop exit
PB: predicated region body
PF: predicated region fallthrough
CT: control target
= control target key end

     0   :  { %7 = vsyncpa [#allocation3], 0  ;;  %s4026_s0 = inlined_call_operand.hbm [shape: f32[6,1024], index: 0, kind: input, shape index: {}]   ;;  %s4027_s1 = inlined_call_operand.hbm [shape: f32[12,1024], index: 1, kind: input, shape index: {}]   ;;  %s4028_s2 = inlined_call_operand.hbm [shape: f32[12,1024], index: 2, kind: output, shape index: {}]  }
   0x1   :  { %9 = vsyncpa [#allocation3 + $0x1], 0 }
   0x2   :  { %10 = vsyncpa [#allocation6], 0 }
   0x3   :  { %12 = vsyncpa [#allocation6 + $0x1], 0 }
   0x4   :  { %13 = vsyncpa [#allocation4], 0 }
   0x5   :  { %15 = vsyncpa [#allocation4 + $0x1], 0  ;;  %s2640_s9 = smov 0   ;;  %s2642_s10 = smov 0  }
   0x6   :  { %s2644_s11 = smov 0   ;;  %s2646_s12 = smov 0  }
   0x7 LB: > { %s2661_s13 = sadd.s32 4294967295, %s2610_s12   ;;  %s2326_s14 = sadd.s32 4294967294, %s2610_s12   ;;  %s2610_s12 = sphi %s2646_s12, %s4156_s12   ;;  %s2606_s11 = sphi %s2644_s11, %s4155_s11   ;;  %s2602_s10 = sphi %s2642_s10, %s4154_s10   ;;  %s2598_s9 = sphi %s2640_s9, %s4153_s9  }
   0x8   : > { %s2665_s15 = sadd.s32 1, %s2610_s12   ;;  %s28_s16 = sadd.s32 1, %s2606_s11 }
   0x9   : > { %s25_s17 = ssub.s32 %s2610_s12, %s2665_s15  ;;  %p35_p0 = scmp.ne.s32.totalorder %s2606_s11, %s2602_s10 }
   0xa   : > { %p26_p1 = scmp.eq.s32.totalorder %s25_s17, 0  ;;  %p36_p2 = scmp.eq.s32.totalorder %s2610_s12, 0 }
   0xb   : > { %p41_p3 = scmp.ne.s32.totalorder %s2602_s10, %s2598_s9  ;;  %p42_p4 = scmp.eq.s32.totalorder %s2661_s13, 0 }
   0xc   : > { %s2677_s18 = scalar_select %p26_p1, %s2606_s11, %s28_s16  }
   0xd   : > { %p2679_p5 = por %p36_p2, %p35_p0  ;;  %p2683_p6 = por %p42_p4, %p41_p3 }
   0xe   : > { %p91_p7 = scmp.eq.s32.totalorder %s2661_s13, 1  ;;  %p97_p8 = scmp.eq.s32.totalorder %s2326_s14, 1 }
   0xf   : > { %p2328_p9 = scmp.ge.s32.totalorder %s2610_s12, 2  ;;  %p2392_p10 = scmp.lt.s32.totalorder %s2610_s12, 2 }
  0x10   : > { %p2690_p11 = por %p91_p7, %p35_p0  ;;  %p2694_p12 = por %p97_p8, %p41_p3 }
  0x11   : > { %s2699_s23 = sand.u32 1, %s2606_s11   ;;  %s2372_s24 = sshll.u32 %s2610_s12, 5 }
  0x12   : > { %s2329_s25 = sshll.u32 %s2699_s23, 5  ;;  %s126_s28 = scalar_lea.hbm %s4026_s0, %s2372_s24 }
  0x13   : > { %s128_s29 = sshll.u32 %s126_s28, 4  ;;  %s121_s30 = scalar_lea.vmem [#allocation2], %s2329_s25  ;;  %s129_s29 = int_to_ptr.hbm [resolvable:$true] %s128_s29 }
  0x14   : > { %s130_s3 = sshll.u32 %s121_s30, 4  ;;  %p2708_p13 = pnand %p2392_p10, %p2679_p5  ;;  %s131_s3 = int_to_ptr.vmem [resolvable:$true] %s130_s3 }
  0x15   : > { %s2332_s5 = sshll.u32 %s2699_s23, 6  ;;  %s146_s8 = scalar_lea.hbm %s4027_s1, %s2372_s24 }
  0x16   : > { %s118_s14 = scalar_lea.sflag [#allocation3], %s2699_s23  ;;  %s2480_s16 = sshra.s32 %s129_s29, 4  ;;  %s2481_s16 = int_to_ptr.hbm [resolvable:$true] %s2480_s16 }
  0x17   : > { %s2482_s17 = scalar_lea.hbm %s2481_s16, 32  ;;  %p2484_p1 = pneg %p2708_p13 }
  0x18   : > { %p2483_p0 = scmp.ne.s32.totalorder %s2481_s16, %s2482_s17  ;;  %s2487_s26 = scalar_lea.hbm %s4026_s0, 64 }
  0x19   : > { %p2488_p4 = scmp.lt.s32.totalorder %s2481_s16, %s4026_s0  ;;  %p2489_p5 = scmp.lt.s32.totalorder %s2487_s26, %s2482_s17 }
  0x1a   : > { %p2485_p2 = pnand %p2484_p1, %p2483_p0 }
  0x1b   : > { %p2490_p7 = por %p2489_p5, %p2488_p4 }
  0x1c   : > { %p2486_p3 = pneg %p2485_p2 }
  0x1e   : > { %p2491_p8 = pnand %p2490_p7, %p2486_p3 }
  0x20   : > { %2494 = shalt.err (!%p2491_p8)
}
  0x21   : > { %2384 = dma.hbm_to_vmem [thread:$0]  (!%p2708_p13), %s129_s29, 512, %s131_s3, %s118_s14  }
  0x22   : > { %s147_s24 = sshll.u32 %s146_s8, 4  ;;  %p2335_p10 = scmp.ge.s32.totalorder %s2610_s12, 1  ;;  %s148_s24 = int_to_ptr.hbm [resolvable:$true] %s147_s24 }
  0x23   : > { %p157_p0 = scmp.lt.s32.totalorder %s2610_s12, 3  ;;  %s141_s30 = scalar_lea.vmem [#allocation5], %s2332_s5 }
  0x24   : > { %s149_s6 = sshll.u32 %s141_s30, 4  ;;  %s138_s16 = scalar_lea.sflag [#allocation6], %s2699_s23  ;;  %s150_s6 = int_to_ptr.vmem [resolvable:$true] %s149_s6 }
  0x25   : > { %p2732_p2 = pnand %p2335_p10, %p157_p0  ;;  %s2510_s17 = sshra.s32 %s148_s24, 4  ;;  %s2511_s17 = int_to_ptr.hbm [resolvable:$true] %s2510_s17 }
  0x26   : > { %s2512_s19 = scalar_lea.hbm %s2511_s17, 64  ;;  %s2517_s8 = scalar_lea.hbm %s4027_s1, 128 }
  0x27   : > { %p2513_p3 = scmp.ne.s32.totalorder %s2511_s17, %s2512_s19  ;;  %p2518_p7 = scmp.lt.s32.totalorder %s2511_s17, %s4027_s1 }
  0x28   : > { %p2519_p8 = scmp.lt.s32.totalorder %s2517_s8, %s2512_s19 }
  0x29   : > { %p2515_p4 = pnand %p2513_p3, %p2484_p1 }
  0x2a   : > { %p2520_p10 = por %p2519_p8, %p2518_p7 }
  0x2b   : > { %p2516_p5 = pneg %p2515_p4 }
  0x2d   : > { %p2521_p0 = pnand %p2520_p10, %p2516_p5 }
  0x2f   : > { %2524 = shalt.err (!%p2521_p0)
}
  0x30   : > { %s2612_s23 = smov 1024   ;;  %s2613_s25 = smov 512  }
  0x31   : > { %s2614_s26 = smov 32   ;;  %161 = sbr.rel (%p2732_p2) target bundleno = 490 (0x1ea), region = 28 }
  0x32   : > { %2387 = dma.hbm_to_vmem [thread:$0]  (!%p2708_p13), %s148_s24, 1024, %s150_s6, %s138_s16, %s2612_s23, %s2613_s25, %s2614_s26  }
  0x36   : > { %s2751_s27 = sand.u32 1, %s2602_s10  }
  0x37   : > { %s2336_s28 = sshll.u32 %s2751_s27, 5  ;;  %s164_s30 = scalar_lea.sflag [#allocation3], %s2751_s27 }
  0x38   : > { %s2755_s17 = scalar_lea.vmem [#allocation2], %s2336_s28 }
  0x39   : > { %2585 = dma.done.wait (%p2683_p6), %s164_s30, 512  }
  0x3a   : > { %2587 = vsyncadd (%p2683_p6), %s164_s30, 4294966784  ;;  %s2337_s4 = sshll.u32 %s2751_s27, 6  ;;  %s174_s24 = scalar_lea.sflag [#allocation6], %s2751_s27 }
  0x3b   : > { %s2765_s6 = scalar_lea.vmem [#allocation5], %s2337_s4 }
  0x3c   : > { %2589 = dma.done.wait (%p2683_p6), %s174_s24, 1024  }
  0x3d   : > { %2591 = vsyncadd (%p2683_p6), %s174_s24, 4294966272  ;;  %v2772_v0 = vld [vmem:[%s2755_s17 + $0x3] ss:$0 sm:$0xff]  ;;  %v2775_v1 = vld [vmem:[%s2755_s17 + $0x4] ss:$0 sm:$0xff]  ;;  %s3290_s20 = scalar_lea.vmem [#allocation7], %s2337_s4 }
  0x3e   : > { %v2778_v2 = vld [vmem:[%s2755_s17 + $0x5] ss:$0 sm:$0xff]  ;;  %v213_v3 = vmul.f32 %v2772_v0, %v2772_v0  ;;  %v214_v4 = vmul.f32 %v2775_v1, %v2775_v1  ;;  %v717_v6 = vld [vmem:[%s2755_s17 + $0xb] ss:$0 sm:$0xff]  ;;  %v718_v7 = vld [vmem:[%s2755_s17 + $0xc] ss:$0 sm:$0xff] }
  0x3f   : > { %v216_v5 = vmul.f32 %v2778_v2, %v2778_v2  ;;  %v719_v8 = vld [vmem:[%s2755_s17 + $0xd] ss:$0 sm:$0xff]  ;;  %v720_v9 = vmul.f32 %v717_v6, %v717_v6  ;;  %v721_v10 = vmul.f32 %v718_v7, %v718_v7  ;;  %v4045_v55 = vmov 683565275   ;;  %s2374_s7 = sshll.u32 %s2661_s13, 5  ;;  %s2227_s13 = sshll.u32 %s3290_s20, 4  ;;  %s2228_s13 = int_to_ptr.vmem [resolvable:$true] %s2227_s13 }
  0x40   : > { %v723_v11 = vmul.f32 %v719_v8, %v719_v8  ;;  %v215_v12 = vadd.f32 %v214_v4, %v213_v3  ;;  %v4042_v57 = vmov 2475754826   ;;  %v4040_v59 = vmov 2131351028   ;;  %s2226_s29 = scalar_lea.hbm %s4028_s2, %s2374_s7  ;;  %s2215_s8 = scalar_lea.sflag [#allocation4], %s2751_s27 }
  0x41   : > { %v722_v13 = vadd.f32 %v721_v10, %v720_v9  ;;  %v4038_v61 = vmov 2102212464   ;;  %v4036_v63 = vmov 920167782   ;;  %s2229_s3 = sshll.u32 %s2226_s29, 4  ;;  %s2560_s26 = scalar_lea.hbm %s4028_s2, 128  ;;  %s2230_s3 = int_to_ptr.hbm [resolvable:$true] %s2229_s3 }
  0x42   : > { %v2789_v14 = vadd.f32 %v216_v5, %v215_v12  ;;  %s2554_s5 = sshra.s32 %s2230_s3, 4  ;;  %s2555_s5 = int_to_ptr.hbm [resolvable:$true] %s2554_s5 }
  0x43   : > { %v2791_v15 = vadd.f32 %v723_v11, %v722_v13  ;;  %v4035_v11 = vmov 1326507024   ;;  %s2556_s14 = scalar_lea.hbm %s2555_s5, 64  ;;  %p2561_p2 = scmp.lt.s32.totalorder %s2555_s5, %s4028_s2 }
  0x44   : > { %2439 = vrsqrt.f32 %v2789_v14  ;;  %vm225_vm0 = vcmp.eq.f32.partialorder %v2789_v14, inf  ;;  %v228_v27 = vand.u32 2147483648, %v2789_v14  ;;  %vm227_vm1 = vcmp.eq.f32.partialorder %v2789_v14, 0.0  ;;  %p2557_p6 = scmp.ne.s32.totalorder %s2555_s5, %s2556_s14  ;;  %p2562_p3 = scmp.lt.s32.totalorder %s2560_s26, %s2556_s14 }
  0x45   : > { %2441 = vrsqrt.f32 %v2791_v15  ;;  %vm732_vm2 = vcmp.eq.f32.partialorder %v2791_v15, inf  ;;  %v735_v31 = vand.u32 2147483648, %v2791_v15  ;;  %vm734_vm3 = vcmp.eq.f32.partialorder %v2791_v15, 0.0 }
  0x46   : > { %p2558_p13 = pnand %p2557_p6, %p2690_p11  ;;  %p2563_p4 = por %p2562_p3, %p2561_p2 }
  0x48   : > { %p2559_p1 = pneg %p2558_p13 }
  0x4a   : > { %v2440_v16 = vpop.eup %2439  ;;  %p2564_p5 = pnand %p2563_p4, %p2559_p1 }
  0x4b   : > { %v2442_v17 = vpop.eup %2441  ;;  %v219_v18 = vmul.f32 %v2440_v16, %v2789_v14 }
  0x4c   : > { %v726_v19 = vmul.f32 %v2442_v17, %v2791_v15 }
  0x4d   : > { %v220_v20 = vmul.f32 %v2440_v16, %v219_v18 }
  0x4e   : > { %v727_v21 = vmul.f32 %v2442_v17, %v726_v19 }
  0x4f   : > { %v221_v22 = vmul.f32 0.5, %v220_v20 }
  0x50   : > { %v728_v23 = vmul.f32 0.5, %v727_v21 }
  0x51   : > { %v222_v24 = vsub.f32 1.5, %v221_v22 }
  0x52   : > { %v729_v25 = vsub.f32 1.5, %v728_v23 }
  0x53   : > { %v223_v26 = vmul.f32 %v2440_v16, %v222_v24 }
  0x54   : > { %v730_v28 = vmul.f32 %v2442_v17, %v729_v25 }
  0x55   : > { %v224_v29 = vmul.f32 %v223_v26, %v2789_v14 }
  0x56   : > { %v731_v30 = vmul.f32 %v730_v28, %v2791_v15 }
  0x57   : > { %v226_v32 = vsel %vm225_vm0, %v2789_v14, %v224_v29 }
  0x58   : > { %v2806_v33 = vsel %vm227_vm1, %v228_v27, %v226_v32  ;;  %v733_v34 = vsel %vm732_vm2, %v2791_v15, %v731_v30 }
  0x59   : > { %v233_v35 = vand.u32 2147483647, %v2806_v33  ;;  %v236_v36 = vand.u32 2139095040, %v2806_v33  ;;  %v2811_v37 = vsel %vm734_vm3, %v735_v31, %v733_v34 }
  0x5a   : > { %v743_v40 = vand.u32 2139095040, %v2811_v37  ;;  %v740_v41 = vand.u32 2147483647, %v2811_v37 }
  0x5b   : > { %v237_v38 = vshrl.u32 %v236_v36, 23  ;;  %v240_v39 = vand.u32 8388607, %v233_v35 }
  0x5c   : > { %v744_v43 = vshrl.u32 %v743_v40, 23  ;;  %v747_v47 = vand.u32 8388607, %v740_v41 }
  0x5d   : > { %v2339_v42 = vadd.s32 4294967169, %v237_v38  ;;  %v241_v44 = vor.u32 8388608, %v240_v39 }
  0x5e   : > { %v2346_v46 = vadd.s32 4294967169, %v744_v43  ;;  %v748_v53 = vor.u32 8388608, %v747_v47 }
  0x5f   : > { %v243_v45 = vadd.s32 1, %v2339_v42  ;;  %v2819_v50 = vshll.u32 %v241_v44, 8 }
  0x60   : > { %v750_v48 = vadd.s32 1, %v2346_v46  ;;  %v2839_v32 = vshll.u32 %v748_v53, 8 }
  0x61   : > { %vm244_vm4 = vcmp.gt.s32.totalorder %v243_v45, 0  ;;  %v282_v4 = vand.u32 65535, %v2819_v50  ;;  %v283_v31 = vshrl.u32 %v2819_v50, 16 }
  0x62   : > { %v245_v49 = vsel %vm244_vm4, %v243_v45, 0  ;;  %vm751_vm5 = vcmp.gt.s32.totalorder %v750_v48, 0 }
  0x63   : > { %v247_v51 = vand.u32 31, %v245_v49  ;;  %v246_v52 = vshrl.u32 %v245_v49, 5  ;;  %v752_v5 = vsel %vm751_vm5, %v750_v48, 0 }
  0x64   : > { %v2833_v20 = vand.u32 31, %v752_v5  ;;  %v2846_v39 = vshrl.u32 %v752_v5, 5 }
  0x65   : > { %v248_v54 = vsub.s32 32, %v247_v51  ;;  %v250_v56 = vshll.u32 %v4045_v55, %v247_v51  ;;  %v253_v58 = vshll.u32 %v4042_v57, %v247_v51  ;;  %v256_v60 = vshll.u32 %v4040_v59, %v247_v51 }
  0x66   : > { %v259_v62 = vshll.u32 %v4038_v61, %v247_v51  ;;  %v262_v3 = vshll.u32 %v4036_v63, %v247_v51  ;;  %vm265_vm6 = vcmp.lt.s32.totalorder %v246_v52, 1  ;;  %vm266_vm7 = vcmp.lt.s32.totalorder %v246_v52, 2 }
  0x67   : > { %v249_v6 = vshrl.u32 %v4045_v55, %v248_v54  ;;  %v251_v7 = vshrl.u32 %v4042_v57, %v248_v54  ;;  %v254_v8 = vshrl.u32 %v4040_v59, %v248_v54  ;;  %v257_v9 = vshrl.u32 %v4038_v61, %v248_v54 }
  0x68   : > { %v260_v10 = vshrl.u32 %v4036_v63, %v248_v54  ;;  %v263_v12 = vshrl.u32 %v4035_v11, %v248_v54  ;;  %vm268_vm8 = vcmp.lt.s32.totalorder %v246_v52, 4  ;;  %vm267_vm9 = vcmp.lt.s32.totalorder %v246_v52, 3 }
  0x69   : > { %v252_v13 = vor.u32 %v251_v7, %v250_v56  ;;  %v255_v16 = vor.u32 %v254_v8, %v253_v58  ;;  %v258_v17 = vor.u32 %v257_v9, %v256_v60  ;;  %v2836_v28 = vsub.s32 32, %v2833_v20 }
  0x6a   : > { %v261_v18 = vor.u32 %v260_v10, %v259_v62  ;;  %v264_v19 = vor.u32 %v263_v12, %v262_v3  ;;  %v757_v45 = vshll.u32 %v4045_v55, %v2833_v20  ;;  %v760_v47 = vshll.u32 %v4042_v57, %v2833_v20 }
  0x6b   : > { %v269_v21 = vsel %vm265_vm6, %v249_v6, %v252_v13  ;;  %v270_v22 = vsel %vm268_vm8, %v258_v17, 2102212464  ;;  %v273_v23 = vsel %vm265_vm6, %v252_v13, %v255_v16  ;;  %v277_v24 = vsel %vm265_vm6, %v255_v16, %v258_v17 }
  0x6c   : > { %v271_v25 = vsel %vm267_vm9, %v255_v16, %v270_v22  ;;  %v274_v26 = vsel %vm268_vm8, %v261_v18, 920167782  ;;  %v278_v27 = vsel %vm268_vm8, %v264_v19, 1326507024  ;;  %v758_v46 = vshrl.u32 %v4042_v57, %v2836_v28 }
  0x6d   : > { %v275_v29 = vsel %vm267_vm9, %v258_v17, %v274_v26  ;;  %v279_v30 = vsel %vm267_vm9, %v261_v18, %v278_v27  ;;  %v2842_v34 = vsel %vm266_vm7, %v269_v21, %v271_v25  ;;  %v761_v48 = vshrl.u32 %v4040_v59, %v2836_v28 }
  0x6e   : > { %v276_v36 = vsel %vm266_vm7, %v273_v23, %v275_v29  ;;  %v280_v38 = vsel %vm266_vm7, %v277_v24, %v279_v30  ;;  %v763_v53 = vshll.u32 %v4040_v59, %v2833_v20  ;;  %v2858_v16 = vor.u32 %v758_v46, %v757_v45 }
  0x6f   : > { %v284_v40 = vand.u32 65535, %v280_v38  ;;  %v285_v42 = vshrl.u32 %v280_v38, 16  ;;  %v306_v43 = vand.u32 65535, %v276_v36  ;;  %v307_v44 = vshrl.u32 %v276_v36, 16 }
  0x70   : > { %v4048_v17 = vmov 0   ;;  %v766_v23 = vshll.u32 %v4038_v61, %v2833_v20  ;;  %v2867_v26 = vor.u32 %v761_v48, %v760_v47  ;;  %v769_v38 = vshll.u32 %v4036_v63, %v2833_v20 }
  0x71   : > { %v286_v49 = vmul.u32 %v284_v40, %v282_v4  ;;  %v287_v51 = vmul.u32 %v285_v42, %v282_v4  ;;  %v288_v52 = vmul.u32 %v284_v40, %v283_v31  ;;  %v289_v54 = vmul.u32 %v285_v42, %v283_v31 }
  0x72   : > { %v308_v56 = vmul.u32 %v306_v43, %v282_v4  ;;  %v309_v58 = vmul.u32 %v307_v44, %v282_v4  ;;  %v310_v60 = vmul.u32 %v306_v43, %v283_v31  ;;  %v311_v6 = vmul.u32 %v307_v44, %v283_v31 }
  0x73   : > { %v290_v62 = vshll.u32 %v287_v51, 16  ;;  %v291_v3 = vshrl.u32 %v287_v51, 16  ;;  %v292_v5 = vshll.u32 %v288_v52, 16  ;;  %v293_v7 = vshrl.u32 %v288_v52, 16 }
  0x74   : > { %v312_v8 = vshll.u32 %v309_v58, 16  ;;  %v313_v9 = vshrl.u32 %v309_v58, 16  ;;  %v314_v10 = vshll.u32 %v310_v60, 16  ;;  %v315_v13 = vshrl.u32 %v310_v60, 16 }
  0x75   : > { %vm294_vm10 = vc.u32 %v286_v49, %v290_v62  ;;  %v296_v12 = vadd.s32 %v290_v62, %v286_v49  ;;  %v764_v4 = vshrl.u32 %v4038_v61, %v2836_v28  ;;  %v767_v31 = vshrl.u32 %v4036_v63, %v2836_v28 }
  0x76   : > { %v295_v18 = vsel %vm294_vm10, 1, %v4048_v17  ;;  %vm316_vm11 = vc.u32 %v308_v56, %v312_v8  ;;  %v318_v19 = vadd.s32 %v312_v8, %v308_v56  ;;  %v770_v40 = vshrl.u32 %v4035_v11, %v2836_v28 }
  0x77   : > { %v297_v21 = vadd.s32 %v295_v18, %v289_v54  ;;  %vm298_vm12 = vc.u32 %v296_v12, %v292_v5  ;;  %v317_v22 = vsel %vm316_vm11, 1, %v4048_v17  ;;  %v2870_v30 = vor.u32 %v764_v4, %v763_v53 }
  0x78   : > { %v299_v24 = vsel %vm298_vm12, 1, %v4048_v17  ;;  %v319_v25 = vadd.s32 %v317_v22, %v311_v6  ;;  %vm320_vm13 = vc.u32 %v318_v19, %v314_v10  ;;  %vm772_vm14 = vcmp.lt.s32.totalorder %v2846_v39, 1 }
  0x79   : > { %v301_v27 = vadd.s32 %v299_v24, %v297_v21  ;;  %v321_v29 = vsel %vm320_vm13, 1, %v4048_v17  ;;  %v2879_v43 = vadd.s32 %v318_v19, %v314_v10  ;;  %v768_v44 = vor.u32 %v767_v31, %v766_v23 }
  0x7a   : > { %v323_v36 = vadd.s32 %v321_v29, %v319_v25  ;;  %vm774_vm15 = vcmp.lt.s32.totalorder %v2846_v39, 3  ;;  %v771_v46 = vor.u32 %v770_v40, %v769_v38  ;;  %vm773_vm0 = vcmp.lt.s32.totalorder %v2846_v39, 2  ;;  %v1218_v29 = vld [vmem:[%s2755_s17 + $0x14] ss:$0 sm:$0xff] }
  0x7b   : > { %v302_v42 = vadd.s32 %v301_v27, %v291_v3  ;;  %vm775_vm1 = vcmp.lt.s32.totalorder %v2846_v39, 4  ;;  %v780_v20 = vsel %vm772_vm14, %v2858_v16, %v2867_v26  ;;  %v789_v52 = vand.u32 65535, %v2839_v32  ;;  %v1217_v27 = vld [vmem:[%s2755_s17 + $0x13] ss:$0 sm:$0xff] }
  0x7c   : > { %v324_v45 = vadd.s32 %v323_v36, %v313_v9  ;;  %v781_v48 = vsel %vm775_vm1, %v768_v44, 920167782  ;;  %v326_v53 = vmul.u32 %v2819_v50, %v2842_v34  ;;  %v784_v56 = vsel %vm772_vm14, %v2867_v26, %v2870_v30 }
  0x7d   : > { %v2884_v47 = vadd.s32 %v302_v42, %v293_v7  ;;  %v782_v51 = vsel %vm774_vm15, %v2870_v30, %v781_v48  ;;  %v785_v60 = vsel %vm775_vm1, %v771_v46, 1326507024  ;;  %v790_v50 = vshrl.u32 %v2839_v32, 16 }
  0x7e   : > { %v325_v49 = vadd.s32 %v324_v45, %v315_v13  ;;  %v783_v54 = vsel %vm773_vm0, %v780_v20, %v782_v51  ;;  %v786_v3 = vsel %vm774_vm15, %v768_v44, %v785_v60  ;;  %v2926_v31 = vadd.f32 4.0, %v2789_v14 }
  0x7f   : > { %vm328_vm2 = vc.u32 %v2884_v47, %v2879_v43  ;;  %v814_v62 = vshrl.u32 %v783_v54, 16  ;;  %v787_v5 = vsel %vm773_vm0, %v784_v56, %v786_v3  ;;  %v813_v6 = vand.u32 65535, %v783_v54 }
  0x80   : > { %v329_v58 = vadd.s32 1, %v325_v49  ;;  %v791_v9 = vand.u32 65535, %v787_v5  ;;  %v792_v10 = vshrl.u32 %v787_v5, 16  ;;  %v1220_v45 = vmul.f32 %v1217_v27, %v1217_v27 }
  0x81   : > { %v2913_v7 = vmul.u32 %v814_v62, %v789_v52  ;;  %v815_v19 = vmul.u32 %v813_v6, %v789_v52  ;;  %v2917_v4 = vmul.u32 %v813_v6, %v790_v50  ;;  %v1221_v46 = vmul.f32 %v1218_v29, %v1218_v29 }
  0x82   : > { %v330_v34 = vsel %vm328_vm2, %v329_v58, %v325_v49  ;;  %v794_v13 = vmul.u32 %v792_v10, %v789_v52  ;;  %v2915_v18 = vmul.u32 %v791_v9, %v790_v50  ;;  %v793_v23 = vmul.u32 %v791_v9, %v789_v52 }
  0x83   : > { %v331_v8 = vadd.s32 %v330_v34, %v326_v53  ;;  %v819_v21 = vshll.u32 %v2913_v7, 16  ;;  %v821_v38 = vshll.u32 %v2917_v4, 16  ;;  %v796_v48 = vmul.u32 %v792_v10, %v790_v50  ;;  %v1219_v53 = vld [vmem:[%s2755_s17 + $0x15] ss:$0 sm:$0xff] }
  0x84   : > { %v797_v24 = vshll.u32 %v794_v13, 16  ;;  %v799_v36 = vshll.u32 %v2915_v18, 16  ;;  %v818_v49 = vmul.u32 %v814_v62, %v790_v50  ;;  %2443 = vrcp.f32 %v2926_v31 }
  0x85   : > { %v332_v12 = vadd.s32 536870912, %v331_v8  ;;  %vm823_vm3 = vc.u32 %v815_v19, %v819_v21  ;;  %v825_v44 = vadd.s32 %v819_v21, %v815_v19  ;;  %v1222_v3 = vadd.f32 %v1221_v46, %v1220_v45 }
  0x86   : > { %vm801_vm4 = vc.u32 %v793_v23, %v797_v24  ;;  %v803_v42 = vadd.s32 %v797_v24, %v793_v23  ;;  %v824_v52 = vsel %vm823_vm3, 1, %v4048_v17  ;;  %v1223_v34 = vmul.f32 %v1219_v53, %v1219_v53 }
  0x87   : > { %v2920_v22 = vshrl.u32 %v332_v12, 30  ;;  %v802_v51 = vsel %vm801_vm4, 1, %v4048_v17  ;;  %vm827_vm7 = vc.u32 %v825_v44, %v821_v38  ;;  %v826_v60 = vadd.s32 %v824_v52, %v818_v49 }
  0x88   : > { %vm805_vm6 = vc.u32 %v803_v42, %v799_v36  ;;  %v804_v58 = vadd.s32 %v802_v51, %v796_v48  ;;  %v828_v50 = vsel %vm827_vm7, 1, %v4048_v17  ;;  %vm230_vm8 = vcmp.lt.f32.partialorder %v2806_v33, 0.01 }
  0x89   : > { %v334_v25 = vshll.u32 %v2920_v22, 30  ;;  %v806_v62 = vsel %vm805_vm6, 1, %v4048_v17  ;;  %v798_v9 = vshrl.u32 %v794_v13, 16  ;;  %v820_v10 = vshrl.u32 %v2913_v7, 16 }
  0x8a   : > { %v2939_v6 = vpop.eup %2443  ;;  %v808_v19 = vadd.s32 %v806_v62, %v804_v58  ;;  %v830_v21 = vadd.s32 %v828_v50, %v826_v60  ;;  %v2944_v23 = vadd.f32 %v1223_v34, %v1222_v3  ;;  %v756_v29 = vshrl.u32 %v4045_v55, %v2836_v28 }
  0x8b   : > { %v335_v40 = vsub.s32 %v331_v8, %v334_v25  ;;  %v327_v8 = vadd.s32 %v2879_v43, %v2884_v47  ;;  %v390_v36 = vmul.f32 %v2939_v6, %v2926_v31  ;;  %v777_v43 = vsel %vm775_vm1, %v2870_v30, 2102212464 }
  0x8c   : > { %4064 = vst [vmem:[#allocation11_spill] sm:$0xff] %v2944_v23  ;;  %v2956_v47 = vsel %vm230_vm8, 1.0, %v2806_v33  ;;  %v800_v42 = vshrl.u32 %v2915_v18, 16  ;;  %v809_v45 = vadd.s32 %v808_v19, %v798_v9  ;;  %v831_v28 = vadd.s32 %v830_v21, %v820_v10 }
  0x8d   : > { %vm336_vm5 = vcmp.lt.s32.totalorder %v335_v40, 0  ;;  %v337_v20 = vsub.s32 0, %v335_v40  ;;  %2445 = vrsqrt.f32 %v2944_v23  ;;  %v776_v30 = vsel %vm772_vm14, %v756_v29, %v2858_v16 }
  0x8e   : > { %v778_v48 = vsel %vm774_vm15, %v2867_v26, %v777_v43  ;;  %v2970_v49 = vsel %vm230_vm8, 1.0, %v2789_v14  ;;  %v357_v18 = vsub.s32 4, %v2920_v22  ;;  %v391_v51 = vsub.f32 1.0, %v390_v36 }
  0x8f   : > { %v338_v54 = vsel %vm336_vm5, %v337_v20, %v335_v40  ;;  %2447 = vrcp.f32 %v2956_v47  ;;  %v2976_v16 = vadd.s32 %v809_v45, %v800_v42  ;;  %v2980_v26 = vadd.s32 %v825_v44, %v821_v38 }
  0x90   : > { %v339_v56 = vclz %v338_v54  ;;  %v779_v54 = vsel %vm773_vm0, %v776_v30, %v778_v48  ;;  %vm235_vm10 = vcmp.lt.s32.totalorder %v2806_v33, 0  ;;  %2449 = vrcp.f32 %v2970_v49 }
  0x91   : > { %v358_v60 = vsel %vm235_vm10, %v357_v18, %v2920_v22  ;;  %v392_v39 = vmul.f32 %v2939_v6, %v391_v51  ;;  %vm2990_vm11 = vcmp.le.f32.partialorder %v233_v35, 0.7853982  ;;  %v833_v38 = vmul.u32 %v2839_v32, %v779_v54 }
  0x92   : > { %v2340_v5 = vadd.s32 4294967294, %v339_v56  ;;  %vm394_vm12 = vweird.f32 %v2926_v31  ;;  %vm395_vm13 = vweird.f32 %v2939_v6  ;;  %vm835_vm14 = vc.u32 %v2976_v16, %v2980_v26 }
  0x93   : > { %v2446_v58 = vpop.eup %2445  ;;  %v360_v35 = vsel %vm2990_vm11, 0, %v358_v60  ;;  %v393_v32 = vadd.f32 %v2939_v6, %v392_v39  ;;  %v398_v50 = vand.u32 2147483647, %v2926_v31  ;;  %vm3011_vm15 = vmor %vm394_vm12, %vm395_vm13  ;;  %vm1232_vm1 = vcmp.eq.f32.partialorder %v2944_v23, inf }
  0x94   : > { %vm2341_vm9 = vcmp.lt.s32.totalorder %v2340_v5, 0  ;;  %v1226_v62 = vmul.f32 %v2446_v58, %v2944_v23  ;;  %vm1234_vm3 = vcmp.eq.f32.partialorder %v2944_v23, 0.0  ;;  %vm567_vm6 = vweird.f32 %v2956_v47 }
  0x95   : > { %v342_v12 = vsel %vm2341_vm9, 0, %v2340_v5  ;;  %v2995_v44 = vpop.eup %2447  ;;  %v400_v5 = vand.u32 2147483648, %v2926_v31  ;;  %v377_v31 = vadd.s32 3, %v360_v35  ;;  %vm399_vm0 = vcmp.eq.f32.partialorder %v398_v50, 8.507059e+37 }
  0x96   : > { %v343_v24 = vsub.s32 32, %v342_v12  ;;  %v344_v25 = vshll.u32 %v335_v40, %v342_v12  ;;  %v347_v27 = vsub.s32 4294967266, %v342_v12  ;;  %v822_v40 = vshrl.u32 %v2917_v4, 16  ;;  %v3007_v9 = vpop.eup %2449 }
  0x97   : > { %v563_v19 = vmul.f32 %v2995_v44, %v2956_v47  ;;  %v401_v29 = vor.u32 1.1754944e-38, %v400_v5  ;;  %vm568_vm7 = vweird.f32 %v2995_v44  ;;  %vm586_vm12 = vweird.f32 %v3007_v9 }
  0x98   : > { %v345_v7 = vshrl.u32 %v327_v8, %v343_v24  ;;  %v348_v13 = vadd.s32 127, %v347_v27  ;;  %v832_v56 = vadd.s32 %v831_v28, %v822_v40  ;;  %v1227_v24 = vmul.f32 %v2446_v58, %v1226_v62 }
  0x99   : > { %v581_v40 = vmul.f32 %v3007_v9, %v2970_v49  ;;  %v564_v28 = vsub.f32 1.0, %v563_v19 }
  0x9a   : > { %v346_v46 = vor.u32 %v345_v7, %v344_v25  ;;  %v349_v20 = vshll.u32 %v348_v13, 23  ;;  %v836_v22 = vadd.s32 1, %v832_v56  ;;  %v1228_v43 = vmul.f32 0.5, %v1227_v24 }
  0x9b   : > { %v397_v7 = vsel %vm3011_vm15, %v2939_v6, %v393_v32  ;;  %v3027_v13 = vand.u32 3, %v360_v35  ;;  %v3130_v24 = vadd.f32 4.0, %v2791_v15 }
  0x9c   : > { %v350_v52 = vor.u32 4788187, %v349_v20  ;;  %v353_v53 = vcvt.s32.f32 %v346_v46  ;;  %v837_v8 = vsel %vm835_vm14, %v836_v22, %v832_v56  ;;  %v1229_v46 = vsub.f32 1.5, %v1228_v43 }
  0x9d   : > { %v838_v21 = vadd.s32 %v837_v8, %v833_v38  ;;  %v3031_v20 = vand.u32 3, %v377_v31  ;;  %v402_v51 = vsel %vm399_vm0, %v401_v29, %v397_v7  ;;  %vm554_vm2 = vcmp.eq.s32.totalorder %v3027_v13, 2  ;;  %vm3072_vm0 = vmor %vm567_vm6, %vm568_vm7 }
  0x9e   : > { %v351_v14 = vand.u32 2147483647, %v350_v52  ;;  %v1230_v6 = vmul.f32 %v2446_v58, %v1229_v46  ;;  %v582_v52 = vsub.f32 1.0, %v581_v40  ;;  %v403_v39 = vmul.f32 8.0, %v402_v51 }
  0x9f   : > { %v839_v36 = vadd.s32 536870912, %v838_v21  ;;  %vm380_vm4 = vcmp.eq.s32.totalorder %v3031_v20, 0  ;;  %vm551_vm5 = vcmp.eq.s32.totalorder %v3027_v13, 0  ;;  %vm379_vm9 = vcmp.lt.s32.totalorder %v3031_v20, 2 }
  0xa0   : > { %v354_v4 = vmul.f32 %v353_v53, %v351_v14  ;;  %v1235_v53 = vand.u32 2147483648, %v2944_v23  ;;  %v565_v14 = vmul.f32 %v2995_v44, %v564_v28  ;;  %v1231_v60 = vmul.f32 %v1230_v6, %v2944_v23 }
  0xa1   : > { %v3033_v30 = vshrl.u32 %v839_v36, 30  ;;  %v571_v38 = vand.u32 2147483647, %v2956_v47  ;;  %v583_v35 = vmul.f32 %v3007_v9, %v582_v52  ;;  %vm383_vm14 = vcmp.eq.s32.totalorder %v3031_v20, 2 }
  0xa2   : > { %v355_v34 = vxor.u32 2147483648, %v354_v4  ;;  %v1233_v22 = vsel %vm1232_vm1, %v2944_v23, %v1231_v60  ;;  %v566_v8 = vadd.f32 %v2995_v44, %v565_v14  ;;  %vm550_vm15 = vcmp.lt.s32.totalorder %v3027_v13, 2  ;;  %v715_v23 = vld [vmem:[%s2755_s17 + $0x9] ss:$0 sm:$0xff] }
  0xa3   : > { %v841_v58 = vshll.u32 %v3033_v30, 30  ;;  %v3058_v62 = vsel %vm1234_vm3, %v1235_v53, %v1233_v22  ;;  %v584_v31 = vadd.f32 %v3007_v9, %v583_v35  ;;  %v591_v29 = vand.u32 2147483648, %v2970_v49 }
  0xa4   : > { %v356_v10 = vsel %vm235_vm10, %v355_v34, %v354_v4  ;;  %vm376_vm10 = vweird.f32 %v2806_v33  ;;  %v573_v34 = vand.u32 2147483648, %v2956_v47  ;;  %4069 = vst [vmem:[#allocation12_spill] sm:$0xff] %v3058_v62  ;;  %v570_v28 = vsel %vm3072_vm0, %v2995_v44, %v566_v8 }
  0xa5   : > { %v3020_v25 = vsel %vm2990_vm11, %v2806_v33, %v356_v10  ;;  %v3054_v5 = vsub.s32 %v838_v21, %v841_v58  ;;  %v1243_v10 = vand.u32 2139095040, %v3058_v62  ;;  %vm585_vm11 = vweird.f32 %v2970_v49 }
  0xa6   : > { %v361_v27 = vmul.f32 %v3020_v25, %v3020_v25  ;;  %vm3083_vm1 = vmor %vm585_vm11, %vm586_vm12  ;;  %vm3090_vm3 = vcmp.eq.f32.partialorder %v571_v38, 8.507059e+37  ;;  %v592_v52 = vor.u32 1.1754944e-38, %v591_v29  ;;  %v834_v44 = vadd.s32 %v2980_v26, %v2976_v16 }
  0xa7   : > { %vm843_vm13 = vcmp.lt.s32.totalorder %v3054_v5, 0  ;;  %v844_v12 = vsub.s32 0, %v3054_v5  ;;  %v588_v6 = vsel %vm3083_vm1, %v3007_v9, %v584_v31  ;;  %v4044_v31 = vand.u32 2147483647, %v3058_v62 }
  0xa8   : > { %v362_v42 = vmul.f32 -0.001358992, %v361_v27  ;;  %v369_v45 = vmul.f32 -0.00019511016, %v361_v27  ;;  %2451 = vrcp.f32 %v3130_v24  ;;  %vm4032_vm11 = vcmask 1043456  }
  0xa9   : > { %v845_v36 = vsel %vm843_vm13, %v844_v12, %v3054_v5  ;;  %vm4031_vm12 = vcmask 1044480   ;;  %vm4030_vm13 = vcmask 1045504   ;;  %vm901_vm0 = vweird.f32 %v3130_v24 }
  0xaa   : > { %v363_v48 = vadd.f32 0.041655596, %v362_v42  ;;  %v370_v18 = vadd.f32 0.008332121, %v369_v45  ;;  %v846_v47 = vclz %v845_v36  ;;  %v1244_v42 = vshrl.u32 %v1243_v10, 23 }
  0xab   : > { %v2342_v45 = vadd.f32 -1.0, %v403_v39 }
  0xac   : > { %v364_v54 = vmul.f32 %v363_v48, %v361_v27  ;;  %v371_v56 = vmul.f32 %v370_v18, %v361_v27  ;;  %v574_v48 = vor.u32 1.1754944e-38, %v573_v34  ;;  %v2347_v51 = vadd.s32 4294967294, %v846_v47 }
  0xae   : > { %v365_v3 = vadd.f32 -0.4999988, %v364_v54  ;;  %v372_v4 = vadd.f32 -0.16666654, %v371_v56  ;;  %vm2348_vm7 = vcmp.lt.s32.totalorder %v2347_v51, 0  ;;  %v2353_v56 = vadd.s32 4294967169, %v1244_v42 }
  0xaf   : > { %v575_v9 = vsel %vm3090_vm3, %v574_v48, %v570_v28  ;;  %v849_v39 = vsel %vm2348_vm7, 0, %v2347_v51  ;;  %v864_v28 = vsub.s32 4, %v3033_v30 }
  0xb0   : > { %v366_v32 = vmul.f32 %v365_v3, %v361_v27  ;;  %v373_v50 = vmul.f32 %v372_v4, %v361_v27  ;;  %v589_v27 = vand.u32 2147483647, %v2970_v49  ;;  %v850_v58 = vsub.s32 32, %v849_v39 }
  0xb1   : > { %v1250_v22 = vadd.s32 1, %v2353_v56  ;;  %v851_v34 = vshll.u32 %v3054_v5, %v849_v39 }
  0xb2   : > { %v367_v19 = vadd.f32 1.0, %v366_v32  ;;  %v374_v21 = vadd.f32 1.0, %v373_v50  ;;  %vm590_vm6 = vcmp.eq.f32.partialorder %v589_v27, 8.507059e+37  ;;  %v852_v35 = vshrl.u32 %v834_v44, %v850_v58  ;;  %v3161_v44 = vld [vmem:[%s2765_s6] ss:$0 sm:$0xff] }
  0xb3   : > { %v593_v20 = vsel %vm590_vm6, %v592_v52, %v588_v6  ;;  %v854_v32 = vsub.s32 4294967266, %v849_v39  ;;  %v3174_v39 = vld [vmem:[%s2765_s6 + $0x5] ss:$0 sm:$0xff]  ;;  %v3182_v58 = vld [vmem:[%s2765_s6 + $0x6] ss:$0 sm:$0xff] }
  0xb4   : > { %v375_v43 = vmul.f32 %v374_v21, %v3020_v25  ;;  %v384_v7 = vxor.u32 2147483648, %v367_v19  ;;  %v3127_v21 = vor.u32 %v852_v35, %v851_v34  ;;  %v3197_v34 = vld [vmem:[%s2765_s6 + $0x3] ss:$0 sm:$0xff]  ;;  %v3200_v35 = vld [vmem:[%s2765_s6 + $0x7] ss:$0 sm:$0xff] }
  0xb5   : > { %v855_v12 = vadd.s32 127, %v854_v32  ;;  %v3203_v32 = vld [vmem:[%s2765_s6 + $0x22] ss:$0 sm:$0xff] }
  0xb6   : > { %v381_v25 = vxor.u32 2147483648, %v375_v43  ;;  %v385_v49 = vsel %vm383_vm14, %v384_v7, %v375_v43  ;;  %v556_v18 = vsel %vm554_vm2, %v384_v7, %v375_v43  ;;  %vm737_vm2 = vcmp.lt.f32.partialorder %v2811_v37, 0.01 }
  0xb7   : > { %v3135_v5 = vsel %vm737_vm2, 1.0, %v2811_v37  ;;  %v856_v42 = vshll.u32 %v855_v12, 23  ;;  %v860_v33 = vcvt.s32.f32 %v3127_v21  ;;  %vm4029_vm14 = vcmask 1046528  }
  0xb8   : > { %v382_v53 = vsel %vm380_vm4, %v367_v19, %v381_v25  ;;  %v553_v54 = vsel %vm551_vm5, %v367_v19, %v381_v25  ;;  %vm1251_vm4 = vcmp.gt.s32.totalorder %v1250_v22, 0  ;;  %vm742_vm5 = vcmp.lt.s32.totalorder %v2811_v37, 0 }
  0xb9   : > { %v386_v14 = vsel %vm379_vm9, %v382_v53, %v385_v49  ;;  %v557_v60 = vsel %vm550_vm15, %v553_v54, %v556_v18  ;;  %v3143_v43 = vsel %vm1251_vm4, %v1250_v22, 0  ;;  %v3164_v53 = vld [vmem:[%s2765_s6 + $0x1] ss:$0 sm:$0xff]  ;;  %v3167_v54 = vld [vmem:[%s2765_s6 + $0x4] ss:$0 sm:$0xff]  ;;  %vm4034_vm9 = vcmask 1041408  }
  0xba   : > { %v387_v16 = vsel %vm376_vm10, nan, %v386_v14  ;;  %v558_v26 = vsel %vm376_vm10, nan, %v557_v60  ;;  %vm4033_vm10 = vcmask 1042432   ;;  %vm3242_vm15 = vcmp.le.f32.partialorder %v740_v41, 0.7853982 }
  0xbb   : > { %v3119_v3 = vsel %vm230_vm8, %v2342_v45, %v558_v26  ;;  %v576_v13 = vmul.f32 %v575_v9, %v387_v16  ;;  %v3171_v9 = vld [vmem:[%s2765_s6 + $0x2] ss:$0 sm:$0xff]  ;;  %2453 = vrcp.f32 %v3135_v5 }
  0xbc   : > { %v560_v4 = vmul.f32 0.5, %v3119_v3  ;;  %v579_v38 = vsub.f32 1.0, %v3119_v3 }
  0xbe   : > { %v561_v50 = vadd.f32 0.5, %v560_v4  ;;  %v594_v8 = vmul.f32 %v593_v20, %v579_v38  ;;  %v628_v20 = vld [vmem:[%s2765_s6 + $0x20] ss:$0 sm:$0xff]  ;;  %v3186_v4 = vld [vmem:[%s2765_s6 + $0x21] ss:$0 sm:$0xff] }
  0xc0   : > { %v577_v10 = vsel %vm230_vm8, %v561_v50, %v576_v13  ;;  %v3191_v13 = vsel %vm742_vm5, %v864_v28, %v3033_v30 }
  0xc1   : > { %v578_v19 = vmul.f32 0.5, %v577_v10  ;;  %v600_v29 = vmul.f32 %v577_v10, %v2775_v1  ;;  %v601_v36 = vmul.f32 %v577_v10, %v2778_v2  ;;  %v599_v45 = vmul.f32 %v577_v10, %v2772_v0  ;;  %v3207_v10 = vpop.eup %2451 }
  0xc2   : > { %v867_v21 = vsel %vm3242_vm15, 0, %v3191_v13  ;;  %vm902_vm1 = vweird.f32 %v3207_v10 }
  0xc3   : > { %v595_v27 = vsel %vm230_vm8, %v578_v19, %v594_v8  ;;  %vm4057_vm8 = vcmask 1040384   ;;  %vm3316_vm3 = vmor %vm901_vm0, %vm902_vm1 }
  0xc4   : > { %v596_v7 = vmul.f32 %v595_v27, %v2772_v0  ;;  %v597_v40 = vmul.f32 %v595_v27, %v2775_v1  ;;  %v598_v47 = vmul.f32 %v595_v27, %v2778_v2  ;;  %v207_v27 = vld [vmem:[%s2755_s17] ss:$0 sm:$0xff] }
  0xc6   : > { %v602_v46 = vmul.f32 %v596_v7, %v2772_v0  ;;  %v604_v48 = vmul.f32 %v596_v7, %v2775_v1  ;;  %v606_v25 = vmul.f32 %v596_v7, %v2778_v2  ;;  %v608_v49 = vmul.f32 %v597_v40, %v2772_v0 }
  0xc7   : > { %v610_v18 = vmul.f32 %v597_v40, %v2775_v1  ;;  %v612_v51 = vmul.f32 %v597_v40, %v2778_v2  ;;  %v614_v6 = vmul.f32 %v598_v47, %v2772_v0  ;;  %v616_v52 = vmul.f32 %v598_v47, %v2775_v1 }
  0xc8   : > { %v603_v56 = vadd.f32 %v602_v46, %v3119_v3  ;;  %v605_v14 = vsub.f32 %v604_v48, %v601_v36  ;;  %v607_v60 = vadd.f32 %v606_v25, %v600_v29  ;;  %v3176_v0 = vor.u32 4788187, %v856_v42 }
  0xc9   : > { %v609_v1 = vadd.f32 %v608_v49, %v601_v36  ;;  %v611_v16 = vadd.f32 %v610_v18, %v3119_v3  ;;  %v3179_v26 = vsub.f32 %v612_v51, %v599_v45  ;;  %v3193_v38 = vsub.f32 %v614_v6, %v600_v29  ;;  %v631_v29 = vld [vmem:[%s2765_s6 + $0x23] ss:$0 sm:$0xff] }
  0xca   : > { %v618_v22 = vmul.f32 %v598_v47, %v2778_v2  ;;  %v632_v50 = vmul.f32 %v3161_v44, %v603_v56  ;;  %v633_v8 = vmul.f32 %v3167_v54, %v605_v14  ;;  %v3209_v12 = vadd.f32 %v616_v52, %v599_v45 }
  0xcb   : > { %v637_v30 = vmul.f32 %v3164_v53, %v603_v56  ;;  %v638_v19 = vmul.f32 %v3174_v39, %v605_v14  ;;  %v642_v2 = vmul.f32 %v3171_v9, %v603_v56  ;;  %v635_v7 = vmul.f32 %v628_v20, %v607_v60 }
  0xcc   : > { %v634_v36 = vadd.f32 %v633_v8, %v632_v50  ;;  %v640_v40 = vmul.f32 %v3186_v4, %v607_v60  ;;  %v643_v47 = vmul.f32 %v3182_v58, %v605_v14  ;;  %v645_v28 = vmul.f32 %v3203_v32, %v607_v60 }
  0xcd   : > { %v639_v42 = vadd.f32 %v638_v19, %v637_v30  ;;  %v647_v45 = vmul.f32 %v3197_v34, %v603_v56  ;;  %v649_v46 = vmul.f32 %v3200_v35, %v605_v14  ;;  %v619_v48 = vadd.f32 %v618_v22, %v3119_v3  ;;  %v208_v3 = vld [vmem:[%s2755_s17 + $0x1] ss:$0 sm:$0xff] }
  0xce   : > { %v644_v25 = vadd.f32 %v643_v47, %v642_v2  ;;  %v653_v49 = vmul.f32 %v3161_v44, %v609_v1  ;;  %v654_v18 = vmul.f32 %v3167_v54, %v611_v16  ;;  %v651_v6 = vmul.f32 %v631_v29, %v607_v60 }
  0xcf   : > { %v648_v51 = vadd.f32 %v647_v45, %v207_v27  ;;  %v656_v52 = vmul.f32 %v628_v20, %v3179_v26  ;;  %v658_v50 = vmul.f32 %v3164_v53, %v609_v1  ;;  %v636_v8 = vadd.f32 %v635_v7, %v634_v36 }
  0xd0   : > { %v641_v56 = vadd.f32 %v640_v40, %v639_v42  ;;  %v655_v30 = vadd.f32 %v654_v18, %v653_v49  ;;  %v659_v14 = vmul.f32 %v3174_v39, %v611_v16  ;;  %v646_v22 = vadd.f32 %v645_v28, %v644_v25 }
  0xd1   : > { %v650_v19 = vadd.f32 %v649_v46, %v648_v51  ;;  %v663_v2 = vmul.f32 %v3171_v9, %v609_v1  ;;  %v664_v47 = vmul.f32 %v3182_v58, %v611_v16  ;;  %v661_v60 = vmul.f32 %v3186_v4, %v3179_v26 }
  0xd2   : > { %v666_v27 = vmul.f32 %v3203_v32, %v3179_v26  ;;  %v668_v36 = vmul.f32 %v3197_v34, %v609_v1  ;;  %v670_v7 = vmul.f32 %v3200_v35, %v611_v16  ;;  %v657_v42 = vadd.f32 %v656_v52, %v655_v30  ;;  %v209_v52 = vld [vmem:[%s2755_s17 + $0x2] ss:$0 sm:$0xff] }
  0xd3   : > { %v652_v40 = vadd.f32 %v651_v6, %v650_v19  ;;  %v660_v28 = vadd.f32 %v659_v14, %v658_v50  ;;  %v674_v45 = vmul.f32 %v3161_v44, %v3193_v38  ;;  %v665_v46 = vadd.f32 %v664_v47, %v663_v2 }
  0xd4   : > { %v669_v25 = vadd.f32 %v668_v36, %v208_v3  ;;  %v675_v49 = vmul.f32 %v3167_v54, %v3209_v12  ;;  %v677_v18 = vmul.f32 %v628_v20, %v619_v48  ;;  %v672_v16 = vmul.f32 %v631_v29, %v3179_v26 }
  0xd5   : > { %v679_v51 = vmul.f32 %v3164_v53, %v3193_v38  ;;  %v680_v44 = vmul.f32 %v3174_v39, %v3209_v12  ;;  %v682_v6 = vmul.f32 %v3186_v4, %v619_v48  ;;  %v684_v50 = vmul.f32 %v3171_v9, %v3193_v38 }
  0xd6   : > { %v671_v54 = vadd.f32 %v670_v7, %v669_v25  ;;  %v676_v20 = vadd.f32 %v675_v49, %v674_v45  ;;  %v685_v41 = vmul.f32 %v3182_v58, %v3209_v12  ;;  %v687_v26 = vmul.f32 %v3203_v32, %v619_v48 }
  0xd7   : > { %v681_v30 = vadd.f32 %v680_v44, %v679_v51  ;;  %v689_v53 = vmul.f32 %v3197_v34, %v3193_v38  ;;  %v691_v39 = vmul.f32 %v3200_v35, %v3209_v12  ;;  %v662_v14 = vadd.f32 %v661_v60, %v660_v28 }
  0xd8   : > { %v678_v4 = vadd.f32 %v677_v18, %v676_v20  ;;  %v686_v3 = vadd.f32 %v685_v41, %v684_v50  ;;  %v693_v19 = vmul.f32 %v631_v29, %v619_v48  ;;  %v696_v9 = vsel %vm4057_vm8, %v636_v8, %v641_v56 }
  0xd9   : > { %v683_v2 = vadd.f32 %v682_v6, %v681_v30  ;;  %v690_v47 = vadd.f32 %v689_v53, %v209_v52  ;;  %v858_v36 = vand.u32 2147483647, %v3176_v0  ;;  %v667_v58 = vadd.f32 %v666_v27, %v665_v46 }
  0xda   : > { %v673_v7 = vadd.f32 %v672_v16, %v671_v54  ;;  %v688_v45 = vadd.f32 %v687_v26, %v686_v3  ;;  %v698_v32 = vsel %vm4034_vm9, %v696_v9, %v646_v22  ;;  %v897_v0 = vmul.f32 %v3207_v10, %v3130_v24  ;;  %v2454_v9 = vpop.eup %2453 }
  0xdb   : > { %v692_v25 = vadd.f32 %v691_v39, %v690_v47  ;;  %v700_v38 = vsel %vm4033_vm10, %v698_v32, %v652_v40  ;;  %v709_v34 = vsel %vm4057_vm8, %v678_v4, %v683_v2  ;;  %v861_v35 = vmul.f32 %v860_v33, %v858_v36 }
  0xdc   : > { %v702_v12 = vsel %vm4032_vm11, %v700_v38, %v657_v42  ;;  %v710_v29 = vsel %vm4034_vm9, %v709_v34, %v688_v45  ;;  %v3274_v48 = vand.u32 31, %v3143_v43  ;;  %v898_v60 = vsub.f32 1.0, %v897_v0 }
  0xdd   : > { %v694_v8 = vadd.f32 %v693_v19, %v692_v25  ;;  %v704_v56 = vsel %vm4031_vm12, %v702_v12, %v662_v14  ;;  %v862_v22 = vxor.u32 2147483648, %v861_v35  ;;  %v905_v28 = vand.u32 2147483647, %v3130_v24 }
  0xde   : > { %v706_v33 = vsel %vm4030_vm13, %v704_v56, %v667_v58  ;;  %v884_v46 = vadd.s32 3, %v867_v21  ;;  %v3300_v49 = vand.u32 8388607, %v4044_v31  ;;  %v899_v16 = vmul.f32 %v3207_v10, %v898_v60 }
  0xdf   : > { %v708_v27 = vsel %vm4029_vm14, %v706_v33, %v673_v7  ;;  %v711_v40 = vsel %vm4033_vm10, %v710_v29, %v694_v8  ;;  %v863_v42 = vsel %vm742_vm5, %v862_v22, %v861_v35  ;;  %v907_v51 = vand.u32 2147483648, %v3130_v24 }
  0xe0   : > { %712 = vst [vmem:[%s3290_s20] sm:$0xff] %v708_v27  ;;  %v3296_v13 = vsel %vm3242_vm15, %v2811_v37, %v863_v42  ;;  %v3310_v44 = vsel %vm737_vm2, 1.0, %v2791_v15  ;;  %vm906_vm6 = vcmp.eq.f32.partialorder %v905_v28, 8.507059e+37  ;;  %v3322_v6 = vsub.s32 32, %v3274_v48 }
  0xe1   : > { %713 = vst [vmem:[%s3290_s20 + $0x20] sm:$0xf] %v711_v40  ;;  %v868_v18 = vmul.f32 %v3296_v13, %v3296_v13  ;;  %v900_v20 = vadd.f32 %v3207_v10, %v899_v16  ;;  %v908_v15 = vor.u32 1.1754944e-38, %v907_v51  ;;  %v3325_v50 = vand.u32 3, %v884_v46 }
  0xe2   : > { %v1248_v41 = vor.u32 8388608, %v3300_v49  ;;  %v3329_v24 = vshrl.u32 %v3143_v43, 5  ;;  %v3334_v39 = vand.u32 3, %v867_v21  ;;  %v1078_v4 = vand.u32 2147483647, %v3135_v5 }
  0xe3   : > { %v869_v52 = vmul.f32 -0.001358992, %v868_v18  ;;  %v876_v54 = vmul.f32 -0.00019511016, %v868_v18  ;;  %v904_v53 = vsel %vm3316_vm3, %v3207_v10, %v900_v20  ;;  %v1080_v3 = vand.u32 2147483648, %v3135_v5 }
  0xe4   : > { %v909_v14 = vsel %vm906_vm6, %v908_v15, %v904_v53  ;;  %2455 = vrcp.f32 %v3310_v44  ;;  %v1257_v43 = vshll.u32 %v4045_v55, %v3274_v48  ;;  %v1258_v47 = vshrl.u32 %v4042_v57, %v3322_v6 }
  0xe5   : > { %v870_v30 = vadd.f32 0.041655596, %v869_v52  ;;  %v877_v26 = vadd.f32 0.008332121, %v876_v54  ;;  %vm887_vm7 = vcmp.eq.s32.totalorder %v3325_v50, 0  ;;  %vm890_vm4 = vcmp.eq.s32.totalorder %v3325_v50, 2 }
  0xe6   : > { %v910_v10 = vmul.f32 8.0, %v909_v14  ;;  %vm1074_vm5 = vweird.f32 %v3135_v5  ;;  %v1096_v36 = vand.u32 2147483647, %v3310_v44  ;;  %vm886_vm15 = vcmp.lt.s32.totalorder %v3325_v50, 2 }
  0xe7   : > { %v871_v19 = vmul.f32 %v870_v30, %v868_v18  ;;  %v878_v2 = vmul.f32 %v877_v26, %v868_v18  ;;  %vm1057_vm0 = vcmp.lt.s32.totalorder %v3334_v39, 2  ;;  %vm1058_vm1 = vcmp.eq.s32.totalorder %v3334_v39, 0 }
  0xe8   : > { %v1070_v45 = vmul.f32 %v2454_v9, %v3135_v5  ;;  %vm883_vm3 = vweird.f32 %v2811_v37  ;;  %vm1061_vm6 = vcmp.eq.s32.totalorder %v3334_v39, 2  ;;  %vm3353_vm14 = vcmp.eq.f32.partialorder %v1078_v4, 8.507059e+37 }
  0xe9   : > { %v872_v58 = vadd.f32 -0.4999988, %v871_v19  ;;  %v879_v7 = vadd.f32 -0.16666654, %v878_v2  ;;  %v1081_v25 = vor.u32 1.1754944e-38, %v1080_v3  ;;  %vm1092_vm13 = vweird.f32 %v3310_v44 }
  0xea   : > { %v1071_v35 = vsub.f32 1.0, %v1070_v45  ;;  %vm1075_vm12 = vweird.f32 %v2454_v9  ;;  %v2456_v12 = vpop.eup %2455  ;;  %v2349_v29 = vadd.f32 -1.0, %v910_v10  ;;  %vm3358_vm11 = vcmp.eq.f32.partialorder %v1096_v36, 8.507059e+37 }
  0xeb   : > { %v873_v38 = vmul.f32 %v872_v58, %v868_v18  ;;  %v880_v34 = vmul.f32 %v879_v7, %v868_v18  ;;  %v1098_v8 = vand.u32 2147483648, %v3310_v44  ;;  %v3363_v56 = vor.u32 %v1258_v47, %v1257_v43  ;;  %vm3370_vm10 = vmor %vm1074_vm5, %vm1075_vm12 }
  0xec   : > { %v1260_v22 = vshll.u32 %v4042_v57, %v3274_v48  ;;  %v1072_v60 = vmul.f32 %v2454_v9, %v1071_v35  ;;  %v1088_v27 = vmul.f32 %v2456_v12, %v3310_v44  ;;  %vm1093_vm9 = vweird.f32 %v2456_v12 }
  0xed   : > { %4084 = vst [vmem:[#allocation13_spill] sm:$0xff] %v3363_v56  ;;  %v874_v21 = vadd.f32 1.0, %v873_v38  ;;  %v881_v33 = vadd.f32 1.0, %v880_v34  ;;  %v1261_v42 = vshrl.u32 %v4040_v59, %v3322_v6  ;;  %v1263_v28 = vshll.u32 %v4040_v59, %v3274_v48  ;;  %vm3408_vm12 = vmor %vm1092_vm13, %vm1093_vm9 }
  0xee   : > { %v1264_v46 = vshrl.u32 %v4038_v61, %v3322_v6  ;;  %v1073_v51 = vadd.f32 %v2454_v9, %v1072_v60  ;;  %v1089_v1 = vsub.f32 1.0, %v1088_v27  ;;  %v1266_v5 = vshll.u32 %v4038_v61, %v3274_v48 }
  0xef   : > { %v882_v18 = vmul.f32 %v881_v33, %v3296_v13  ;;  %v891_v16 = vxor.u32 2147483648, %v874_v21  ;;  %v1267_v52 = vshrl.u32 %v4036_v63, %v3322_v6  ;;  %v1269_v54 = vshll.u32 %v4036_v63, %v3274_v48 }
  0xf0   : > { %v1270_v20 = vshrl.u32 %v4035_v11, %v3322_v6  ;;  %v1077_v26 = vsel %vm3370_vm10, %v2454_v9, %v1073_v51  ;;  %v1090_v53 = vmul.f32 %v2456_v12, %v1089_v1  ;;  %v1099_v14 = vor.u32 1.1754944e-38, %v1098_v8 }
  0xf1   : > { %v888_v15 = vxor.u32 2147483648, %v882_v18  ;;  %v892_v30 = vsel %vm890_vm4, %v891_v16, %v882_v18  ;;  %v1063_v13 = vsel %vm1061_vm6, %v891_v16, %v882_v18  ;;  %v3395_v4 = vor.u32 %v1261_v42, %v1260_v22  ;;  %v1717_v22 = vld [vmem:[%s2755_s17 + $0x1b] ss:$0 sm:$0xff]  ;;  %v1718_v16 = vld [vmem:[%s2755_s17 + $0x1c] ss:$0 sm:$0xff] }
  0xf2   : > { %v3397_v3 = vor.u32 %v1264_v46, %v1263_v28  ;;  %v1082_v2 = vsel %vm3353_vm14, %v1081_v25, %v1077_v26  ;;  %v1268_v47 = vor.u32 %v1267_v52, %v1266_v5  ;;  %v1091_v36 = vadd.f32 %v2456_v12, %v1090_v53  ;;  %v1719_v52 = vld [vmem:[%s2755_s17 + $0x1d] ss:$0 sm:$0xff]  ;;  %v2473_v26 = vld [vmem:[%s2755_s17 + $0xd] ss:$0 sm:$0xff] }
  0xf3   : > { %4087 = vst [vmem:[#allocation14_spill] sm:$0xff] %v3395_v4  ;;  %v889_v48 = vsel %vm887_vm7, %v874_v21, %v888_v15  ;;  %v1060_v19 = vsel %vm1058_vm1, %v874_v21, %v888_v15  ;;  %v1271_v58 = vor.u32 %v1270_v20, %v1269_v54  ;;  %vm1272_vm9 = vcmp.lt.s32.totalorder %v3329_v24, 1  ;;  %v2471_v20 = vld [vmem:[%s2755_s17 + $0xb] ss:$0 sm:$0xff] }
  0xf4   : > { %v893_v9 = vsel %vm886_vm15, %v889_v48, %v892_v30  ;;  %v1064_v10 = vsel %vm1057_vm0, %v1060_v19, %v1063_v13  ;;  %vm1275_vm10 = vcmp.lt.s32.totalorder %v3329_v24, 4  ;;  %v1095_v50 = vsel %vm3408_vm12, %v2456_v12, %v1091_v36  ;;  %v2472_v30 = vld [vmem:[%s2755_s17 + $0xc] ss:$0 sm:$0xff] }
  0xf5   : > { %v894_v7 = vsel %vm883_vm3, nan, %v893_v9  ;;  %v1065_v45 = vsel %vm883_vm3, nan, %v1064_v10  ;;  %vm1273_vm13 = vcmp.lt.s32.totalorder %v3329_v24, 2  ;;  %vm1274_vm14 = vcmp.lt.s32.totalorder %v3329_v24, 3 }
  0xf6   : > { %v3424_v44 = vsel %vm737_vm2, %v2349_v29, %v1065_v45  ;;  %v1083_v32 = vmul.f32 %v1082_v2, %v894_v7  ;;  %v1100_v38 = vsel %vm3358_vm11, %v1099_v14, %v1095_v50  ;;  %v1280_v34 = vsel %vm1272_vm9, %v3363_v56, %v3395_v4 }
  0xf7   : > { %v1067_v39 = vmul.f32 0.5, %v3424_v44  ;;  %v1086_v25 = vsub.f32 1.0, %v3424_v44  ;;  %v1281_v35 = vsel %vm1275_vm10, %v1268_v47, 920167782  ;;  %v1284_v12 = vsel %vm1272_vm9, %v3395_v4, %v3397_v3 }
  0xf8   : > { %v1282_v0 = vsel %vm1274_vm14, %v3397_v3, %v1281_v35  ;;  %v1285_v8 = vsel %vm1275_vm10, %v1271_v58, 1326507024  ;;  %v3458_v27 = vshll.u32 %v1248_v41, 8  ;;  %v3467_v51 = vmul.f32 %v1717_v22, %v1717_v22 }
  0xf9   : > { %v1068_v29 = vadd.f32 0.5, %v1067_v39  ;;  %v1101_v21 = vmul.f32 %v1100_v38, %v1086_v25  ;;  %v3452_v33 = vsel %vm1273_vm13, %v1280_v34, %v1282_v0  ;;  %v1286_v60 = vsel %vm1274_vm14, %v1268_v47, %v1285_v8  ;;  %v1127_v25 = vld [vmem:[%s2765_s6 + $0x8] ss:$0 sm:$0xff]  ;;  %v3496_v38 = vld [vmem:[%s2765_s6 + $0xc] ss:$0 sm:$0xff] }
  0xfa   : > { %4090 = vst [vmem:[#allocation15_spill] sm:$0xff] %v3458_v27  ;;  %v1287_v42 = vsel %vm1273_vm13, %v1284_v12, %v1286_v60  ;;  %v4047_v46 = vand.u32 65535, %v3452_v33  ;;  %v3470_v49 = vand.u32 65535, %v3458_v27  ;;  %v3473_v41 = vshrl.u32 %v3458_v27, 16  ;;  %v3501_v0 = vld [vmem:[%s2765_s6 + $0xa] ss:$0 sm:$0xff] }
  0xfb   : > { %v1084_v40 = vsel %vm737_vm2, %v1068_v29, %v1083_v32  ;;  %v1291_v1 = vand.u32 65535, %v1287_v42  ;;  %v1292_v5 = vshrl.u32 %v1287_v42, 16  ;;  %v3481_v2 = vmul.f32 %v1718_v16, %v1718_v16  ;;  %v1128_v29 = vld [vmem:[%s2765_s6 + $0x9] ss:$0 sm:$0xff]  ;;  %v1132_v8 = vld [vmem:[%s2765_s6 + $0xd] ss:$0 sm:$0xff] }
  0xfc   : > { %v1085_v28 = vmul.f32 0.5, %v1084_v40  ;;  %v1106_v15 = vmul.f32 %v2471_v20, %v1084_v40  ;;  %v1107_v13 = vmul.f32 %v2472_v30, %v1084_v40  ;;  %v1108_v53 = vmul.f32 %v2473_v26, %v1084_v40  ;;  %v1133_v42 = vld [vmem:[%s2765_s6 + $0xe] ss:$0 sm:$0xff]  ;;  %v1136_v16 = vld [vmem:[%s2765_s6 + $0x29] ss:$0 sm:$0xff] }
  0xfd   : > { %v3484_v43 = vmul.u32 %v1291_v1, %v3470_v49  ;;  %v3487_v47 = vmul.u32 %v1292_v5, %v3470_v49  ;;  %v3490_v37 = vmul.u32 %v1291_v1, %v3473_v41  ;;  %v3492_v9 = vmul.f32 %v1719_v52, %v1719_v52 }
  0xfe   : > { %v1102_v54 = vsel %vm737_vm2, %v1085_v28, %v1101_v21  ;;  %v3505_v22 = vmul.u32 %v1292_v5, %v3473_v41  ;;  %v1135_v28 = vld [vmem:[%s2765_s6 + $0x28] ss:$0 sm:$0xff]  ;;  %v3514_v1 = vmul.u32 %v4047_v46, %v3470_v49  ;;  %v1137_v5 = vld [vmem:[%s2765_s6 + $0x2a] ss:$0 sm:$0xff]  ;;  %vm4091_vm2 = vcmask 1041408  }
  0xff   : > { %v1103_v14 = vmul.f32 %v2471_v20, %v1102_v54  ;;  %v1104_v48 = vmul.f32 %v2472_v30, %v1102_v54  ;;  %v1105_v19 = vmul.f32 %v2473_v26, %v1102_v54  ;;  %vm4092_vm11 = vcmask 1042432   ;;  %vm4094_vm4 = vmmov %vm4091_vm2 }
 0x100   : > { %vm4093_vm7 = vcmask 1043456   ;;  %vm4095_vm15 = vcmask 1044480   ;;  %vm4098_vm0 = vcmask 1045504   ;;  %vm4100_vm3 = vcmask 1046528   ;;  %vm4101_vm6 = vmmov %vm4092_vm11 }
 0x101   : > { %v1109_v10 = vmul.f32 %v2471_v20, %v1103_v14  ;;  %v1111_v36 = vmul.f32 %v2472_v30, %v1103_v14  ;;  %v1113_v58 = vmul.f32 %v2473_v26, %v1103_v14  ;;  %v1115_v7 = vmul.f32 %v2471_v20, %v1104_v48 }
 0x102   : > { %v1117_v45 = vmul.f32 %v2472_v30, %v1104_v48  ;;  %v1119_v50 = vmul.f32 %v2473_v26, %v1104_v48  ;;  %v1121_v39 = vmul.f32 %v2471_v20, %v1105_v19  ;;  %v1123_v32 = vmul.f32 %v2472_v30, %v1105_v19  ;;  %v1130_v20 = vld [vmem:[%s2765_s6 + $0xb] ss:$0 sm:$0xff]  ;;  %v1134_v30 = vld [vmem:[%s2765_s6 + $0xf] ss:$0 sm:$0xff] }
 0x103   : > { %v1110_v34 = vadd.f32 %v1109_v10, %v3424_v44  ;;  %v1112_v35 = vsub.f32 %v1111_v36, %v1108_v53  ;;  %v1114_v12 = vadd.f32 %v1113_v58, %v1107_v13  ;;  %v1116_v21 = vadd.f32 %v1115_v7, %v1108_v53  ;;  %v714_v7 = vld [vmem:[%s2755_s17 + $0x8] ss:$0 sm:$0xff] }
 0x104   : > { %v1118_v60 = vadd.f32 %v1117_v45, %v3424_v44  ;;  %v1120_v40 = vsub.f32 %v1119_v50, %v1106_v15  ;;  %v1122_v52 = vsub.f32 %v1121_v39, %v1107_v13  ;;  %v1125_v54 = vmul.f32 %v2473_v26, %v1105_v19  ;;  %v1138_v45 = vld [vmem:[%s2765_s6 + $0x2b] ss:$0 sm:$0xff] }
 0x105   : > { %v1139_v14 = vmul.f32 %v1127_v25, %v1110_v34  ;;  %v1140_v53 = vmul.f32 %v3496_v38, %v1112_v35  ;;  %v1124_v48 = vadd.f32 %v1123_v32, %v1106_v15  ;;  %v1144_v10 = vmul.f32 %v1128_v29, %v1110_v34 }
 0x106   : > { %v1145_v36 = vmul.f32 %v1132_v8, %v1112_v35  ;;  %v1149_v58 = vmul.f32 %v3501_v0, %v1110_v34  ;;  %v1142_v11 = vmul.f32 %v1135_v28, %v1114_v12  ;;  %v1147_v63 = vmul.f32 %v1136_v16, %v1114_v12 }
 0x107   : > { %v1141_v50 = vadd.f32 %v1140_v53, %v1139_v14  ;;  %v1150_v61 = vmul.f32 %v1133_v42, %v1112_v35  ;;  %v1152_v13 = vmul.f32 %v1137_v5, %v1114_v12  ;;  %v1154_v26 = vmul.f32 %v1130_v20, %v1110_v34 }
 0x108   : > { %v1146_v59 = vadd.f32 %v1145_v36, %v1144_v10  ;;  %v1156_v19 = vmul.f32 %v1134_v30, %v1112_v35  ;;  %v1126_v39 = vadd.f32 %v1125_v54, %v3424_v44  ;;  %v1160_v31 = vmul.f32 %v1127_v25, %v1116_v21 }
 0x109   : > { %v1151_v57 = vadd.f32 %v1150_v61, %v1149_v58  ;;  %v1161_v15 = vmul.f32 %v3496_v38, %v1118_v60  ;;  %v1155_v32 = vadd.f32 %v1154_v26, %v714_v7  ;;  %v1158_v55 = vmul.f32 %v1138_v45, %v1114_v12 }
 0x10a   : > { %v1163_v46 = vmul.f32 %v1135_v28, %v1120_v40  ;;  %v1165_v18 = vmul.f32 %v1128_v29, %v1116_v21  ;;  %v1143_v17 = vadd.f32 %v1142_v11, %v1141_v50  ;;  %v1148_v14 = vadd.f32 %v1147_v63, %v1146_v59 }
 0x10b   : > { %v1162_v53 = vadd.f32 %v1161_v15, %v1160_v31  ;;  %v1166_v62 = vmul.f32 %v1132_v8, %v1118_v60  ;;  %v1153_v10 = vadd.f32 %v1152_v13, %v1151_v57  ;;  %v1157_v36 = vadd.f32 %v1156_v19, %v1155_v32  ;;  %v716_v19 = vld [vmem:[%s2755_s17 + $0xa] ss:$0 sm:$0xff] }
 0x10c   : > { %v1170_v34 = vmul.f32 %v3501_v0, %v1116_v21  ;;  %v1171_v35 = vmul.f32 %v1133_v42, %v1118_v60  ;;  %v1168_v27 = vmul.f32 %v1136_v16, %v1120_v40  ;;  %v1173_v61 = vmul.f32 %v1137_v5, %v1120_v40 }
 0x10d   : > { %v1175_v44 = vmul.f32 %v1130_v20, %v1116_v21  ;;  %v1177_v54 = vmul.f32 %v1134_v30, %v1118_v60  ;;  %v1159_v58 = vadd.f32 %v1158_v55, %v1157_v36  ;;  %v1164_v7 = vadd.f32 %v1163_v46, %v1162_v53 }
 0x10e   : > { %v1167_v12 = vadd.f32 %v1166_v62, %v1165_v18  ;;  %v1181_v26 = vmul.f32 %v1127_v25, %v1122_v52  ;;  %v1172_v4 = vadd.f32 %v1171_v35, %v1170_v34  ;;  %v1182_v59 = vmul.f32 %v3496_v38, %v1124_v48 }
 0x10f   : > { %v1176_v11 = vadd.f32 %v1175_v44, %v715_v23  ;;  %v1184_v63 = vmul.f32 %v1135_v28, %v1126_v39  ;;  %v1179_v31 = vmul.f32 %v1138_v45, %v1120_v40  ;;  %v1186_v57 = vmul.f32 %v1128_v29, %v1122_v52 }
 0x110   : > { %v1187_v50 = vmul.f32 %v1132_v8, %v1124_v48  ;;  %v1189_v13 = vmul.f32 %v1136_v16, %v1126_v39  ;;  %v1183_v32 = vadd.f32 %v1182_v59, %v1181_v26  ;;  %v1191_v56 = vmul.f32 %v3501_v0, %v1122_v52 }
 0x111   : > { %v1178_v15 = vadd.f32 %v1177_v54, %v1176_v11  ;;  %v1192_v21 = vmul.f32 %v1133_v42, %v1124_v48  ;;  %v1194_v55 = vmul.f32 %v1137_v5, %v1126_v39  ;;  %v1196_v46 = vmul.f32 %v1130_v20, %v1122_v52 }
 0x112   : > { %v1188_v60 = vadd.f32 %v1187_v50, %v1186_v57  ;;  %v1198_v62 = vmul.f32 %v1134_v30, %v1124_v48  ;;  %v1169_v18 = vadd.f32 %v1168_v27, %v1167_v12  ;;  %v1185_v25 = vadd.f32 %v1184_v63, %v1183_v32 }
 0x113   : > { %v1193_v23 = vadd.f32 %v1192_v21, %v1191_v56  ;;  %v1200_v53 = vmul.f32 %v1138_v45, %v1126_v39  ;;  %v1197_v28 = vadd.f32 %v1196_v46, %v716_v19  ;;  %v1202_v29 = vsel %vm4057_vm8, %v1143_v17, %v1148_v14 }
 0x114   : > { %v1190_v38 = vadd.f32 %v1189_v13, %v1188_v60  ;;  %v1297_v8 = vshll.u32 %v3487_v47, 16  ;;  %v1174_v40 = vadd.f32 %v1173_v61, %v1172_v4  ;;  %v1203_v36 = vsel %vm4091_vm2, %v1202_v29, %v1153_v10  ;;  %v4107_v29 = vld [vmem:[#allocation11_spill] sm:$0xff] }
 0x115   : > { %v1195_v16 = vadd.f32 %v1194_v55, %v1193_v23  ;;  %v1299_v0 = vshll.u32 %v3490_v37, 16  ;;  %v1180_v42 = vadd.f32 %v1179_v31, %v1178_v15  ;;  %v1199_v5 = vadd.f32 %v1198_v62, %v1197_v28  ;;  %v4106_v62 = vld [vmem:[#allocation15_spill] sm:$0xff] }
 0x116   : > { %v1204_v52 = vsel %vm4092_vm11, %v1203_v36, %v1159_v58  ;;  %v1209_v27 = vsel %vm4057_vm8, %v1185_v25, %v1190_v38  ;;  %vm1301_vm5 = vc.u32 %v3484_v43, %v1297_v8  ;;  %v1303_v17 = vadd.s32 %v1297_v8, %v3484_v43 }
 0x117   : > { %v1205_v56 = vsel %vm4093_vm7, %v1204_v52, %v1164_v7  ;;  %v1210_v20 = vsel %vm4094_vm4, %v1209_v27, %v1195_v16  ;;  %v1201_v4 = vadd.f32 %v1200_v53, %v1199_v5  ;;  %v4096_v48 = vmov 0  }
 0x118   : > { %v1206_v30 = vsel %vm4095_vm15, %v1205_v56, %v1169_v18  ;;  %v1302_v45 = vsel %vm1301_vm5, 1, %v4096_v48  ;;  %v4097_v39 = vshrl.u32 %v3452_v33, 16  ;;  %vm1305_vm1 = vc.u32 %v1303_v17, %v1299_v0  ;;  %v4108_v0 = vld [vmem:[#allocation12_spill] sm:$0xff] }
 0x119   : > { %v1207_v10 = vsel %vm4098_vm0, %v1206_v30, %v1174_v40  ;;  %v1304_v34 = vadd.s32 %v1302_v45, %v3505_v22  ;;  %v4099_v35 = vand.u32 65535, %v3452_v33  ;;  %v1211_v44 = vsel %vm4101_vm6, %v1210_v20, %v1201_v4 }
 0x11a   : > { %v1316_v14 = vmul.u32 %v4097_v39, %v3470_v49  ;;  %v1208_v43 = vsel %vm4100_vm3, %v1207_v10, %v1180_v42  ;;  %v1298_v54 = vshrl.u32 %v3487_v47, 16  ;;  %v1306_v58 = vsel %vm1305_vm1, 1, %v4096_v48  ;;  %1213 = vst [vmem:[%s3290_s20 + $0x28] sm:$0xf] %v1211_v44 }
 0x11b   : > { %v1317_v61 = vmul.u32 %v4099_v35, %v3473_v41  ;;  %1212 = vst [vmem:[%s3290_s20 + $0x8] sm:$0xff] %v1208_v43  ;;  %v1308_v7 = vadd.s32 %v1306_v58, %v1304_v34  ;;  %v4102_v49 = vmov %v4097_v39  ;;  %v4103_v11 = vmov 683565275  }
 0x11c   : > { %v1318_v12 = vmul.u32 %v4102_v49, %v3473_v41  ;;  %v1319_v22 = vshll.u32 %v1316_v14, 16  ;;  %v1256_v59 = vshrl.u32 %v4103_v11, %v3322_v6  ;;  %v1722_v63 = vadd.f32 %v3481_v2, %v3467_v51  ;;  %v4104_v51 = vld [vmem:[#allocation13_spill] sm:$0xff] }
 0x11d   : > { %v1321_v26 = vshll.u32 %v1317_v61, 16  ;;  %v1277_v47 = vsel %vm1275_vm10, %v3397_v3, 2102212464  ;;  %v1300_v33 = vshrl.u32 %v3490_v37, 16  ;;  %v1309_v41 = vadd.s32 %v1308_v7, %v1298_v54  ;;  %v4105_v3 = vld [vmem:[#allocation14_spill] sm:$0xff] }
 0x11e   : > { %vm1323_vm12 = vc.u32 %v3514_v1, %v1319_v22  ;;  %v1325_v31 = vadd.s32 %v1319_v22, %v3514_v1  ;;  %v3571_v50 = vadd.f32 %v3492_v9, %v1722_v63  ;;  %v1320_v6 = vshrl.u32 %v1316_v14, 16 }
 0x11f   : > { %v1324_v57 = vsel %vm1323_vm12, 1, %v4096_v48  ;;  %v1276_v2 = vsel %vm1272_vm9, %v1256_v59, %v4104_v51  ;;  %v1278_v19 = vsel %vm1274_vm14, %v4105_v3, %v1277_v47  ;;  %v1322_v37 = vshrl.u32 %v1317_v61, 16 }
 0x120   : > { %v1326_v13 = vadd.s32 %v1324_v57, %v1318_v12  ;;  %vm1327_vm2 = vc.u32 %v1325_v31, %v1321_v26  ;;  %2457 = vrsqrt.f32 %v3571_v50  ;;  %v1310_v32 = vadd.s32 %v1309_v41, %v1300_v33 }
 0x121   : > { %v1328_v1 = vsel %vm1327_vm2, 1, %v4096_v48  ;;  %v1329_v9 = vadd.s32 %v1325_v31, %v1321_v26  ;;  %v1279_v21 = vsel %vm1273_vm13, %v1276_v2, %v1278_v19  ;;  %v1395_v8 = vadd.f32 4.0, %v4107_v29 }
 0x122   : > { %v1330_v15 = vadd.s32 %v1328_v1, %v1326_v13  ;;  %v1333_v18 = vmul.u32 %v4106_v62, %v1279_v21  ;;  %vm1237_vm10 = vcmp.lt.f32.partialorder %v4108_v0, 0.01  ;;  %vm1732_vm14 = vcmp.eq.f32.partialorder %v3571_v50, inf }
 0x123   : > { %vm1335_vm9 = vc.u32 %v1310_v32, %v1329_v9  ;;  %2459 = vrcp.f32 %v1395_v8  ;;  %v3590_v56 = vsel %vm1237_vm10, 1.0, %v4108_v0  ;;  %v1735_v14 = vand.u32 2147483648, %v3571_v50 }
 0x124   : > { %v1331_v60 = vadd.s32 %v1330_v15, %v1320_v6  ;;  %2461 = vrcp.f32 %v3590_v56  ;;  %vm1734_vm11 = vcmp.eq.f32.partialorder %v3571_v50, 0.0  ;;  %v3601_v34 = vsel %vm1237_vm10, 1.0, %v4107_v29 }
 0x125   : > { %v1334_v44 = vadd.s32 %v1329_v9, %v1310_v32  ;;  %vm1401_vm4 = vweird.f32 %v1395_v8  ;;  %2463 = vrcp.f32 %v3601_v34  ;;  %vm1242_vm15 = vcmp.lt.s32.totalorder %v4108_v0, 0 }
 0x126   : > { %v1332_v55 = vadd.s32 %v1331_v60, %v1322_v37  ;;  %v2458_v46 = vpop.eup %2457  ;;  %v1407_v63 = vand.u32 2147483648, %v1395_v8  ;;  %v1405_v57 = vand.u32 2147483647, %v1395_v8  ;;  %v4111_v13 = vand.u32 2147483647, %v4108_v0 }
 0x127   : > { %v1726_v23 = vmul.f32 %v2458_v46, %v3571_v50  ;;  %v1580_v29 = vand.u32 2147483648, %v3590_v56  ;;  %vm1574_vm6 = vweird.f32 %v3590_v56  ;;  %v4117_v41 = vmov 920167782  }
 0x128   : > { %v1336_v25 = vadd.s32 1, %v1332_v55  ;;  %vm3620_vm1 = vcmp.le.f32.partialorder %v4111_v13, 0.7853982  ;;  %v1408_v15 = vor.u32 1.1754944e-38, %v1407_v63  ;;  %vm1406_vm3 = vcmp.eq.f32.partialorder %v1405_v57, 8.507059e+37 }
 0x129   : > { %v1727_v38 = vmul.f32 %v2458_v46, %v1726_v23  ;;  %v2460_v27 = vpop.eup %2459 }
 0x12a   : > { %v1337_v53 = vsel %vm1335_vm9, %v1336_v25, %v1332_v55  ;;  %v1397_v17 = vmul.f32 %v2460_v27, %v1395_v8  ;;  %v3605_v58 = vpop.eup %2461  ;;  %vm1402_vm5 = vweird.f32 %v2460_v27  ;;  %vm1592_vm9 = vweird.f32 %v3601_v34 }
 0x12b   : > { %v1338_v28 = vadd.s32 %v1337_v53, %v1333_v18  ;;  %v1728_v40 = vmul.f32 0.5, %v1727_v38  ;;  %vm3612_vm0 = vmor %vm1401_vm4, %vm1402_vm5  ;;  %v1570_v6 = vmul.f32 %v3605_v58, %v3590_v56  ;;  %v3624_v19 = vpop.eup %2463  ;;  %vm1575_vm12 = vweird.f32 %v3605_v58 }
 0x12c   : > { %v1398_v45 = vsub.f32 1.0, %v1397_v17  ;;  %v1588_v18 = vmul.f32 %v3624_v19, %v3601_v34  ;;  %vm3700_vm4 = vmor %vm1574_vm6, %vm1575_vm12 }
 0x12d   : > { %v1339_v16 = vadd.s32 536870912, %v1338_v28  ;;  %v1729_v36 = vsub.f32 1.5, %v1728_v40  ;;  %v1571_v60 = vsub.f32 1.0, %v1570_v6 }
 0x12e   : > { %v1399_v43 = vmul.f32 %v2460_v27, %v1398_v45 }
 0x12f   : > { %v1340_v24 = vshrl.u32 %v1339_v16, 30  ;;  %v1730_v5 = vmul.f32 %v2458_v46, %v1729_v36  ;;  %v1572_v38 = vmul.f32 %v3605_v58, %v1571_v60 }
 0x130   : > { %v1400_v59 = vadd.f32 %v2460_v27, %v1399_v43 }
 0x131   : > { %v1341_v42 = vshll.u32 %v1340_v24, 30  ;;  %v1731_v4 = vmul.f32 %v1730_v5, %v3571_v50  ;;  %v1364_v61 = vsub.s32 4, %v1340_v24  ;;  %v1578_v5 = vand.u32 2147483647, %v3590_v56 }
 0x132   : > { %v1404_v37 = vsel %vm3612_vm0, %v2460_v27, %v1400_v59  ;;  %v3649_v27 = vadd.f32 %v3605_v58, %v1572_v38  ;;  %v4116_v59 = vmov 2102212464  }
 0x133   : > { %v1342_v52 = vsub.s32 %v1338_v28, %v1341_v42  ;;  %v1733_v10 = vsel %vm1732_vm14, %v3571_v50, %v1731_v4  ;;  %v1365_v26 = vsel %vm1242_vm15, %v1364_v61, %v1340_v24  ;;  %v1409_v25 = vsel %vm1406_vm3, %v1408_v15, %v1404_v37 }
 0x134   : > { %v3603_v54 = vsel %vm1734_vm11, %v1735_v14, %v1733_v10  ;;  %v1367_v1 = vsel %vm3620_vm1, 0, %v1365_v26  ;;  %v3641_v24 = vmul.f32 8.0, %v1409_v25  ;;  %v1589_v42 = vsub.f32 1.0, %v1588_v18 }
 0x135   : > { %vm1343_vm13 = vcmp.lt.s32.totalorder %v1342_v52, 0  ;;  %v1344_v20 = vsub.s32 0, %v1342_v52  ;;  %v1743_v47 = vand.u32 2139095040, %v3603_v54  ;;  %v1740_v55 = vand.u32 2147483647, %v3603_v54 }
 0x136   : > { %v1384_v62 = vadd.s32 3, %v1367_v1  ;;  %v3634_v28 = vand.u32 3, %v1367_v1  ;;  %v1590_v14 = vmul.f32 %v3624_v19, %v1589_v42  ;;  %vm3679_vm14 = vcmp.eq.f32.partialorder %v1578_v5, 8.507059e+37 }
 0x137   : > { %v1345_v30 = vsel %vm1343_vm13, %v1344_v20, %v1342_v52  ;;  %v1744_v32 = vshrl.u32 %v1743_v47, 23  ;;  %v1747_v8 = vand.u32 8388607, %v1740_v55  ;;  %v1598_v20 = vand.u32 2147483648, %v3601_v34 }
 0x138   : > { %v1346_v39 = vclz %v1345_v30  ;;  %v3639_v36 = vand.u32 3, %v1384_v62  ;;  %v3657_v30 = vor.u32 1.1754944e-38, %v1580_v29  ;;  %vm1593_vm13 = vweird.f32 %v3624_v19 }
 0x139   : > { %v2360_v23 = vadd.s32 4294967169, %v1744_v32  ;;  %v1748_v10 = vor.u32 8388608, %v1747_v8  ;;  %v1596_v37 = vand.u32 2147483647, %v3601_v34  ;;  %v1591_v25 = vadd.f32 %v3624_v19, %v1590_v14  ;;  %vm3721_vm8 = vmor %vm1592_vm9, %vm1593_vm13 }
 0x13a   : > { %v2354_v35 = vadd.s32 4294967294, %v1346_v39  ;;  %vm1390_vm11 = vcmp.eq.s32.totalorder %v3639_v36, 2  ;;  %vm1387_vm5 = vcmp.eq.s32.totalorder %v3639_v36, 0  ;;  %vm1386_vm3 = vcmp.lt.s32.totalorder %v3639_v36, 2 }
 0x13b   : > { %v1750_v40 = vadd.s32 1, %v2360_v23  ;;  %v1577_v56 = vsel %vm3700_vm4, %v3605_v58, %v3649_v27  ;;  %v1599_v8 = vor.u32 1.1754944e-38, %v1598_v20  ;;  %vm3731_vm4 = vcmp.eq.f32.partialorder %v1596_v37, 8.507059e+37 }
 0x13c   : > { %vm2355_vm7 = vcmp.lt.s32.totalorder %v2354_v35, 0  ;;  %v1595_v14 = vsel %vm3721_vm8, %v3624_v19, %v1591_v25  ;;  %vm1557_vm8 = vcmp.lt.s32.totalorder %v3634_v28, 2  ;;  %v1582_v19 = vsel %vm3679_vm14, %v3657_v30, %v1577_v56 }
 0x13d   : > { %v1349_v7 = vsel %vm2355_vm7, 0, %v2354_v35  ;;  %vm1751_vm2 = vcmp.gt.s32.totalorder %v1750_v40, 0  ;;  %vm1561_vm7 = vcmp.eq.s32.totalorder %v3634_v28, 2 }
 0x13e   : > { %v1350_v49 = vsub.s32 32, %v1349_v7  ;;  %v1351_v12 = vshll.u32 %v1342_v52, %v1349_v7  ;;  %v1354_v22 = vsub.s32 4294967266, %v1349_v7  ;;  %v1752_v17 = vsel %vm1751_vm2, %v1750_v40, 0 }
 0x13f   : > { %v1754_v45 = vand.u32 31, %v1752_v17  ;;  %v3664_v35 = vshrl.u32 %v1752_v17, 5  ;;  %vm1383_vm2 = vweird.f32 %v4108_v0 }
 0x140   : > { %v1352_v31 = vshrl.u32 %v1334_v44, %v1350_v49  ;;  %v1355_v33 = vadd.s32 127, %v1354_v22  ;;  %v4114_v44 = vmov 2475754826   ;;  %v4115_v22 = vmov 2131351028  }
 0x141   : > { %v3666_v61 = vsub.s32 32, %v1754_v45  ;;  %v1757_v43 = vshll.u32 %v4103_v11, %v1754_v45  ;;  %v1760_v7 = vshll.u32 %v4114_v44, %v1754_v45  ;;  %v1763_v26 = vshll.u32 %v4115_v22, %v1754_v45 }
 0x142   : > { %v1353_v2 = vor.u32 %v1352_v31, %v1351_v12  ;;  %v1356_v3 = vshll.u32 %v1355_v33, 23  ;;  %v1766_v63 = vshll.u32 %v4116_v59, %v1754_v45  ;;  %v1769_v57 = vshll.u32 %v4117_v41, %v1754_v45 }
 0x143   : > { %v1758_v47 = vshrl.u32 %v4114_v44, %v3666_v61  ;;  %v1761_v31 = vshrl.u32 %v4115_v22, %v3666_v61  ;;  %v1764_v33 = vshrl.u32 %v4116_v59, %v3666_v61  ;;  %vm1772_vm0 = vcmp.lt.s32.totalorder %v3664_v35, 1 }
 0x144   : > { %v1357_v9 = vor.u32 4788187, %v1356_v3  ;;  %v1360_v21 = vcvt.s32.f32 %v1353_v2  ;;  %v1767_v2 = vshrl.u32 %v4117_v41, %v3666_v61  ;;  %v4120_v3 = vmov 1326507024  }
 0x145   : > { %v1770_v1 = vshrl.u32 %v4120_v3, %v3666_v61  ;;  %v3690_v15 = vor.u32 %v1758_v47, %v1757_v43  ;;  %v3692_v32 = vor.u32 %v1761_v31, %v1760_v7  ;;  %v1765_v62 = vor.u32 %v1764_v33, %v1763_v26 }
 0x146   : > { %v1358_v46 = vand.u32 2147483647, %v1357_v9  ;;  %v3694_v9 = vshll.u32 %v1748_v10, 8  ;;  %v1768_v18 = vor.u32 %v1767_v2, %v1766_v63  ;;  %vm1774_vm6 = vcmp.lt.s32.totalorder %v3664_v35, 3 }
 0x147   : > { %v1771_v23 = vor.u32 %v1770_v1, %v1769_v57  ;;  %vm1775_vm12 = vcmp.lt.s32.totalorder %v3664_v35, 4  ;;  %v1780_v40 = vsel %vm1772_vm0, %v3690_v15, %v3692_v32  ;;  %v1784_v27 = vsel %vm1772_vm0, %v3692_v32, %v1765_v62 }
 0x148   : > { %v1361_v53 = vmul.f32 %v1360_v21, %v1358_v46  ;;  %v1789_v17 = vand.u32 65535, %v3694_v9  ;;  %v1790_v44 = vshrl.u32 %v3694_v9, 16  ;;  %v2356_v63 = vadd.f32 -1.0, %v3641_v24 }
 0x149   : > { %v1785_v20 = vsel %vm1775_vm12, %v1771_v23, 1326507024  ;;  %v1600_v47 = vsel %vm3731_vm4, %v1599_v8, %v1595_v14  ;;  %v1756_v41 = vshrl.u32 %v4103_v11, %v3666_v61  ;;  %v1777_v2 = vsel %vm1775_vm12, %v1765_v62, 2102212464 }
 0x14a   : > { %v1362_v16 = vxor.u32 2147483648, %v1361_v53  ;;  %v1786_v10 = vsel %vm1774_vm6, %v1768_v18, %v1785_v20 }
 0x14b   : > { %v1776_v56 = vsel %vm1772_vm0, %v1756_v41, %v3690_v15  ;;  %vm4131_vm0 = vcmask 1043456  }
 0x14c   : > { %v1363_v52 = vsel %vm1242_vm15, %v1362_v16, %v1361_v53  ;;  %vm1558_vm15 = vcmp.eq.s32.totalorder %v3634_v28, 0  ;;  %v1781_v16 = vsel %vm1775_vm12, %v1768_v18, 920167782  ;;  %vm4134_vm12 = vcmask 1045504  }
 0x14d   : > { %v3655_v4 = vsel %vm3620_vm1, %v4108_v0, %v1363_v52  ;;  %vm1773_vm1 = vcmp.lt.s32.totalorder %v3664_v35, 2  ;;  %v1782_v34 = vsel %vm1774_vm6, %v1765_v62, %v1781_v16  ;;  %v2476_v35 = vld [vmem:[%s2755_s17 + $0x13] ss:$0 sm:$0xff] }
 0x14e   : > { %v1368_v39 = vmul.f32 %v3655_v4, %v3655_v4  ;;  %v3739_v52 = vsel %vm1773_vm1, %v1780_v40, %v1782_v34  ;;  %v1787_v43 = vsel %vm1773_vm1, %v1784_v27, %v1786_v10  ;;  %v1778_v40 = vsel %vm1774_vm6, %v3692_v32, %v1777_v2  ;;  %v2474_v10 = vld [vmem:[%s2755_s17 + $0x14] ss:$0 sm:$0xff] }
 0x14f   : > { %v1813_v7 = vand.u32 65535, %v3739_v52  ;;  %v1791_v26 = vand.u32 65535, %v1787_v43  ;;  %v1792_v59 = vshrl.u32 %v1787_v43, 16  ;;  %v3812_v20 = vsel %vm1773_vm1, %v1776_v56, %v1778_v40  ;;  %v3828_v2 = vld [vmem:[%s2765_s6 + $0x14] ss:$0 sm:$0xff] }
 0x150   : > { %v1369_v49 = vmul.f32 -0.001358992, %v1368_v39  ;;  %v1376_v12 = vmul.f32 -0.00019511016, %v1368_v39  ;;  %v1637_v40 = vld [vmem:[%s2765_s6 + $0x32] ss:$0 sm:$0xff] }
 0x151   : > { %v1793_v24 = vmul.u32 %v1791_v26, %v1789_v17  ;;  %v1794_v57 = vmul.u32 %v1792_v59, %v1789_v17  ;;  %v1815_v3 = vmul.u32 %v1813_v7, %v1789_v17  ;;  %v1796_v61 = vmul.u32 %v1792_v59, %v1790_v44 }
 0x152   : > { %v1370_v6 = vadd.f32 0.041655596, %v1369_v49  ;;  %v1377_v13 = vadd.f32 0.008332121, %v1376_v12  ;;  %v1814_v49 = vshrl.u32 %v3739_v52, 16  ;;  %v3790_v18 = vmul.u32 %v1813_v7, %v1790_v44 }
 0x153   : > { %v1797_v37 = vshll.u32 %v1794_v57, 16  ;;  %v1798_v15 = vshrl.u32 %v1794_v57, 16  ;;  %v2475_v7 = vld [vmem:[%s2755_s17 + $0x15] ss:$0 sm:$0xff]  ;;  %vm4133_vm6 = vcmask 1044480  }
 0x154   : > { %v1371_v21 = vmul.f32 %v1370_v6, %v1368_v39  ;;  %v1378_v60 = vmul.f32 %v1377_v13, %v1368_v39  ;;  %v3771_v6 = vmul.u32 %v1791_v26, %v1790_v44  ;;  %v3773_v13 = vmul.u32 %v1814_v49, %v1789_v17 }
 0x155   : > { %vm1801_vm9 = vc.u32 %v1793_v24, %v1797_v37  ;;  %v1803_v36 = vadd.s32 %v1797_v37, %v1793_v24  ;;  %v1818_v32 = vmul.u32 %v1814_v49, %v1790_v44  ;;  %v1632_v37 = vld [vmem:[%s2765_s6 + $0x15] ss:$0 sm:$0xff] }
 0x156   : > { %v1372_v53 = vadd.f32 -0.4999988, %v1371_v21  ;;  %v1379_v38 = vadd.f32 -0.16666654, %v1378_v60  ;;  %v1799_v46 = vshll.u32 %v3771_v6, 16  ;;  %v1819_v28 = vshll.u32 %v3773_v13, 16 }
 0x157   : > { %v1800_v17 = vshrl.u32 %v3771_v6, 16 }
 0x158   : > { %v1373_v42 = vmul.f32 %v1372_v53, %v1368_v39  ;;  %v1380_v5 = vmul.f32 %v1379_v38, %v1368_v39  ;;  %v1802_v38 = vsel %vm1801_vm9, 1, %v4096_v48  ;;  %vm1805_vm13 = vc.u32 %v1803_v36, %v1799_v46 }
 0x159   : > { %v1804_v29 = vadd.s32 %v1802_v38, %v1796_v61  ;;  %v1806_v16 = vsel %vm1805_vm13, 1, %v4096_v48  ;;  %vm1823_vm14 = vc.u32 %v1815_v3, %v1819_v28  ;;  %v1825_v58 = vadd.s32 %v1819_v28, %v1815_v3  ;;  %v3833_v61 = vld [vmem:[%s2765_s6 + $0x12] ss:$0 sm:$0xff]  ;;  %v1633_v28 = vld [vmem:[%s2765_s6 + $0x16] ss:$0 sm:$0xff] }
 0x15a   : > { %v1374_v45 = vadd.f32 1.0, %v1373_v42  ;;  %v1381_v39 = vadd.f32 1.0, %v1380_v5  ;;  %v1821_v42 = vshll.u32 %v3790_v18, 16  ;;  %vm1737_vm13 = vcmp.lt.f32.partialorder %v3603_v54, 0.01 }
 0x15b   : > { %v1808_v52 = vadd.s32 %v1806_v16, %v1804_v29  ;;  %v1630_v29 = vld [vmem:[%s2765_s6 + $0x13] ss:$0 sm:$0xff] }
 0x15c   : > { %v1382_v12 = vmul.f32 %v1381_v39, %v3655_v4  ;;  %v1391_v22 = vxor.u32 2147483648, %v1374_v45  ;;  %v1824_v39 = vsel %vm1823_vm14, 1, %v4096_v48  ;;  %v3824_v0 = vadd.s32 %v1825_v58, %v1821_v42 }
 0x15d   : > { %v1809_v59 = vadd.s32 %v1808_v52, %v1798_v15  ;;  %v1214_v52 = vld [vmem:[%s2755_s17 + $0x10] ss:$0 sm:$0xff]  ;;  %vm1742_vm14 = vcmp.lt.s32.totalorder %v3603_v54, 0 }
 0x15e   : > { %v1388_v31 = vxor.u32 2147483648, %v1382_v12  ;;  %v1392_v33 = vsel %vm1390_vm11, %v1391_v22, %v1382_v12  ;;  %v1563_v4 = vsel %vm1561_vm7, %v1391_v22, %v1382_v12  ;;  %vm1827_vm11 = vc.u32 %v1825_v58, %v1821_v42 }
 0x15f   : > { %v1822_v22 = vshrl.u32 %v3790_v18, 16  ;;  %vm4128_vm7 = vcmask 1041408  }
 0x160   : > { %v1389_v30 = vsel %vm1387_vm5, %v1374_v45, %v1388_v31  ;;  %v1560_v51 = vsel %vm1558_vm15, %v1374_v45, %v1388_v31  ;;  %v1820_v45 = vshrl.u32 %v3773_v13, 16  ;;  %vm4129_vm5 = vcmask 1042432   ;;  %vm4132_vm1 = vmmov %vm4128_vm7 }
 0x161   : > { %v1393_v1 = vsel %vm1386_vm3, %v1389_v30, %v1392_v33  ;;  %v1564_v11 = vsel %vm1557_vm8, %v1560_v51, %v1563_v4  ;;  %v1627_v51 = vld [vmem:[%s2765_s6 + $0x10] ss:$0 sm:$0xff]  ;;  %vm4136_vm4 = vmmov %vm4129_vm5 }
 0x162   : > { %v1394_v21 = vsel %vm1383_vm2, nan, %v1393_v1  ;;  %v1565_v60 = vsel %vm1383_vm2, nan, %v1564_v11  ;;  %v1628_v11 = vld [vmem:[%s2765_s6 + $0x11] ss:$0 sm:$0xff]  ;;  %vm4135_vm2 = vcmask 1046528  }
 0x163   : > { %v3794_v62 = vsel %vm1237_vm10, %v2356_v63, %v1565_v60  ;;  %v1583_v23 = vmul.f32 %v1582_v19, %v1394_v21  ;;  %v1826_v19 = vadd.s32 %v1824_v39, %v1818_v32  ;;  %v3836_v21 = vadd.s32 %v1809_v59, %v1800_v17 }
 0x164   : > { %v1567_v25 = vmul.f32 0.5, %v3794_v62  ;;  %v1586_v53 = vsub.f32 1.0, %v3794_v62 }
 0x165   : > { %vm1835_vm3 = vc.u32 %v3836_v21, %v3824_v0 }
 0x166   : > { %v1568_v8 = vadd.f32 0.5, %v1567_v25  ;;  %v1601_v5 = vmul.f32 %v1600_v47, %v1586_v53  ;;  %v1828_v47 = vsel %vm1827_vm11, 1, %v4096_v48  ;;  %v1635_v25 = vld [vmem:[%s2765_s6 + $0x30] ss:$0 sm:$0xff]  ;;  %vm1741_vm11 = vcmp.le.f32.partialorder %v1740_v55, 0.7853982 }
 0x167   : > { %v3842_v53 = vadd.s32 %v1828_v47, %v1826_v19 }
 0x168   : > { %v1584_v34 = vsel %vm1237_vm10, %v1568_v8, %v1583_v23  ;;  %v1636_v23 = vld [vmem:[%s2765_s6 + $0x31] ss:$0 sm:$0xff]  ;;  %v1634_v8 = vld [vmem:[%s2765_s6 + $0x17] ss:$0 sm:$0xff] }
 0x169   : > { %v1585_v27 = vmul.f32 0.5, %v1584_v34  ;;  %v1607_v43 = vmul.f32 %v2474_v10, %v1584_v34  ;;  %v1608_v12 = vmul.f32 %v2475_v7, %v1584_v34  ;;  %v1606_v63 = vmul.f32 %v2476_v35, %v1584_v34 }
 0x16b   : > { %v1602_v14 = vsel %vm1237_vm10, %v1585_v27, %v1601_v5  ;;  %v1638_v27 = vld [vmem:[%s2765_s6 + $0x33] ss:$0 sm:$0xff]  ;;  %vm4127_vm10 = vcmask 1040384  }
 0x16c   : > { %v1603_v26 = vmul.f32 %v2476_v35, %v1602_v14  ;;  %v1604_v44 = vmul.f32 %v2474_v10, %v1602_v14  ;;  %v1605_v49 = vmul.f32 %v2475_v7, %v1602_v14  ;;  %vm4130_vm15 = vmmov %vm4127_vm10 }
 0x16e   : > { %v1609_v31 = vmul.f32 %v2476_v35, %v1603_v26  ;;  %v1611_v33 = vmul.f32 %v2474_v10, %v1603_v26  ;;  %v1613_v4 = vmul.f32 %v2475_v7, %v1603_v26  ;;  %v1615_v41 = vmul.f32 %v2476_v35, %v1604_v44 }
 0x16f   : > { %v1617_v24 = vmul.f32 %v2474_v10, %v1604_v44  ;;  %v1619_v57 = vmul.f32 %v2475_v7, %v1604_v44  ;;  %v1621_v6 = vmul.f32 %v2476_v35, %v1605_v49  ;;  %v1623_v30 = vmul.f32 %v2474_v10, %v1605_v49 }
 0x170   : > { %v1610_v48 = vadd.f32 %v1609_v31, %v3794_v62  ;;  %v1612_v3 = vsub.f32 %v1611_v33, %v1608_v12  ;;  %v1614_v1 = vadd.f32 %v1613_v4, %v1607_v43  ;;  %v1616_v60 = vadd.f32 %v1615_v41, %v1608_v12 }
 0x171   : > { %v1618_v46 = vadd.f32 %v1617_v24, %v3794_v62  ;;  %v1620_v36 = vsub.f32 %v1619_v57, %v1606_v63  ;;  %v1622_v38 = vsub.f32 %v1621_v6, %v1607_v43  ;;  %v1625_v56 = vmul.f32 %v2475_v7, %v1605_v49  ;;  %v1215_v24 = vld [vmem:[%s2755_s17 + $0x11] ss:$0 sm:$0xff] }
 0x172   : > { %v1639_v16 = vmul.f32 %v1627_v51, %v1610_v48  ;;  %v1640_v42 = vmul.f32 %v3828_v2, %v1612_v3  ;;  %v1624_v5 = vadd.f32 %v1623_v30, %v1606_v63  ;;  %v1644_v58 = vmul.f32 %v1628_v11, %v1610_v48 }
 0x173   : > { %v1645_v34 = vmul.f32 %v1632_v37, %v1612_v3  ;;  %v1649_v15 = vmul.f32 %v3833_v61, %v1610_v48  ;;  %v1642_v17 = vmul.f32 %v1635_v25, %v1614_v1  ;;  %v1647_v39 = vmul.f32 %v1636_v23, %v1614_v1 }
 0x174   : > { %v1641_v32 = vadd.f32 %v1640_v42, %v1639_v16  ;;  %v1650_v14 = vmul.f32 %v1633_v28, %v1612_v3  ;;  %v1652_v43 = vmul.f32 %v1637_v40, %v1614_v1  ;;  %v1654_v7 = vmul.f32 %v1630_v29, %v1610_v48 }
 0x175   : > { %v1646_v10 = vadd.f32 %v1645_v34, %v1644_v58  ;;  %v1656_v12 = vmul.f32 %v1634_v8, %v1612_v3  ;;  %v1626_v35 = vadd.f32 %v1625_v56, %v3794_v62  ;;  %v1660_v44 = vmul.f32 %v1627_v51, %v1616_v60 }
 0x176   : > { %v1651_v26 = vadd.f32 %v1650_v14, %v1649_v15  ;;  %v1661_v49 = vmul.f32 %v3828_v2, %v1618_v46  ;;  %v1655_v59 = vadd.f32 %v1654_v7, %v1214_v52  ;;  %v1658_v63 = vmul.f32 %v1638_v27, %v1614_v1  ;;  %v1216_v7 = vld [vmem:[%s2755_s17 + $0x12] ss:$0 sm:$0xff] }
 0x177   : > { %v1663_v19 = vmul.f32 %v1635_v25, %v1620_v36  ;;  %v1665_v47 = vmul.f32 %v1628_v11, %v1616_v60  ;;  %v1643_v31 = vadd.f32 %v1642_v17, %v1641_v32  ;;  %v1648_v33 = vadd.f32 %v1647_v39, %v1646_v10 }
 0x178   : > { %v1662_v4 = vadd.f32 %v1661_v49, %v1660_v44  ;;  %v1666_v41 = vmul.f32 %v1632_v37, %v1618_v46  ;;  %v1653_v57 = vadd.f32 %v1652_v43, %v1651_v26  ;;  %v1657_v6 = vadd.f32 %v1656_v12, %v1655_v59 }
 0x179   : > { %v1670_v30 = vmul.f32 %v3833_v61, %v1616_v60  ;;  %v1671_v48 = vmul.f32 %v1633_v28, %v1618_v46  ;;  %v1668_v3 = vmul.f32 %v1636_v23, %v1620_v36  ;;  %v1673_v62 = vmul.f32 %v1637_v40, %v1620_v36 }
 0x17a   : > { %v1675_v56 = vmul.f32 %v1630_v29, %v1616_v60  ;;  %v1677_v16 = vmul.f32 %v1634_v8, %v1618_v46  ;;  %v1659_v42 = vadd.f32 %v1658_v63, %v1657_v6  ;;  %v1664_v58 = vadd.f32 %v1663_v19, %v1662_v4 }
 0x17b   : > { %v1667_v1 = vadd.f32 %v1666_v41, %v1665_v47  ;;  %v1681_v34 = vmul.f32 %v1627_v51, %v1622_v38  ;;  %v1672_v15 = vadd.f32 %v1671_v48, %v1670_v30  ;;  %v1682_v32 = vmul.f32 %v3828_v2, %v1624_v5 }
 0x17c   : > { %v1676_v52 = vadd.f32 %v1675_v56, %v1215_v24  ;;  %v1684_v17 = vmul.f32 %v1635_v25, %v1626_v35  ;;  %v1679_v39 = vmul.f32 %v1638_v27, %v1620_v36  ;;  %v1686_v14 = vmul.f32 %v1628_v11, %v1622_v38 }
 0x17d   : > { %v1687_v10 = vmul.f32 %v1632_v37, %v1624_v5  ;;  %v1689_v43 = vmul.f32 %v1636_v23, %v1626_v35  ;;  %v1683_v26 = vadd.f32 %v1682_v32, %v1681_v34  ;;  %v1691_v44 = vmul.f32 %v3833_v61, %v1622_v38 }
 0x17e   : > { %v1678_v12 = vadd.f32 %v1677_v16, %v1676_v52  ;;  %v1692_v60 = vmul.f32 %v1633_v28, %v1624_v5  ;;  %v1694_v49 = vmul.f32 %v1637_v40, %v1626_v35  ;;  %v1696_v59 = vmul.f32 %v1630_v29, %v1622_v38 }
 0x17f   : > { %v1688_v46 = vadd.f32 %v1687_v10, %v1686_v14  ;;  %v1698_v63 = vmul.f32 %v1634_v8, %v1624_v5  ;;  %v1669_v51 = vadd.f32 %v1668_v3, %v1667_v1  ;;  %v1685_v19 = vadd.f32 %v1684_v17, %v1683_v26 }
 0x180   : > { %v1693_v47 = vadd.f32 %v1692_v60, %v1691_v44  ;;  %v1700_v4 = vmul.f32 %v1638_v27, %v1626_v35  ;;  %v1697_v25 = vadd.f32 %v1696_v59, %v1216_v7  ;;  %v1702_v11 = vsel %vm4127_vm10, %v1643_v31, %v1648_v33 }
 0x181   : > { %v1690_v2 = vadd.f32 %v1689_v43, %v1688_v46  ;;  %v1831_v37 = vadd.s32 %v3842_v53, %v1820_v45  ;;  %v1674_v36 = vadd.f32 %v1673_v62, %v1672_v15  ;;  %v1680_v23 = vadd.f32 %v1679_v39, %v1678_v12 }
 0x182   : > { %v1695_v61 = vadd.f32 %v1694_v49, %v1693_v47  ;;  %v1703_v28 = vsel %vm4128_vm7, %v1702_v11, %v1653_v57  ;;  %v1699_v38 = vadd.f32 %v1698_v63, %v1697_v25  ;;  %v1833_v45 = vmul.u32 %v3694_v9, %v3812_v20 }
 0x183   : > { %v1704_v29 = vsel %vm4129_vm5, %v1703_v28, %v1659_v42  ;;  %v1709_v8 = vsel %vm4130_vm15, %v1685_v19, %v1690_v2  ;;  %v1832_v40 = vadd.s32 %v1831_v37, %v1822_v22  ;;  %v1895_v30 = vadd.f32 4.0, %v3571_v50 }
 0x184   : > { %v1705_v5 = vsel %vm4131_vm0, %v1704_v29, %v1664_v58  ;;  %v1710_v13 = vsel %vm4132_vm1, %v1709_v8, %v1695_v61  ;;  %v1701_v53 = vadd.f32 %v1700_v4, %v1699_v38  ;;  %v1834_v56 = vadd.s32 %v3824_v0, %v3836_v21 }
 0x185   : > { %v1706_v27 = vsel %vm4133_vm6, %v1705_v5, %v1669_v51  ;;  %v1836_v35 = vadd.s32 1, %v1832_v40  ;;  %2465 = vrcp.f32 %v1895_v30  ;;  %v3886_v32 = vsel %vm1737_vm13, 1.0, %v3603_v54 }
 0x186   : > { %v1707_v31 = vsel %vm4134_vm12, %v1706_v27, %v1674_v36  ;;  %v1711_v18 = vsel %vm4136_vm4, %v1710_v13, %v1701_v53  ;;  %2467 = vrcp.f32 %v3886_v32  ;;  %v3892_v21 = vsel %vm1737_vm13, 1.0, %v3571_v50 }
 0x187   : > { %v1708_v33 = vsel %vm4135_vm2, %v1707_v31, %v1680_v23  ;;  %v1837_v22 = vsel %vm1835_vm3, %v1836_v35, %v1832_v40  ;;  %1713 = vst [vmem:[%s3290_s20 + $0x30] sm:$0xf] %v1711_v18  ;;  %2469 = vrcp.f32 %v3892_v21  ;;  %vm1901_vm10 = vweird.f32 %v1895_v30 }
 0x188   : > { %1712 = vst [vmem:[%s3290_s20 + $0x10] sm:$0xff] %v1708_v33  ;;  %v1838_v41 = vadd.s32 %v1837_v22, %v1833_v45  ;;  %v1907_v2 = vand.u32 2147483648, %v1895_v30  ;;  %v1905_v37 = vand.u32 2147483647, %v1895_v30  ;;  %vm2074_vm0 = vweird.f32 %v3886_v32 }
 0x18a   : > { %v1839_v24 = vadd.s32 536870912, %v1838_v41  ;;  %v1908_v8 = vor.u32 1.1754944e-38, %v1907_v2  ;;  %vm1906_vm15 = vcmp.eq.f32.partialorder %v1905_v37, 8.507059e+37  ;;  %v2479_v37 = vld [vmem:[%s2755_s17 + $0x1d] ss:$0 sm:$0xff] }
 0x18b   : > { %v2466_v34 = vpop.eup %2465 }
 0x18c   : > { %v1840_v57 = vshrl.u32 %v1839_v24, 30  ;;  %v1897_v14 = vmul.f32 %v2466_v34, %v1895_v30  ;;  %v3896_v44 = vpop.eup %2467  ;;  %vm1902_vm7 = vweird.f32 %v2466_v34 }
 0x18d   : > { %v2070_v63 = vmul.f32 %v3896_v44, %v3886_v32  ;;  %v3903_v51 = vpop.eup %2469  ;;  %vm3905_vm5 = vmor %vm1901_vm10, %vm1902_vm7  ;;  %vm2075_vm1 = vweird.f32 %v3896_v44 }
 0x18e   : > { %v1841_v9 = vshll.u32 %v1840_v57, 30  ;;  %v1898_v7 = vsub.f32 1.0, %v1897_v14  ;;  %v1864_v26 = vsub.s32 4, %v1840_v57  ;;  %v2088_v23 = vmul.f32 %v3903_v51, %v3892_v21  ;;  %vm3920_vm4 = vmor %vm2074_vm0, %vm2075_vm1 }
 0x18f   : > { %v2071_v36 = vsub.f32 1.0, %v2070_v63  ;;  %vm4144_vm0 = vcmask 1041408   ;;  %vm4145_vm1 = vcmask 1042432  }
 0x190   : > { %v1842_v20 = vsub.s32 %v1838_v41, %v1841_v9  ;;  %v1899_v46 = vmul.f32 %v2466_v34, %v1898_v7  ;;  %v1865_v59 = vsel %vm1742_vm14, %v1864_v26, %v1840_v57  ;;  %v2089_v53 = vsub.f32 1.0, %v2088_v23 }
 0x191   : > { %v1867_v47 = vsel %vm1741_vm11, 0, %v1865_v59  ;;  %v2072_v45 = vmul.f32 %v3896_v44, %v2071_v36  ;;  %v2080_v41 = vand.u32 2147483648, %v3886_v32  ;;  %v2078_v57 = vand.u32 2147483647, %v3886_v32 }
 0x192   : > { %vm1843_vm8 = vcmp.lt.s32.totalorder %v1842_v20, 0  ;;  %v1844_v6 = vsub.s32 0, %v1842_v20  ;;  %v1900_v4 = vadd.f32 %v2466_v34, %v1899_v46  ;;  %v1884_v38 = vadd.s32 3, %v1867_v47 }
 0x193   : > { %v2056_v13 = vand.u32 3, %v1867_v47  ;;  %v2073_v24 = vadd.f32 %v3896_v44, %v2072_v45  ;;  %v2090_v9 = vmul.f32 %v3903_v51, %v2089_v53  ;;  %v2131_v45 = vld [vmem:[%s2765_s6 + $0x1c] ss:$0 sm:$0xff] }
 0x194   : > { %v1845_v48 = vsel %vm1843_vm8, %v1844_v6, %v1842_v20  ;;  %v1904_v29 = vsel %vm3905_vm5, %v2466_v34, %v1900_v4  ;;  %v1885_v31 = vand.u32 3, %v1884_v38  ;;  %vm1883_vm5 = vweird.f32 %v3603_v54  ;;  %v2477_v4 = vld [vmem:[%s2755_s17 + $0x1c] ss:$0 sm:$0xff] }
 0x195   : > { %v1846_v3 = vclz %v1845_v48  ;;  %v1909_v33 = vsel %vm1906_vm15, %v1908_v8, %v1904_v29  ;;  %vm2058_vm3 = vcmp.eq.s32.totalorder %v2056_v13, 0  ;;  %vm2061_vm6 = vcmp.eq.s32.totalorder %v2056_v13, 2 }
 0x196   : > { %vm1886_vm12 = vcmp.lt.s32.totalorder %v1885_v31, 2  ;;  %vm1887_vm2 = vcmp.eq.s32.totalorder %v1885_v31, 0  ;;  %vm1890_vm8 = vcmp.eq.s32.totalorder %v1885_v31, 2  ;;  %v1910_v48 = vmul.f32 8.0, %v1909_v33  ;;  %v2128_v31 = vld [vmem:[%s2765_s6 + $0x19] ss:$0 sm:$0xff] }
 0x197   : > { %v2361_v62 = vadd.s32 4294967294, %v1846_v3  ;;  %vm2057_vm10 = vcmp.lt.s32.totalorder %v2056_v13, 2  ;;  %v2127_v13 = vld [vmem:[%s2765_s6 + $0x18] ss:$0 sm:$0xff]  ;;  %v3962_v33 = vld [vmem:[%s2765_s6 + $0x1a] ss:$0 sm:$0xff] }
 0x199   : > { %vm2362_vm9 = vcmp.lt.s32.totalorder %v2361_v62, 0 }
 0x19a   : > { %v1849_v16 = vsel %vm2362_vm9, 0, %v2361_v62  ;;  %vm2092_vm9 = vweird.f32 %v3892_v21 }
 0x19b   : > { %v1850_v42 = vsub.s32 32, %v1849_v16  ;;  %v1851_v58 = vshll.u32 %v1842_v20, %v1849_v16  ;;  %v1854_v1 = vsub.s32 4294967266, %v1849_v16  ;;  %v2098_v16 = vand.u32 2147483648, %v3892_v21 }
 0x19d   : > { %v1852_v15 = vshrl.u32 %v1834_v56, %v1850_v42  ;;  %v1855_v52 = vadd.s32 127, %v1854_v1  ;;  %v2081_v56 = vor.u32 1.1754944e-38, %v2080_v41  ;;  %v2077_v42 = vsel %vm3920_vm4, %v3896_v44, %v2073_v24 }
 0x19e   : > { %v2096_v1 = vand.u32 2147483647, %v3892_v21  ;;  %vm4150_vm4 = vcmask 1045504  }
 0x19f   : > { %v1853_v17 = vor.u32 %v1852_v15, %v1851_v58  ;;  %v1856_v39 = vshll.u32 %v1855_v52, 23  ;;  %v2091_v58 = vadd.f32 %v3903_v51, %v2090_v9  ;;  %v2135_v9 = vld [vmem:[%s2765_s6 + $0x38] ss:$0 sm:$0xff] }
 0x1a0   : > { %vm2097_vm15 = vcmp.eq.f32.partialorder %v2096_v1, 8.507059e+37 }
 0x1a1   : > { %v1857_v10 = vor.u32 4788187, %v1856_v39  ;;  %v1860_v0 = vcvt.s32.f32 %v1853_v17  ;;  %v2363_v17 = vadd.f32 -1.0, %v1910_v48  ;;  %v2130_v48 = vld [vmem:[%s2765_s6 + $0x1b] ss:$0 sm:$0xff] }
 0x1a3   : > { %v1858_v43 = vand.u32 2147483647, %v1857_v10 }
 0x1a5   : > { %v1861_v12 = vmul.f32 %v1860_v0, %v1858_v43  ;;  %v2099_v0 = vor.u32 1.1754944e-38, %v2098_v16 }
 0x1a7   : > { %v1862_v60 = vxor.u32 2147483648, %v1861_v12 }
 0x1a9   : > { %v1863_v49 = vsel %vm1742_vm14, %v1862_v60, %v1861_v12  ;;  %vm2093_vm14 = vweird.f32 %v3903_v51 }
 0x1aa   : > { %v1866_v50 = vsel %vm1741_vm11, %v3603_v54, %v1863_v49  ;;  %vm2079_vm11 = vcmp.eq.f32.partialorder %v2078_v57, 8.507059e+37  ;;  %vm3933_vm7 = vmor %vm2092_vm9, %vm2093_vm14  ;;  %v2133_v57 = vld [vmem:[%s2765_s6 + $0x1e] ss:$0 sm:$0xff] }
 0x1ab   : > { %v1868_v19 = vmul.f32 %v1866_v50, %v1866_v50  ;;  %v2082_v10 = vsel %vm2079_vm11, %v2081_v56, %v2077_v42  ;;  %v2095_v7 = vsel %vm3933_vm7, %v3903_v51, %v2091_v58  ;;  %vm4152_vm9 = vmmov %vm4145_vm1 }
 0x1ac   : > { %v2100_v59 = vsel %vm2097_vm15, %v2099_v0, %v2095_v7 }
 0x1ad   : > { %v1869_v25 = vmul.f32 -0.001358992, %v1868_v19  ;;  %v1876_v11 = vmul.f32 -0.00019511016, %v1868_v19 }
 0x1af   : > { %v1870_v61 = vadd.f32 0.041655596, %v1869_v25  ;;  %v1877_v28 = vadd.f32 0.008332121, %v1876_v11  ;;  %v2478_v25 = vld [vmem:[%s2755_s17 + $0x1b] ss:$0 sm:$0xff] }
 0x1b1   : > { %v1871_v40 = vmul.f32 %v1870_v61, %v1868_v19  ;;  %v1878_v5 = vmul.f32 %v1877_v28, %v1868_v19 }
 0x1b3   : > { %v1872_v27 = vadd.f32 -0.4999988, %v1871_v40  ;;  %v1879_v35 = vadd.f32 -0.16666654, %v1878_v5 }
 0x1b5   : > { %v1873_v18 = vmul.f32 %v1872_v27, %v1868_v19  ;;  %v1880_v22 = vmul.f32 %v1879_v35, %v1868_v19 }
 0x1b7   : > { %v1874_v20 = vadd.f32 1.0, %v1873_v18  ;;  %v1881_v6 = vadd.f32 1.0, %v1880_v22  ;;  %v2132_v18 = vld [vmem:[%s2765_s6 + $0x1d] ss:$0 sm:$0xff] }
 0x1b9   : > { %v1882_v3 = vmul.f32 %v1881_v6, %v1866_v50  ;;  %v1891_v62 = vxor.u32 2147483648, %v1874_v20 }
 0x1bb   : > { %v1888_v34 = vxor.u32 2147483648, %v1882_v3  ;;  %v1892_v15 = vsel %vm1890_vm8, %v1891_v62, %v1882_v3  ;;  %v2063_v52 = vsel %vm2061_vm6, %v1891_v62, %v1882_v3  ;;  %v2134_v3 = vld [vmem:[%s2765_s6 + $0x1f] ss:$0 sm:$0xff]  ;;  %v2137_v62 = vld [vmem:[%s2765_s6 + $0x3a] ss:$0 sm:$0xff]  ;;  %vm4147_vm6 = vcmask 1043456  }
 0x1bc   : > { %vm4151_vm8 = vcmask 1046528  }
 0x1bd   : > { %v1889_v39 = vsel %vm1887_vm2, %v1874_v20, %v1888_v34  ;;  %v2060_v14 = vsel %vm2058_vm3, %v1874_v20, %v1888_v34  ;;  %v2136_v20 = vld [vmem:[%s2765_s6 + $0x39] ss:$0 sm:$0xff]  ;;  %vm4149_vm2 = vcmask 1044480  }
 0x1be   : > { %v1893_v21 = vsel %vm1886_vm12, %v1889_v39, %v1892_v15  ;;  %v2064_v43 = vsel %vm2057_vm10, %v2060_v14, %v2063_v52  ;;  %v1714_v15 = vld [vmem:[%s2755_s17 + $0x18] ss:$0 sm:$0xff]  ;;  %v2138_v52 = vld [vmem:[%s2765_s6 + $0x3b] ss:$0 sm:$0xff]  ;;  %vm4148_vm12 = vmmov %vm4144_vm0 }
 0x1bf   : > { %v1894_v12 = vsel %vm1883_vm5, nan, %v1893_v21  ;;  %v2065_v26 = vsel %vm1883_vm5, nan, %v2064_v43 }
 0x1c0   : > { %v3946_v44 = vsel %vm1737_vm13, %v2363_v17, %v2065_v26  ;;  %v2083_v46 = vmul.f32 %v2082_v10, %v1894_v12 }
 0x1c1   : > { %v2067_v60 = vmul.f32 0.5, %v3946_v44  ;;  %v2086_v49 = vsub.f32 1.0, %v3946_v44 }
 0x1c3   : > { %v2068_v50 = vadd.f32 0.5, %v2067_v60  ;;  %v2101_v63 = vmul.f32 %v2100_v59, %v2086_v49 }
 0x1c5   : > { %v2084_v51 = vsel %vm1737_vm13, %v2068_v50, %v2083_v46 }
 0x1c6   : > { %v2085_v19 = vmul.f32 0.5, %v2084_v51  ;;  %v2107_v2 = vmul.f32 %v2477_v4, %v2084_v51  ;;  %v2108_v23 = vmul.f32 %v2479_v37, %v2084_v51  ;;  %v2106_v61 = vmul.f32 %v2478_v25, %v2084_v51 }
 0x1c8   : > { %v2102_v47 = vsel %vm1737_vm13, %v2085_v19, %v2101_v63  ;;  %vm4143_vm13 = vcmask 1040384  }
 0x1c9   : > { %v2103_v11 = vmul.f32 %v2478_v25, %v2102_v47  ;;  %v2104_v55 = vmul.f32 %v2477_v4, %v2102_v47  ;;  %v2105_v36 = vmul.f32 %v2479_v37, %v2102_v47  ;;  %vm4146_vm3 = vmmov %vm4143_vm13 }
 0x1cb   : > { %v2109_v28 = vmul.f32 %v2478_v25, %v2103_v11  ;;  %v2111_v38 = vmul.f32 %v2477_v4, %v2103_v11  ;;  %v2113_v29 = vmul.f32 %v2479_v37, %v2103_v11  ;;  %v2115_v54 = vmul.f32 %v2478_v25, %v2104_v55 }
 0x1cc   : > { %v2117_v8 = vmul.f32 %v2477_v4, %v2104_v55  ;;  %v2119_v40 = vmul.f32 %v2479_v37, %v2104_v55  ;;  %v2121_v5 = vmul.f32 %v2478_v25, %v2105_v36  ;;  %v2123_v24 = vmul.f32 %v2477_v4, %v2105_v36  ;;  %v1715_v4 = vld [vmem:[%s2755_s17 + $0x19] ss:$0 sm:$0xff] }
 0x1cd   : > { %v2110_v53 = vadd.f32 %v2109_v28, %v3946_v44  ;;  %v2112_v27 = vsub.f32 %v2111_v38, %v2108_v23  ;;  %v2114_v35 = vadd.f32 %v2113_v29, %v2107_v2  ;;  %v2116_v22 = vadd.f32 %v2115_v54, %v2108_v23 }
 0x1ce   : > { %v2118_v41 = vadd.f32 %v2117_v8, %v3946_v44  ;;  %v2120_v6 = vsub.f32 %v2119_v40, %v2106_v61  ;;  %v2122_v30 = vsub.f32 %v2121_v5, %v2107_v2  ;;  %v2125_v42 = vmul.f32 %v2479_v37, %v2105_v36 }
 0x1cf   : > { %v2139_v56 = vmul.f32 %v2127_v13, %v2110_v53  ;;  %v2140_v16 = vmul.f32 %v2131_v45, %v2112_v27  ;;  %v2144_v58 = vmul.f32 %v2128_v31, %v2110_v53  ;;  %v2145_v1 = vmul.f32 %v2132_v18, %v2112_v27 }
 0x1d0   : > { %v2149_v34 = vmul.f32 %v3962_v33, %v2110_v53  ;;  %v2142_v17 = vmul.f32 %v2135_v9, %v2114_v35  ;;  %v2147_v39 = vmul.f32 %v2136_v20, %v2114_v35  ;;  %v2150_v14 = vmul.f32 %v2133_v57, %v2112_v27 }
 0x1d1   : > { %v2141_v32 = vadd.f32 %v2140_v16, %v2139_v56  ;;  %v2146_v10 = vadd.f32 %v2145_v1, %v2144_v58  ;;  %v2152_v0 = vmul.f32 %v2137_v62, %v2114_v35  ;;  %v2154_v21 = vmul.f32 %v2130_v48, %v2110_v53  ;;  %v1716_v56 = vld [vmem:[%s2755_s17 + $0x1a] ss:$0 sm:$0xff] }
 0x1d2   : > { %v2156_v43 = vmul.f32 %v2134_v3, %v2112_v27  ;;  %v2124_v7 = vadd.f32 %v2123_v24, %v2106_v61  ;;  %v2151_v12 = vadd.f32 %v2150_v14, %v2149_v34  ;;  %v2160_v26 = vmul.f32 %v2127_v13, %v2116_v22 }
 0x1d3   : > { %v2161_v60 = vmul.f32 %v2131_v45, %v2118_v41  ;;  %v2126_v46 = vadd.f32 %v2125_v42, %v3946_v44  ;;  %v2155_v49 = vadd.f32 %v2154_v21, %v1714_v15  ;;  %v2158_v59 = vmul.f32 %v2138_v52, %v2114_v35 }
 0x1d4   : > { %v2165_v50 = vmul.f32 %v2128_v31, %v2116_v22  ;;  %v2143_v63 = vadd.f32 %v2142_v17, %v2141_v32  ;;  %v2148_v51 = vadd.f32 %v2147_v39, %v2146_v10  ;;  %v2163_v19 = vmul.f32 %v2135_v9, %v2120_v6 }
 0x1d5   : > { %v2166_v47 = vmul.f32 %v2132_v18, %v2118_v41  ;;  %v2153_v2 = vadd.f32 %v2152_v0, %v2151_v12  ;;  %v2157_v25 = vadd.f32 %v2156_v43, %v2155_v49  ;;  %v2170_v11 = vmul.f32 %v3962_v33, %v2116_v22 }
 0x1d6   : > { %v2171_v55 = vmul.f32 %v2133_v57, %v2118_v41  ;;  %v2162_v37 = vadd.f32 %v2161_v60, %v2160_v26  ;;  %v2168_v36 = vmul.f32 %v2136_v20, %v2120_v6  ;;  %v2175_v23 = vmul.f32 %v2130_v48, %v2116_v22 }
 0x1d7   : > { %v2177_v61 = vmul.f32 %v2134_v3, %v2118_v41  ;;  %v2159_v44 = vadd.f32 %v2158_v59, %v2157_v25  ;;  %v2167_v28 = vadd.f32 %v2166_v47, %v2165_v50  ;;  %v2173_v38 = vmul.f32 %v2137_v62, %v2120_v6 }
 0x1d8   : > { %v2181_v29 = vmul.f32 %v2127_v13, %v2122_v30  ;;  %v2172_v54 = vadd.f32 %v2171_v55, %v2170_v11  ;;  %v2176_v8 = vadd.f32 %v2175_v23, %v1715_v4  ;;  %v2182_v40 = vmul.f32 %v2131_v45, %v2124_v7 }
 0x1d9   : > { %v2184_v5 = vmul.f32 %v2135_v9, %v2126_v46  ;;  %v2179_v53 = vmul.f32 %v2138_v52, %v2120_v6  ;;  %v2186_v27 = vmul.f32 %v2128_v31, %v2122_v30  ;;  %v2187_v35 = vmul.f32 %v2132_v18, %v2124_v7 }
 0x1da   : > { %v2189_v24 = vmul.f32 %v2136_v20, %v2126_v46  ;;  %v2178_v16 = vadd.f32 %v2177_v61, %v2176_v8  ;;  %v2183_v42 = vadd.f32 %v2182_v40, %v2181_v29  ;;  %v2191_v58 = vmul.f32 %v3962_v33, %v2122_v30 }
 0x1db   : > { %v2192_v22 = vmul.f32 %v2133_v57, %v2124_v7  ;;  %v2188_v41 = vadd.f32 %v2187_v35, %v2186_v27  ;;  %v2194_v1 = vmul.f32 %v2137_v62, %v2126_v46  ;;  %v2196_v34 = vmul.f32 %v2130_v48, %v2122_v30 }
 0x1dc   : > { %v2198_v13 = vmul.f32 %v2134_v3, %v2124_v7  ;;  %v2164_v15 = vadd.f32 %v2163_v19, %v2162_v37  ;;  %v2169_v32 = vadd.f32 %v2168_v36, %v2167_v28  ;;  %v2185_v45 = vadd.f32 %v2184_v5, %v2183_v42 }
 0x1dd   : > { %v2193_v9 = vadd.f32 %v2192_v22, %v2191_v58  ;;  %v2190_v31 = vadd.f32 %v2189_v24, %v2188_v41  ;;  %v2197_v18 = vadd.f32 %v2196_v34, %v1716_v56  ;;  %v2200_v20 = vmul.f32 %v2138_v52, %v2126_v46 }
 0x1de   : > { %v2202_v6 = vsel %vm4143_vm13, %v2143_v63, %v2148_v51  ;;  %v2174_v33 = vadd.f32 %v2173_v38, %v2172_v54  ;;  %v2180_v30 = vadd.f32 %v2179_v53, %v2178_v16 }
 0x1df   : > { %v2195_v57 = vadd.f32 %v2194_v1, %v2193_v9  ;;  %v2203_v17 = vsel %vm4144_vm0, %v2202_v6, %v2153_v2  ;;  %v2199_v48 = vadd.f32 %v2198_v13, %v2197_v18  ;;  %v2209_v62 = vsel %vm4146_vm3, %v2185_v45, %v2190_v31 }
 0x1e0   : > { %v2204_v3 = vsel %vm4145_vm1, %v2203_v17, %v2159_v44 }
 0x1e1   : > { %v2205_v39 = vsel %vm4147_vm6, %v2204_v3, %v2164_v15  ;;  %v2210_v52 = vsel %vm4148_vm12, %v2209_v62, %v2195_v57  ;;  %v2201_v14 = vadd.f32 %v2200_v20, %v2199_v48 }
 0x1e2   : > { %v2206_v10 = vsel %vm4149_vm2, %v2205_v39, %v2169_v32 }
 0x1e3   : > { %v2207_v0 = vsel %vm4150_vm4, %v2206_v10, %v2174_v33  ;;  %v2211_v43 = vsel %vm4152_vm9, %v2210_v52, %v2201_v14 }
 0x1e4   : > { %v2208_v21 = vsel %vm4151_vm8, %v2207_v0, %v2180_v30  ;;  %2213 = vst [vmem:[%s3290_s20 + $0x38] sm:$0xf] %v2211_v43 }
 0x1e5   : > { %2212 = vst [vmem:[%s3290_s20 + $0x18] sm:$0xff] %v2208_v21 }
 0x1e6   : > { %2567 = shalt.err (!%p2564_p5)
}
 0x1e7   : > { %s2622_s27 = smov 512   ;;  %s2623_s17 = smov 1024  }
 0x1e8   : > { %s2624_s4 = smov 32  }
 0x1e9   : > { %2379 = dma.vmem_to_hbm [thread:$0]  (%p2690_p11), %s2228_s13, 1024, %s2230_s3, %s2215_s8, %s2622_s27, %s2623_s17, %s2624_s4  }
 0x1ea PF: > { %s2244_s24 = sand.u32 1, %s2598_s9   ;;  %p2389_p7 = pnand %p2328_p9, %p2694_p12 }
 0x1eb   : > { %s2245_s6 = scalar_lea.sflag [#allocation4], %s2244_s24 }
 0x1ec   : > { %p2390_p8 = pneg %p2389_p7 }
 0x1ee   : > { %2593 = dma.done.wait (%p2390_p8), %s2245_s6, 1024  }
 0x1ef   : > { %2595 = vsyncadd (%p2390_p8), %s2245_s6, 4294966272  ;;  %p18_p10 = scmp.ge.s32.totalorder %s2665_s15, 4   ;;  %s4153_s9 = smov %s2602_s10 }
 0x1f0   : > { %s4154_s10 = smov %s2606_s11  ;;  %s4155_s11 = smov %s2677_s18 }
 0x1f1   : > { %s4156_s12 = smov %s2665_s15  ;;  %20 = sbr.rel (!%p18_p10) target bundleno = 7 (0x7), region = 86 }
 0x1f6   :  { %2251 = vsyncpa [#allocation3], 1 }
 0x1f7   :  { %2253 = vsyncpa [#allocation3 + $0x1], 1 }
 0x1f8   :  { %2254 = vsyncpa [#allocation6], 1 }
 0x1f9   :  { %2256 = vsyncpa [#allocation6 + $0x1], 1 }
 0x1fa   :  { %2257 = vsyncpa [#allocation4], 1 }
 0x1fb   :  { %2259 = vsyncpa [#allocation4 + $0x1], 1 }

</bundles_post_ra>
